<compile_context>
chip_gen: v7x
topology: tpu7x:2x2x1
jax: 0.10.0
libtpu: 0.0.40
codegen_flags: <defaults>
</compile_context>

<pallas_src>
import functools

import jax
import jax.numpy as jnp
from jax.experimental import pallas as pl
from jax.experimental.pallas import tpu as pltpu


# --------------------------------------------------------------------------- #
# Pallas kernels
# --------------------------------------------------------------------------- #
def _matmul_bias_act_kernel(x_ref, w_ref, b_ref, o_ref, *, relu: bool):
    """One M-block: o = act(x @ w + b). bf16 operands, f32 accumulate/bias/ReLU."""
    acc = jnp.dot(x_ref[...], w_ref[...], preferred_element_type=jnp.float32)
    acc = acc + b_ref[...]  # b is (1, N) f32, broadcasts over rows
    if relu:
        acc = jnp.maximum(acc, 0.0)
    o_ref[...] = acc.astype(o_ref.dtype)


def pallas_matmul_bias_act(x, w, b2d, *, relu, out_dtype, block_m=256):
    """act(x @ w + b) with an M-parallel grid.

    W/b index-map to (0,0) so they stay resident in VMEM across grid steps; the
    grid over M lets the two TensorCores on v7x each take half the rows (neutral
    on v5e/v6e).  No explicit padding: block dims are (8,128)-aligned or equal
    to the full array dims.
    """
    M, K = x.shape
    Kw, N = w.shape
    assert K == Kw, (K, Kw)
    bm = M if M <= block_m else block_m  # block_m is a multiple of 8
    grid_m = pl.cdiv(M, bm)
    return pl.pallas_call(
        functools.partial(_matmul_bias_act_kernel, relu=relu),
        out_shape=jax.ShapeDtypeStruct((M, N), out_dtype),
        grid=(grid_m,),
        in_specs=[
            pl.BlockSpec((bm, K), lambda i: (i, 0)),
            pl.BlockSpec((K, N), lambda i: (0, 0)),  # resident across M steps
            pl.BlockSpec((1, N), lambda i: (0, 0)),  # resident across M steps
        ],
        out_specs=pl.BlockSpec((bm, N), lambda i: (i, 0)),
        compiler_params=pltpu.CompilerParams(
            dimension_semantics=("parallel",),
        ),
    )(x, w, b2d)


def _fc_stack_kernel(x_ref, w1_ref, b1_ref, w2_ref, b2_ref, w3_ref, b3_ref,
                     o_ref, *, final_relu: bool):
    """Fused classifier: fc1 -> ReLU -> fc2 -> ReLU -> fc3 in a single body.

    All three matmuls run back-to-back on the MXU; the (B,800)/(B,400)
    intermediates never leave VMEM.
    """
    h = jnp.dot(x_ref[...], w1_ref[...], preferred_element_type=jnp.float32)
    h = jnp.maximum(h + b1_ref[...], 0.0)
    h = jnp.dot(h.astype(jnp.bfloat16), w2_ref[...],
                preferred_element_type=jnp.float32)
    h = jnp.maximum(h + b2_ref[...], 0.0)
    h = jnp.dot(h.astype(jnp.bfloat16), w3_ref[...],
                preferred_element_type=jnp.float32)
    h = h + b3_ref[...]
    if final_relu:
        h = jnp.maximum(h, 0.0)
    o_ref[...] = h.astype(o_ref.dtype)


def pallas_fc_stack(x, w1, b1, w2, b2, w3, b3, *, final_relu=False):
    B = x.shape[0]
    n_out = w3.shape[1]

    def full_spec(arr):
        return pl.BlockSpec(arr.shape, lambda i: (0,) * arr.ndim)

    operands = (x, w1, b1, w2, b2, w3, b3)
    flops = 2 * B * (w1.shape[0] * w1.shape[1]
                     + w2.shape[0] * w2.shape[1]
                     + w3.shape[0] * w3.shape[1])
    bytes_accessed = int(sum(a.size * a.dtype.itemsize for a in operands)
                         + B * n_out * 4)

    return pl.pallas_call(
        functools.partial(_fc_stack_kernel, final_relu=final_relu),
        out_shape=jax.ShapeDtypeStruct((B, n_out), jnp.float32),
        grid=(1,),
        in_specs=[full_spec(a) for a in operands],
        out_specs=pl.BlockSpec((B, n_out), lambda i: (0, 0)),
        compiler_params=pltpu.CompilerParams(
            # bf16 weights total ~3.2 MB; explicit limit keeps headroom on v5e
            # (16 MiB default scoped VMEM) and stays well under v7x's 64 MiB.
            vmem_limit_bytes=32 * 1024 * 1024,
        ),
        cost_estimate=pl.CostEstimate(
            flops=flops, transcendentals=0, bytes_accessed=bytes_accessed),
    )(*operands)


# --------------------------------------------------------------------------- #
# JAX glue (im2col patch extraction stays in XLA; see TODO)
# --------------------------------------------------------------------------- #
# TODO(synk): the 9-tap patch extraction could be folded into the conv kernel
#             (strided in-kernel slices + 9 accumulating dots); kept in XLA here
#             because a single big-K matmul uses the MXU better at these sizes.
def conv_block(x_nhwc, w_mat, b2d, k, stride, *, relu=True):
    """Conv2d(k, stride, padding=0) + ReLU via im2col + fused Pallas matmul."""
    B, H, W, C = x_nhwc.shape
    Ho = (H - k) // stride + 1
    Wo = (W - k) // stride + 1
    cols = []
    for i in range(k):
        for j in range(k):
            cols.append(
                x_nhwc[:, i:i + stride * Ho:stride, j:j + stride * Wo:stride, :]
            )
    patches = jnp.stack(cols, axis=-2)                 # [B,Ho,Wo,k*k,C]
    patches = patches.reshape(B * Ho * Wo, k * k * C)  # row order (kh,kw,cin)
    cout = w_mat.shape[1]
    y = pallas_matmul_bias_act(patches, w_mat, b2d, relu=relu,
                               out_dtype=x_nhwc.dtype)
    return y.reshape(B, Ho, Wo, cout)


# --------------------------------------------------------------------------- #
# Parameters (stored directly in kernel-side inference layout)
# --------------------------------------------------------------------------- #
def init_params(key, in_channel=2, out_channel=10):
    """Conv weights stored as (kh*kw*cin, cout) bf16 (row order kh,kw,cin — this
    is HWIO.reshape(-1,cout); from PyTorch OIHW use w.transpose(2,3,1,0)).
    FC weights stored (in, out) bf16; fc1 rows pre-permuted to NHWC-flatten
    order.  Biases stored (1, N) f32."""
    def dense_init(k, fan_in, shape):
        return (jax.random.normal(k, shape, jnp.float32) / jnp.sqrt(fan_in)) * 0.5

    ks = jax.random.split(key, 6)
    p = {}
    p["w_conv1"] = dense_init(ks[0], 9 * in_channel,
                              (9 * in_channel, 16)).astype(jnp.bfloat16)
    p["b_conv1"] = jnp.zeros((1, 16), jnp.float32)
    p["w_conv2"] = dense_init(ks[1], 9 * 16, (9 * 16, 32)).astype(jnp.bfloat16)
    p["b_conv2"] = jnp.zeros((1, 32), jnp.float32)
    p["w_conv3"] = dense_init(ks[2], 9 * 32, (9 * 32, 64)).astype(jnp.bfloat16)
    p["b_conv3"] = jnp.zeros((1, 64), jnp.float32)

    # fc1: build in PyTorch/NCHW-flatten row order (c*25 + h*5 + w), then permute
    # rows ONCE to NHWC-flatten order (h*320 + w*64 + c) so the runtime
    # transpose before the flatten is not needed.
    w_fc1_nchw = dense_init(ks[3], 5 * 5 * 64, (5 * 5 * 64, 800))
    w_fc1_nhwc = (w_fc1_nchw.reshape(64, 5, 5, 800)
                  .transpose(1, 2, 0, 3)
                  .reshape(5 * 5 * 64, 800))
    p["w_fc1"] = w_fc1_nhwc.astype(jnp.bfloat16)
    p["b_fc1"] = jnp.zeros((1, 800), jnp.float32)
    p["w_fc2"] = dense_init(ks[4], 800, (800, 400)).astype(jnp.bfloat16)
    p["b_fc2"] = jnp.zeros((1, 400), jnp.float32)
    p["w_fc3"] = dense_init(ks[5], 400, (400, out_channel)).astype(jnp.bfloat16)
    p["b_fc3"] = jnp.zeros((1, out_channel), jnp.float32)
    return p


# --------------------------------------------------------------------------- #
# Forward
# --------------------------------------------------------------------------- #
@jax.jit
def naive_model_forward(params, input1_nchw, input2_nchw):
    # torch.cat((input1, input2), dim=1): concat along channels (NCHW dim 1)
    x = jnp.concatenate([input1_nchw, input2_nchw], axis=1)     # [B, 2, 28, 28]
    x = jnp.transpose(x, (0, 2, 3, 1)).astype(jnp.bfloat16)     # NHWC, bf16

    x = conv_block(x, params["w_conv1"], params["b_conv1"], 3, 1)  # [B,26,26,16]
    x = conv_block(x, params["w_conv2"], params["b_conv2"], 3, 2)  # [B,12,12,32]
    x = conv_block(x, params["w_conv3"], params["b_conv3"], 3, 2)  # [B, 5, 5,64]

    # torch.flatten(x, start_dim=1): NHWC flatten is used directly because the
    # fc1 weight rows were pre-permuted at init to NHWC order.
    B = x.shape[0]
    x = x.reshape(B, -1)                                           # [B, 1600]

    # Fused classifier: fc1 -> ReLU -> fc2 -> ReLU -> fc3 (no ReLU on logits).
    return pallas_fc_stack(x,
                           params["w_fc1"], params["b_fc1"],
                           params["w_fc2"], params["b_fc2"],
                           params["w_fc3"], params["b_fc3"],
                           final_relu=False)


if __name__ == "__main__":
    key = jax.random.PRNGKey(0)
    k_param, k_in1, k_in2 = jax.random.split(key, 3)

    params = init_params(k_param, in_channel=2, out_channel=10)

    # in_channel=2 and fc1 expecting 5*5*64 imply two 1-channel 28x28 inputs.
    B = 2
    input1 = jax.random.normal(k_in1, (B, 1, 28, 28), jnp.float32)  # NCHW
    input2 = jax.random.normal(k_in2, (B, 1, 28, 28), jnp.float32)  # NCHW

    out = naive_model_forward(params, input1, input2)
    out = jax.block_until_ready(out)

    assert out.shape == (B, 10), out.shape
    assert bool(jnp.all(jnp.isfinite(out)))
    print("KERNEL_OK")
</pallas_src>

<mosaic_0001>
module attributes {stable_mosaic.version = 11 : i64} {
  func.func @_matmul_bias_act_kernel(%arg0: i32, %arg1: memref<256x18xbf16, #tpu.memory_space<vmem>>, %arg2: memref<18x16xbf16, #tpu.memory_space<vmem>>, %arg3: memref<1x16xf32, #tpu.memory_space<vmem>>, %arg4: memref<256x16xbf16, #tpu.memory_space<vmem>>) attributes {dimension_semantics = [#tpu.dimension_semantics<parallel>], iteration_bounds = array<i64: 6>, scalar_prefetch = 0 : i64, scratch_operands = 0 : i64, tpu.core_type = #tpu.core_type<tc>, window_params = [{transform_indices = @transform_0, window_bounds = array<i64: 256, 18>}, {pipeline_mode = #tpu.pipeline_mode<synchronous>, transform_indices = @transform_1, window_bounds = array<i64: 18, 16>}, {pipeline_mode = #tpu.pipeline_mode<synchronous>, transform_indices = @transform_2, window_bounds = array<i64: 1, 16>}, {transform_indices = @transform_3, window_bounds = array<i64: 256, 16>}]} {
    %c0 = arith.constant 0 : index
    %c0_0 = arith.constant 0 : index
    %0 = vector.load %arg1[%c0, %c0_0] : memref<256x18xbf16, #tpu.memory_space<vmem>>, vector<256x18xbf16>
    %c0_1 = arith.constant 0 : index
    %c0_2 = arith.constant 0 : index
    %1 = vector.load %arg2[%c0_1, %c0_2] : memref<18x16xbf16, #tpu.memory_space<vmem>>, vector<18x16xbf16>
    %cst = arith.constant dense<0.000000e+00> : vector<256x16xf32>
    %2 = tpu.matmul %0, %1, %cst {dimension_numbers = #tpu.dot_dimension_numbers<[1], [0], [0], [1], [0, 0, 1, 1], [], []>} : vector<256x18xbf16>, vector<18x16xbf16>, vector<256x16xf32> -> vector<256x16xf32>
    %c0_3 = arith.constant 0 : index
    %c0_4 = arith.constant 0 : index
    %3 = vector.load %arg3[%c0_3, %c0_4] : memref<1x16xf32, #tpu.memory_space<vmem>>, vector<1x16xf32>
    %4 = vector.broadcast %3 : vector<1x16xf32> to vector<256x16xf32>
    %5 = arith.addf %2, %4 : vector<256x16xf32>
    %cst_5 = arith.constant 0.000000e+00 : f32
    %6 = vector.broadcast %cst_5 : f32 to vector<256x16xf32>
    %7 = arith.maximumf %5, %6 : vector<256x16xf32>
    %8 = arith.truncf %7 : vector<256x16xf32> to vector<256x16xbf16>
    %c0_6 = arith.constant 0 : index
    %c0_7 = arith.constant 0 : index
    %9 = vector.load %arg4[%c0_6, %c0_7] : memref<256x16xbf16, #tpu.memory_space<vmem>>, vector<256x16xbf16>
    tpu.vector_store %arg4[%c0_6, %c0_7], %8 {strides = array<i32>} : memref<256x16xbf16, #tpu.memory_space<vmem>>, vector<256x16xbf16>,
    return
  }
  func.func @transform_0(%arg0: i32) -> (i32, i32) {
    %c0_i32 = arith.constant 0 : i32
    %c0_i32_0 = arith.constant 0 : i32
    return %arg0, %c0_i32 : i32, i32
  }
  func.func @transform_1(%arg0: i32) -> (i32, i32) {
    %c0_i32 = arith.constant 0 : i32
    %c0_i32_0 = arith.constant 0 : i32
    %c0_i32_1 = arith.constant 0 : i32
    return %c0_i32, %c0_i32_0 : i32, i32
  }
  func.func @transform_2(%arg0: i32) -> (i32, i32) {
    %c0_i32 = arith.constant 0 : i32
    %c0_i32_0 = arith.constant 0 : i32
    %c0_i32_1 = arith.constant 0 : i32
    return %c0_i32, %c0_i32_0 : i32, i32
  }
  func.func @transform_3(%arg0: i32) -> (i32, i32) {
    %c0_i32 = arith.constant 0 : i32
    %c0_i32_0 = arith.constant 0 : i32
    return %arg0, %c0_i32 : i32, i32
  }
}

module attributes {stable_mosaic.version = 11 : i64} {
  func.func @_matmul_bias_act_kernel(%arg0: i32, %arg1: memref<256x144xbf16, #tpu.memory_space<vmem>>, %arg2: memref<144x32xbf16, #tpu.memory_space<vmem>>, %arg3: memref<1x32xf32, #tpu.memory_space<vmem>>, %arg4: memref<256x32xbf16, #tpu.memory_space<vmem>>) attributes {dimension_semantics = [#tpu.dimension_semantics<parallel>], iteration_bounds = array<i64: 2>, scalar_prefetch = 0 : i64, scratch_operands = 0 : i64, tpu.core_type = #tpu.core_type<tc>, window_params = [{transform_indices = @transform_0, window_bounds = array<i64: 256, 144>}, {pipeline_mode = #tpu.pipeline_mode<synchronous>, transform_indices = @transform_1, window_bounds = array<i64: 144, 32>}, {pipeline_mode = #tpu.pipeline_mode<synchronous>, transform_indices = @transform_2, window_bounds = array<i64: 1, 32>}, {transform_indices = @transform_3, window_bounds = array<i64: 256, 32>}]} {
    %c0 = arith.constant 0 : index
    %c0_0 = arith.constant 0 : index
    %0 = vector.load %arg1[%c0, %c0_0] : memref<256x144xbf16, #tpu.memory_space<vmem>>, vector<256x144xbf16>
    %c0_1 = arith.constant 0 : index
    %c0_2 = arith.constant 0 : index
    %1 = vector.load %arg2[%c0_1, %c0_2] : memref<144x32xbf16, #tpu.memory_space<vmem>>, vector<144x32xbf16>
    %cst = arith.constant dense<0.000000e+00> : vector<256x32xf32>
    %2 = tpu.matmul %0, %1, %cst {dimension_numbers = #tpu.dot_dimension_numbers<[1], [0], [0], [1], [0, 0, 1, 1], [], []>} : vector<256x144xbf16>, vector<144x32xbf16>, vector<256x32xf32> -> vector<256x32xf32>
    %c0_3 = arith.constant 0 : index
    %c0_4 = arith.constant 0 : index
    %3 = vector.load %arg3[%c0_3, %c0_4] : memref<1x32xf32, #tpu.memory_space<vmem>>, vector<1x32xf32>
    %4 = vector.broadcast %3 : vector<1x32xf32> to vector<256x32xf32>
    %5 = arith.addf %2, %4 : vector<256x32xf32>
    %cst_5 = arith.constant 0.000000e+00 : f32
    %6 = vector.broadcast %cst_5 : f32 to vector<256x32xf32>
    %7 = arith.maximumf %5, %6 : vector<256x32xf32>
    %8 = arith.truncf %7 : vector<256x32xf32> to vector<256x32xbf16>
    %c0_6 = arith.constant 0 : index
    %c0_7 = arith.constant 0 : index
    %9 = vector.load %arg4[%c0_6, %c0_7] : memref<256x32xbf16, #tpu.memory_space<vmem>>, vector<256x32xbf16>
    tpu.vector_store %arg4[%c0_6, %c0_7], %8 {strides = array<i32>} : memref<256x32xbf16, #tpu.memory_space<vmem>>, vector<256x32xbf16>,
    return
  }
  func.func @transform_0(%arg0: i32) -> (i32, i32) {
    %c0_i32 = arith.constant 0 : i32
    %c0_i32_0 = arith.constant 0 : i32
    return %arg0, %c0_i32 : i32, i32
  }
  func.func @transform_1(%arg0: i32) -> (i32, i32) {
    %c0_i32 = arith.constant 0 : i32
    %c0_i32_0 = arith.constant 0 : i32
    %c0_i32_1 = arith.constant 0 : i32
    return %c0_i32, %c0_i32_0 : i32, i32
  }
  func.func @transform_2(%arg0: i32) -> (i32, i32) {
    %c0_i32 = arith.constant 0 : i32
    %c0_i32_0 = arith.constant 0 : i32
    %c0_i32_1 = arith.constant 0 : i32
    return %c0_i32, %c0_i32_0 : i32, i32
  }
  func.func @transform_3(%arg0: i32) -> (i32, i32) {
    %c0_i32 = arith.constant 0 : i32
    %c0_i32_0 = arith.constant 0 : i32
    return %arg0, %c0_i32 : i32, i32
  }
}

module attributes {stable_mosaic.version = 11 : i64} {
  func.func @_matmul_bias_act_kernel(%arg0: i32, %arg1: memref<50x288xbf16, #tpu.memory_space<vmem>>, %arg2: memref<288x64xbf16, #tpu.memory_space<vmem>>, %arg3: memref<1x64xf32, #tpu.memory_space<vmem>>, %arg4: memref<50x64xbf16, #tpu.memory_space<vmem>>) attributes {dimension_semantics = [#tpu.dimension_semantics<parallel>], iteration_bounds = array<i64: 1>, scalar_prefetch = 0 : i64, scratch_operands = 0 : i64, tpu.core_type = #tpu.core_type<tc>, window_params = [{transform_indices = @transform_0, window_bounds = array<i64: 50, 288>}, {pipeline_mode = #tpu.pipeline_mode<synchronous>, transform_indices = @transform_1, window_bounds = array<i64: 288, 64>}, {pipeline_mode = #tpu.pipeline_mode<synchronous>, transform_indices = @transform_2, window_bounds = array<i64: 1, 64>}, {transform_indices = @transform_3, window_bounds = array<i64: 50, 64>}]} {
    %c0 = arith.constant 0 : index
    %c0_0 = arith.constant 0 : index
    %0 = vector.load %arg1[%c0, %c0_0] : memref<50x288xbf16, #tpu.memory_space<vmem>>, vector<50x288xbf16>
    %c0_1 = arith.constant 0 : index
    %c0_2 = arith.constant 0 : index
    %1 = vector.load %arg2[%c0_1, %c0_2] : memref<288x64xbf16, #tpu.memory_space<vmem>>, vector<288x64xbf16>
    %cst = arith.constant dense<0.000000e+00> : vector<50x64xf32>
    %2 = tpu.matmul %0, %1, %cst {dimension_numbers = #tpu.dot_dimension_numbers<[1], [0], [0], [1], [0, 0, 1, 1], [], []>} : vector<50x288xbf16>, vector<288x64xbf16>, vector<50x64xf32> -> vector<50x64xf32>
    %c0_3 = arith.constant 0 : index
    %c0_4 = arith.constant 0 : index
    %3 = vector.load %arg3[%c0_3, %c0_4] : memref<1x64xf32, #tpu.memory_space<vmem>>, vector<1x64xf32>
    %4 = vector.broadcast %3 : vector<1x64xf32> to vector<50x64xf32>
    %5 = arith.addf %2, %4 : vector<50x64xf32>
    %cst_5 = arith.constant 0.000000e+00 : f32
    %6 = vector.broadcast %cst_5 : f32 to vector<50x64xf32>
    %7 = arith.maximumf %5, %6 : vector<50x64xf32>
    %8 = arith.truncf %7 : vector<50x64xf32> to vector<50x64xbf16>
    %c0_6 = arith.constant 0 : index
    %c0_7 = arith.constant 0 : index
    %9 = vector.load %arg4[%c0_6, %c0_7] : memref<50x64xbf16, #tpu.memory_space<vmem>>, vector<50x64xbf16>
    tpu.vector_store %arg4[%c0_6, %c0_7], %8 {strides = array<i32>} : memref<50x64xbf16, #tpu.memory_space<vmem>>, vector<50x64xbf16>,
    return
  }
  func.func @transform_0(%arg0: i32) -> (i32, i32) {
    %c0_i32 = arith.constant 0 : i32
    %c0_i32_0 = arith.constant 0 : i32
    return %arg0, %c0_i32 : i32, i32
  }
  func.func @transform_1(%arg0: i32) -> (i32, i32) {
    %c0_i32 = arith.constant 0 : i32
    %c0_i32_0 = arith.constant 0 : i32
    %c0_i32_1 = arith.constant 0 : i32
    return %c0_i32, %c0_i32_0 : i32, i32
  }
  func.func @transform_2(%arg0: i32) -> (i32, i32) {
    %c0_i32 = arith.constant 0 : i32
    %c0_i32_0 = arith.constant 0 : i32
    %c0_i32_1 = arith.constant 0 : i32
    return %c0_i32, %c0_i32_0 : i32, i32
  }
  func.func @transform_3(%arg0: i32) -> (i32, i32) {
    %c0_i32 = arith.constant 0 : i32
    %c0_i32_0 = arith.constant 0 : i32
    return %arg0, %c0_i32 : i32, i32
  }
}

module attributes {stable_mosaic.version = 11 : i64} {
  func.func @_fc_stack_kernel(%arg0: i32, %arg1: memref<2x1600xbf16, #tpu.memory_space<vmem>>, %arg2: memref<1600x800xbf16, #tpu.memory_space<vmem>>, %arg3: memref<1x800xf32, #tpu.memory_space<vmem>>, %arg4: memref<800x400xbf16, #tpu.memory_space<vmem>>, %arg5: memref<1x400xf32, #tpu.memory_space<vmem>>, %arg6: memref<400x10xbf16, #tpu.memory_space<vmem>>, %arg7: memref<1x10xf32, #tpu.memory_space<vmem>>, %arg8: memref<2x10xf32, #tpu.memory_space<vmem>>) attributes {dimension_semantics = [#tpu.dimension_semantics<arbitrary>], iteration_bounds = array<i64: 1>, scalar_prefetch = 0 : i64, scratch_operands = 0 : i64, tpu.core_type = #tpu.core_type<tc>, window_params = [{pipeline_mode = #tpu.pipeline_mode<synchronous>, transform_indices = @transform_0, window_bounds = array<i64: 2, 1600>}, {pipeline_mode = #tpu.pipeline_mode<synchronous>, transform_indices = @transform_1, window_bounds = array<i64: 1600, 800>}, {pipeline_mode = #tpu.pipeline_mode<synchronous>, transform_indices = @transform_2, window_bounds = array<i64: 1, 800>}, {pipeline_mode = #tpu.pipeline_mode<synchronous>, transform_indices = @transform_3, window_bounds = array<i64: 800, 400>}, {pipeline_mode = #tpu.pipeline_mode<synchronous>, transform_indices = @transform_4, window_bounds = array<i64: 1, 400>}, {pipeline_mode = #tpu.pipeline_mode<synchronous>, transform_indices = @transform_5, window_bounds = array<i64: 400, 10>}, {pipeline_mode = #tpu.pipeline_mode<synchronous>, transform_indices = @transform_6, window_bounds = array<i64: 1, 10>}, {pipeline_mode = #tpu.pipeline_mode<synchronous>, transform_indices = @transform_7, window_bounds = array<i64: 2, 10>}]} {
    %c0 = arith.constant 0 : index
    %c0_0 = arith.constant 0 : index
    %0 = vector.load %arg1[%c0, %c0_0] : memref<2x1600xbf16, #tpu.memory_space<vmem>>, vector<2x1600xbf16>
    %c0_1 = arith.constant 0 : index
    %c0_2 = arith.constant 0 : index
    %1 = vector.load %arg2[%c0_1, %c0_2] : memref<1600x800xbf16, #tpu.memory_space<vmem>>, vector<1600x800xbf16>
    %cst = arith.constant dense<0.000000e+00> : vector<2x800xf32>
    %2 = tpu.matmul %0, %1, %cst {dimension_numbers = #tpu.dot_dimension_numbers<[1], [0], [0], [1], [0, 0, 1, 1], [], []>} : vector<2x1600xbf16>, vector<1600x800xbf16>, vector<2x800xf32> -> vector<2x800xf32>
    %c0_3 = arith.constant 0 : index
    %c0_4 = arith.constant 0 : index
    %3 = vector.load %arg3[%c0_3, %c0_4] : memref<1x800xf32, #tpu.memory_space<vmem>>, vector<1x800xf32>
    %4 = vector.broadcast %3 : vector<1x800xf32> to vector<2x800xf32>
    %5 = arith.addf %2, %4 : vector<2x800xf32>
    %cst_5 = arith.constant 0.000000e+00 : f32
    %6 = vector.broadcast %cst_5 : f32 to vector<2x800xf32>
    %7 = arith.maximumf %5, %6 : vector<2x800xf32>
    %8 = arith.truncf %7 : vector<2x800xf32> to vector<2x800xbf16>
    %c0_6 = arith.constant 0 : index
    %c0_7 = arith.constant 0 : index
    %9 = vector.load %arg4[%c0_6, %c0_7] : memref<800x400xbf16, #tpu.memory_space<vmem>>, vector<800x400xbf16>
    %cst_8 = arith.constant dense<0.000000e+00> : vector<2x400xf32>
    %10 = tpu.matmul %8, %9, %cst_8 {dimension_numbers = #tpu.dot_dimension_numbers<[1], [0], [0], [1], [0, 0, 1, 1], [], []>} : vector<2x800xbf16>, vector<800x400xbf16>, vector<2x400xf32> -> vector<2x400xf32>
    %c0_9 = arith.constant 0 : index
    %c0_10 = arith.constant 0 : index
    %11 = vector.load %arg5[%c0_9, %c0_10] : memref<1x400xf32, #tpu.memory_space<vmem>>, vector<1x400xf32>
    %12 = vector.broadcast %11 : vector<1x400xf32> to vector<2x400xf32>
    %13 = arith.addf %10, %12 : vector<2x400xf32>
    %cst_11 = arith.constant 0.000000e+00 : f32
    %14 = vector.broadcast %cst_11 : f32 to vector<2x400xf32>
    %15 = arith.maximumf %13, %14 : vector<2x400xf32>
    %16 = arith.truncf %15 : vector<2x400xf32> to vector<2x400xbf16>
    %c0_12 = arith.constant 0 : index
    %c0_13 = arith.constant 0 : index
    %17 = vector.load %arg6[%c0_12, %c0_13] : memref<400x10xbf16, #tpu.memory_space<vmem>>, vector<400x10xbf16>
    %cst_14 = arith.constant dense<0.000000e+00> : vector<2x10xf32>
    %18 = tpu.matmul %16, %17, %cst_14 {dimension_numbers = #tpu.dot_dimension_numbers<[1], [0], [0], [1], [0, 0, 1, 1], [], []>} : vector<2x400xbf16>, vector<400x10xbf16>, vector<2x10xf32> -> vector<2x10xf32>
    %c0_15 = arith.constant 0 : index
    %c0_16 = arith.constant 0 : index
    %19 = vector.load %arg7[%c0_15, %c0_16] : memref<1x10xf32, #tpu.memory_space<vmem>>, vector<1x10xf32>
    %20 = vector.broadcast %19 : vector<1x10xf32> to vector<2x10xf32>
    %21 = arith.addf %18, %20 : vector<2x10xf32>
    %c0_17 = arith.constant 0 : index
    %c0_18 = arith.constant 0 : index
    %22 = vector.load %arg8[%c0_17, %c0_18] : memref<2x10xf32, #tpu.memory_space<vmem>>, vector<2x10xf32>
    tpu.vector_store %arg8[%c0_17, %c0_18], %21 {strides = array<i32>} : memref<2x10xf32, #tpu.memory_space<vmem>>, vector<2x10xf32>,
    return
  }
  func.func @transform_0(%arg0: i32) -> (i32, i32) {
    %c0_i32 = arith.constant 0 : i32
    %c0_i32_0 = arith.constant 0 : i32
    %c0_i32_1 = arith.constant 0 : i32
    return %c0_i32, %c0_i32_0 : i32, i32
  }
  func.func @transform_1(%arg0: i32) -> (i32, i32) {
    %c0_i32 = arith.constant 0 : i32
    %c0_i32_0 = arith.constant 0 : i32
    %c0_i32_1 = arith.constant 0 : i32
    return %c0_i32, %c0_i32_0 : i32, i32
  }
  func.func @transform_2(%arg0: i32) -> (i32, i32) {
    %c0_i32 = arith.constant 0 : i32
    %c0_i32_0 = arith.constant 0 : i32
    %c0_i32_1 = arith.constant 0 : i32
    return %c0_i32, %c0_i32_0 : i32, i32
  }
  func.func @transform_3(%arg0: i32) -> (i32, i32) {
    %c0_i32 = arith.constant 0 : i32
    %c0_i32_0 = arith.constant 0 : i32
    %c0_i32_1 = arith.constant 0 : i32
    return %c0_i32, %c0_i32_0 : i32, i32
  }
  func.func @transform_4(%arg0: i32) -> (i32, i32) {
    %c0_i32 = arith.constant 0 : i32
    %c0_i32_0 = arith.constant 0 : i32
    %c0_i32_1 = arith.constant 0 : i32
    return %c0_i32, %c0_i32_0 : i32, i32
  }
  func.func @transform_5(%arg0: i32) -> (i32, i32) {
    %c0_i32 = arith.constant 0 : i32
    %c0_i32_0 = arith.constant 0 : i32
    %c0_i32_1 = arith.constant 0 : i32
    return %c0_i32, %c0_i32_0 : i32, i32
  }
  func.func @transform_6(%arg0: i32) -> (i32, i32) {
    %c0_i32 = arith.constant 0 : i32
    %c0_i32_0 = arith.constant 0 : i32
    %c0_i32_1 = arith.constant 0 : i32
    return %c0_i32, %c0_i32_0 : i32, i32
  }
  func.func @transform_7(%arg0: i32) -> (i32, i32) {
    %c0_i32 = arith.constant 0 : i32
    %c0_i32_0 = arith.constant 0 : i32
    %c0_i32_1 = arith.constant 0 : i32
    return %c0_i32, %c0_i32_0 : i32, i32
  }
}

</mosaic_0001>

<bundles_post_ra>
// kernel: naive_model_forward.4
= control target key start
LH: loop header
LB: loop body
LE: loop exit
PB: predicated region body
PF: predicated region fallthrough
CT: control target
= control target key end

     0   :  { %s1469_s12 = smov 0   ;;  %s1471_s13 = smov 0   ;;  %s1785_s0 = inlined_call_operand.vmem [shape: bf16[1352,18], index: 0, kind: input, shape index: {}]   ;;  %s1786_s1 = inlined_call_operand.vmem [shape: bf16[18,16], index: 1, kind: input, shape index: {}]   ;;  %s1787_s2 = inlined_call_operand.vmem [shape: f32[1,16], index: 2, kind: input, shape index: {}]   ;;  %s1788_s3 = inlined_call_operand.vmem [shape: bf16[1352,16], index: 3, kind: output, shape index: {}]  }
   0x1   :  { %s1473_s14 = smov 0  }
   0x2 LB: > { %s1482_s15 = sadd.s32 4294967295, %s1415_s14   ;;  %s1484_s16 = sadd.s32 1, %s1415_s14   ;;  %s1415_s14 = sphi %s1473_s14, %s1795_s14   ;;  %s1411_s13 = sphi %s1471_s13, %s1794_s13   ;;  %s1407_s12 = sphi %s1469_s12, %s1793_s12  }
   0x3   : > { %s85_s17 = ssub.s32 %s1415_s14, %s1484_s16  ;;  %s88_s18 = sadd.s32 1, %s1411_s13 }
   0x4   : > { %p86_p0 = scmp.eq.s32.totalorder %s85_s17, 0  ;;  %p98_p1 = scmp.ne.s32.totalorder %s1411_s13, %s1407_s12 }
   0x5   : > { %p99_p2 = scmp.eq.s32.totalorder %s1482_s15, 5  ;;  %p1072_p3 = scmp.ge.s32.totalorder %s1415_s14, 1 }
   0x6   : > { %s1492_s19 = scalar_select %p86_p0, %s1411_s13, %s88_s18  }
   0x7   : > { %p1494_p4 = por %p99_p2, %p98_p1  ;;  %p146_p5 = scmp.lt.s32.totalorder %s1415_s14, 7 }
   0x9   : > { %p147_p6 = pnand %p1072_p3, %p146_p5 }
   0xa   : > { %v1343_v0 = vld [vmem:[%s1786_s1] sm:$0xff] (!%p147_p6)   ;;  %vm373_vm0 = vcmask (!%p147_p6), 1040384   ;;  %v1344_v1 = vld [vmem:[%s1786_s1 + $0x8] ss:$0 sps:$4 sm:$0x11] (!%p147_p6)   ;;  %s1505_s25 = sshll.u32 (!%p147_p6), %s1482_s15, 5 }
   0xb   : > { %150 = sbr.rel (%p147_p6) target bundleno = 341 (0x155), region = 32  ;;  %1213 = vmatprep.subr.bf16.mxu0 (!%p147_p6), %v1343_v0  ;;  %1249 = vmatprep.subr.bf16.mxu1 (!%p147_p6), %v1343_v0  ;;  %p178_p7 = scmp.lt.s32.totalorder (!%p147_p6), %s1505_s25, 168  ;;  %v375_v2 = vsel (!%p147_p6), %vm373_vm0, %v1344_v1, 0  ;;  %vm324_vm1 = vcmask (!%p147_p6), 146432   ;;  %v1550_v19 = vld [vmem:[%s1787_s2] ss:$0 sm:$0xff] (!%p147_p6) }
   0xc   : > { %1214 = vmatpush3.bf16.msra.mxu0 (!%p147_p6), %v1343_v0  ;;  %1251 = vmatpush3.bf16.msra.mxu1 (!%p147_p6), %v1343_v0  ;;  %s170_s4 = sand.u32 (!%p147_p6), 1, %s1407_s12   ;;  %vm698_vm2 = vcmask (!%p147_p6), 125952  }
   0xd   : > { %1253 = vmatprep.subr.msk.bf16.mxu0 (!%p147_p6), %vm373_vm0, %v1344_v1  ;;  %1254 = vmatprep.subr.msk.bf16.mxu1 (!%p147_p6), %vm373_vm0, %v1344_v1  ;;  %s1073_s7 = sshll.u32 (!%p147_p6), %s170_s4, 7 }
   0xe   : > { %s1560_s8 = scalar_lea.vmem (!%p147_p6), [#allocation2], %s1073_s7  }
  0x10   : > { %1216 = vmatpush3.bf16.msra.mxu0 (!%p147_p6), %v375_v2  ;;  %1252 = vmatpush3.bf16.msra.mxu1 (!%p147_p6), %v375_v2 }
  0x12   : > { %s179_s26 = scalar_select %p178_p7, %s1505_s25, 168 }
  0x13   : > { %s739_s9 = ssub.s32 (%p1494_p4), 169, %s1505_s25  ;;  %s1192_s10 = sshll.u32 (%p1494_p4), %s1482_s15, 7 }
  0x14   : > { %s1075_s27 = sshll.u32 %s179_s26, 2  ;;  %p740_p8 = scmp.lt.s32.totalorder (%p1494_p4), %s739_s9, 32 }
  0x15   : > { %s1512_s30 = scalar_lea.vmem %s1785_s0, %s1075_s27  ;;  %s1657_s14 = scalar_lea.vmem (%p1494_p4), %s1788_s3, %s1192_s10  }
  0x16   : > { %v1345_v3 = vld [vmem:[%s1512_s30] sm:$0xff]   ;;  %v1347_v5 = vld [vmem:[%s1512_s30 + $0x8] sm:$0xff]   ;;  %v1349_v7 = vld [vmem:[%s1512_s30 + $0x10] sm:$0xff]  }
  0x17   : > { %v1346_v4 = vld [vmem:[%s1512_s30 + $0x40] sm:$0xff]   ;;  %1217 = vmatprep.mubr.msk.bf16.mxu0 %vm324_vm1, %v1345_v3  ;;  %v1348_v6 = vld [vmem:[%s1512_s30 + $0x48] sm:$0xff]   ;;  %v1350_v8 = vld [vmem:[%s1512_s30 + $0x50] sm:$0xff]  }
  0x18   : > { %1233 = vmatprep.mubr.msk.bf16.mxu1 %vm324_vm1, %v1346_v4  ;;  %1218 = vmatmul.mubr.msk.bf16.vlgmr.msra.gmra.mrb[0].mxu0 %vm324_vm1, %v1347_v5  ;;  %v1351_v9 = vld [vmem:[%s1512_s30 + $0x18] sm:$0xff]   ;;  %v1353_v11 = vld [vmem:[%s1512_s30 + $0x20] sm:$0xff]   ;;  %v1355_v13 = vld [vmem:[%s1512_s30 + $0x28] sm:$0xff]  }
  0x19   : > { %1234 = vmatmul.mubr.msk.bf16.vlgmr.msra.gmra.mrb[0].mxu1 %vm324_vm1, %v1348_v6  ;;  %1221 = vmatprep.mubr.msk.bf16.mxu0 %vm324_vm1, %v1349_v7  ;;  %v1352_v10 = vld [vmem:[%s1512_s30 + $0x58] sm:$0xff]   ;;  %v1354_v12 = vld [vmem:[%s1512_s30 + $0x60] sm:$0xff]   ;;  %v1356_v14 = vld [vmem:[%s1512_s30 + $0x68] sm:$0xff]  }
  0x1a   : > { %1237 = vmatprep.mubr.msk.bf16.mxu1 %vm324_vm1, %v1350_v8  ;;  %v1357_v15 = vld [vmem:[%s1512_s30 + $0x30] sm:$0xff]   ;;  %v1359_v17 = vld [vmem:[%s1512_s30 + $0x38] sm:$0xff]  }
  0x1b   : > { %v1358_v16 = vld [vmem:[%s1512_s30 + $0x70] sm:$0xff]   ;;  %v1360_v18 = vld [vmem:[%s1512_s30 + $0x78] sm:$0xff]  }
  0x20   : > { %1222 = vmatmul.mubr.msk.bf16.gmra.mrb[4].mxu0 %vm324_vm1, %v1351_v9 }
  0x21   : > { %1238 = vmatmul.mubr.msk.bf16.gmra.mrb[4].mxu1 %vm324_vm1, %v1352_v10  ;;  %1225 = vmatprep.mubr.msk.bf16.mxu0 %vm324_vm1, %v1353_v11 }
  0x22   : > { %1241 = vmatprep.mubr.msk.bf16.mxu1 %vm324_vm1, %v1354_v12 }
  0x28   : > { %1226 = vmatmul.mubr.msk.bf16.gmra.mrb[8].mxu0 %vm324_vm1, %v1355_v13 }
  0x29   : > { %1242 = vmatmul.mubr.msk.bf16.gmra.mrb[8].mxu1 %vm324_vm1, %v1356_v14  ;;  %1229 = vmatprep.mubr.msk.bf16.mxu0 %vm324_vm1, %v1357_v15 }
  0x2a   : > { %1245 = vmatprep.mubr.msk.bf16.mxu1 %vm324_vm1, %v1358_v16 }
  0x30   : > { %1230 = vmatmul.mubr.msk.bf16.gmra.mrb[12].mxu0 %vm324_vm1, %v1359_v17 }
  0x31   : > { %1246 = vmatmul.mubr.msk.bf16.gmra.mrb[12].mxu1 %vm324_vm1, %v1360_v18 }
  0xeb   : > { %v1219_v20 = vpop.f32.mrb[0].mxu0 }
  0xec   : > { %v420_v21 = vadd.f32 %v1219_v20, %v1550_v19  ;;  %v1235_v22 = vpop.f32.mrb[0].mxu1  ;;  %v411_v23 = vpop.f32.mrb[1].mxu0 }
  0xed   : > { %v484_v24 = vadd.f32 %v1235_v22, %v1550_v19  ;;  %v412_v25 = vadd.f32 %v1550_v19, %v411_v23  ;;  %v475_v26 = vpop.f32.mrb[1].mxu1  ;;  %v1220_v27 = vpop.f32.mrb[2].mxu0 }
  0xee   : > { %v540_v28 = vmax.f32 %v420_v21, 0.0  ;;  %v476_v29 = vadd.f32 %v1550_v19, %v475_v26  ;;  %v423_v30 = vadd.f32 %v1220_v27, %v1550_v19  ;;  %v1236_v31 = vpop.f32.mrb[2].mxu1  ;;  %v414_v32 = vpop.f32.mrb[3].mxu0 }
  0xef   : > { %v556_v33 = vmax.f32 %v484_v24, 0.0  ;;  %v538_v34 = vmax.f32 %v412_v25, 0.0  ;;  %v487_v35 = vadd.f32 %v1236_v31, %v1550_v19  ;;  %v415_v36 = vadd.f32 %v1550_v19, %v414_v32  ;;  %v478_v37 = vpop.f32.mrb[3].mxu1 }
  0xf0   : > { %v1162_v38 = vpack.c.bf16 %v540_v28, %v540_v28  ;;  %v554_v39 = vmax.f32 %v476_v29, 0.0  ;;  %v541_v40 = vmax.f32 %v423_v30, 0.0  ;;  %v479_v41 = vadd.f32 %v1550_v19, %v478_v37 }
  0xf1   : > { %v1178_v42 = vpack.c.bf16 %v556_v33, %v556_v33  ;;  %v1160_v43 = vpack.c.bf16 %v538_v34, %v538_v34  ;;  %v557_v44 = vmax.f32 %v487_v35, 0.0  ;;  %v539_v45 = vmax.f32 %v415_v36, 0.0 }
  0xf2   : > { %701 = vst.msk [vmem:[%s1560_s8 + $0x8] sm:$0xf] %vm698_vm2, %v1162_v38  ;;  %v1176_v46 = vpack.c.bf16 %v554_v39, %v554_v39  ;;  %v1163_v47 = vpack.c.bf16 %v541_v40, %v541_v40  ;;  %v555_v48 = vmax.f32 %v479_v41, 0.0 }
  0xf3   : > { %717 = vst.msk [vmem:[%s1560_s8 + $0x48] sm:$0xf] %vm698_vm2, %v1178_v42  ;;  %699 = vst.msk [vmem:[%s1560_s8] sm:$0xf] %vm698_vm2, %v1160_v43  ;;  %v1179_v49 = vpack.c.bf16 %v557_v44, %v557_v44  ;;  %v1161_v50 = vpack.c.bf16 %v539_v45, %v539_v45  ;;  %v1223_v51 = vpop.f32.mrb[4].mxu0 }
  0xf4   : > { %715 = vst.msk [vmem:[%s1560_s8 + $0x40] sm:$0xf] %vm698_vm2, %v1176_v46  ;;  %702 = vst.msk [vmem:[%s1560_s8 + $0xc] sm:$0xf] %vm698_vm2, %v1163_v47  ;;  %v1177_v52 = vpack.c.bf16 %v555_v48, %v555_v48  ;;  %v436_v53 = vadd.f32 %v1223_v51, %v1550_v19  ;;  %v1239_v54 = vpop.f32.mrb[4].mxu1  ;;  %v427_v55 = vpop.f32.mrb[5].mxu0 }
  0xf5   : > { %718 = vst.msk [vmem:[%s1560_s8 + $0x4c] sm:$0xf] %vm698_vm2, %v1179_v49  ;;  %700 = vst.msk [vmem:[%s1560_s8 + $0x4] sm:$0xf] %vm698_vm2, %v1161_v50  ;;  %v500_v56 = vadd.f32 %v1239_v54, %v1550_v19  ;;  %v428_v57 = vadd.f32 %v1550_v19, %v427_v55  ;;  %v491_v58 = vpop.f32.mrb[5].mxu1  ;;  %v1224_v59 = vpop.f32.mrb[6].mxu0 }
  0xf6   : > { %716 = vst.msk [vmem:[%s1560_s8 + $0x44] sm:$0xf] %vm698_vm2, %v1177_v52  ;;  %v544_v60 = vmax.f32 %v436_v53, 0.0  ;;  %v492_v61 = vadd.f32 %v1550_v19, %v491_v58  ;;  %v439_v62 = vadd.f32 %v1224_v59, %v1550_v19  ;;  %v1240_v63 = vpop.f32.mrb[6].mxu1  ;;  %v430_v0 = vpop.f32.mrb[7].mxu0 }
  0xf7   : > { %v560_v1 = vmax.f32 %v500_v56, 0.0  ;;  %v542_v2 = vmax.f32 %v428_v57, 0.0  ;;  %v503_v3 = vadd.f32 %v1240_v63, %v1550_v19  ;;  %v431_v4 = vadd.f32 %v1550_v19, %v430_v0  ;;  %v494_v5 = vpop.f32.mrb[7].mxu1 }
  0xf8   : > { %v1166_v6 = vpack.c.bf16 %v544_v60, %v544_v60  ;;  %v558_v7 = vmax.f32 %v492_v61, 0.0  ;;  %v545_v8 = vmax.f32 %v439_v62, 0.0  ;;  %v495_v9 = vadd.f32 %v1550_v19, %v494_v5 }
  0xf9   : > { %v1182_v10 = vpack.c.bf16 %v560_v1, %v560_v1  ;;  %v1164_v11 = vpack.c.bf16 %v542_v2, %v542_v2  ;;  %v561_v12 = vmax.f32 %v503_v3, 0.0  ;;  %v543_v13 = vmax.f32 %v431_v4, 0.0 }
  0xfa   : > { %705 = vst.msk [vmem:[%s1560_s8 + $0x18] sm:$0xf] %vm698_vm2, %v1166_v6  ;;  %v1180_v14 = vpack.c.bf16 %v558_v7, %v558_v7  ;;  %v1167_v15 = vpack.c.bf16 %v545_v8, %v545_v8  ;;  %v559_v16 = vmax.f32 %v495_v9, 0.0 }
  0xfb   : > { %721 = vst.msk [vmem:[%s1560_s8 + $0x58] sm:$0xf] %vm698_vm2, %v1182_v10  ;;  %703 = vst.msk [vmem:[%s1560_s8 + $0x10] sm:$0xf] %vm698_vm2, %v1164_v11  ;;  %v1183_v17 = vpack.c.bf16 %v561_v12, %v561_v12  ;;  %v1165_v18 = vpack.c.bf16 %v543_v13, %v543_v13  ;;  %v1227_v20 = vpop.f32.mrb[8].mxu0 }
  0xfc   : > { %719 = vst.msk [vmem:[%s1560_s8 + $0x50] sm:$0xf] %vm698_vm2, %v1180_v14  ;;  %706 = vst.msk [vmem:[%s1560_s8 + $0x1c] sm:$0xf] %vm698_vm2, %v1167_v15  ;;  %v1181_v21 = vpack.c.bf16 %v559_v16, %v559_v16  ;;  %v452_v22 = vadd.f32 %v1227_v20, %v1550_v19  ;;  %v1243_v23 = vpop.f32.mrb[8].mxu1  ;;  %v443_v24 = vpop.f32.mrb[9].mxu0 }
  0xfd   : > { %722 = vst.msk [vmem:[%s1560_s8 + $0x5c] sm:$0xf] %vm698_vm2, %v1183_v17  ;;  %704 = vst.msk [vmem:[%s1560_s8 + $0x14] sm:$0xf] %vm698_vm2, %v1165_v18  ;;  %v516_v25 = vadd.f32 %v1243_v23, %v1550_v19  ;;  %v444_v26 = vadd.f32 %v1550_v19, %v443_v24  ;;  %v507_v27 = vpop.f32.mrb[9].mxu1  ;;  %v1228_v28 = vpop.f32.mrb[10].mxu0 }
  0xfe   : > { %720 = vst.msk [vmem:[%s1560_s8 + $0x54] sm:$0xf] %vm698_vm2, %v1181_v21  ;;  %v548_v29 = vmax.f32 %v452_v22, 0.0  ;;  %v508_v30 = vadd.f32 %v1550_v19, %v507_v27  ;;  %v455_v31 = vadd.f32 %v1228_v28, %v1550_v19  ;;  %v1244_v32 = vpop.f32.mrb[10].mxu1  ;;  %v446_v33 = vpop.f32.mrb[11].mxu0 }
  0xff   : > { %v564_v34 = vmax.f32 %v516_v25, 0.0  ;;  %v546_v35 = vmax.f32 %v444_v26, 0.0  ;;  %v519_v36 = vadd.f32 %v1244_v32, %v1550_v19  ;;  %v447_v37 = vadd.f32 %v1550_v19, %v446_v33  ;;  %v510_v38 = vpop.f32.mrb[11].mxu1 }
 0x100   : > { %v1170_v39 = vpack.c.bf16 %v548_v29, %v548_v29  ;;  %v562_v40 = vmax.f32 %v508_v30, 0.0  ;;  %v549_v41 = vmax.f32 %v455_v31, 0.0  ;;  %v511_v42 = vadd.f32 %v1550_v19, %v510_v38 }
 0x101   : > { %v1186_v43 = vpack.c.bf16 %v564_v34, %v564_v34  ;;  %v1168_v44 = vpack.c.bf16 %v546_v35, %v546_v35  ;;  %v565_v45 = vmax.f32 %v519_v36, 0.0  ;;  %v547_v46 = vmax.f32 %v447_v37, 0.0 }
 0x102   : > { %709 = vst.msk [vmem:[%s1560_s8 + $0x28] sm:$0xf] %vm698_vm2, %v1170_v39  ;;  %v1184_v47 = vpack.c.bf16 %v562_v40, %v562_v40  ;;  %v1171_v48 = vpack.c.bf16 %v549_v41, %v549_v41  ;;  %v563_v49 = vmax.f32 %v511_v42, 0.0 }
 0x103   : > { %725 = vst.msk [vmem:[%s1560_s8 + $0x68] sm:$0xf] %vm698_vm2, %v1186_v43  ;;  %707 = vst.msk [vmem:[%s1560_s8 + $0x20] sm:$0xf] %vm698_vm2, %v1168_v44  ;;  %v1187_v50 = vpack.c.bf16 %v565_v45, %v565_v45  ;;  %v1169_v51 = vpack.c.bf16 %v547_v46, %v547_v46  ;;  %v1231_v52 = vpop.f32.mrb[12].mxu0 }
 0x104   : > { %723 = vst.msk [vmem:[%s1560_s8 + $0x60] sm:$0xf] %vm698_vm2, %v1184_v47  ;;  %710 = vst.msk [vmem:[%s1560_s8 + $0x2c] sm:$0xf] %vm698_vm2, %v1171_v48  ;;  %v1185_v53 = vpack.c.bf16 %v563_v49, %v563_v49  ;;  %v468_v54 = vadd.f32 %v1231_v52, %v1550_v19  ;;  %v1247_v55 = vpop.f32.mrb[12].mxu1  ;;  %v459_v56 = vpop.f32.mrb[13].mxu0 }
 0x105   : > { %726 = vst.msk [vmem:[%s1560_s8 + $0x6c] sm:$0xf] %vm698_vm2, %v1187_v50  ;;  %708 = vst.msk [vmem:[%s1560_s8 + $0x24] sm:$0xf] %vm698_vm2, %v1169_v51  ;;  %v532_v57 = vadd.f32 %v1247_v55, %v1550_v19  ;;  %v460_v58 = vadd.f32 %v1550_v19, %v459_v56  ;;  %v523_v59 = vpop.f32.mrb[13].mxu1  ;;  %v1232_v60 = vpop.f32.mrb[14].mxu0 }
 0x106   : > { %724 = vst.msk [vmem:[%s1560_s8 + $0x64] sm:$0xf] %vm698_vm2, %v1185_v53  ;;  %v552_v61 = vmax.f32 %v468_v54, 0.0  ;;  %v524_v62 = vadd.f32 %v1550_v19, %v523_v59  ;;  %v471_v63 = vadd.f32 %v1232_v60, %v1550_v19  ;;  %v1248_v0 = vpop.f32.mrb[14].mxu1  ;;  %v462_v1 = vpop.f32.mrb[15].mxu0 }
 0x107   : > { %v568_v2 = vmax.f32 %v532_v57, 0.0  ;;  %v550_v3 = vmax.f32 %v460_v58, 0.0  ;;  %v535_v4 = vadd.f32 %v1248_v0, %v1550_v19  ;;  %v463_v5 = vadd.f32 %v1550_v19, %v462_v1  ;;  %v526_v6 = vpop.f32.mrb[15].mxu1 }
 0x108   : > { %v1174_v7 = vpack.c.bf16 %v552_v61, %v552_v61  ;;  %v566_v8 = vmax.f32 %v524_v62, 0.0  ;;  %v553_v9 = vmax.f32 %v471_v63, 0.0  ;;  %v527_v10 = vadd.f32 %v1550_v19, %v526_v6  ;;  %737 = sbr.rel (!%p1494_p4) target bundleno = 341 (0x155), region = 36 }
 0x109   : > { %v1190_v11 = vpack.c.bf16 %v568_v2, %v568_v2  ;;  %v1172_v12 = vpack.c.bf16 %v550_v3, %v550_v3  ;;  %v569_v13 = vmax.f32 %v535_v4, 0.0  ;;  %v551_v14 = vmax.f32 %v463_v5, 0.0 }
 0x10a   : > { %713 = vst.msk [vmem:[%s1560_s8 + $0x38] sm:$0xf] %vm698_vm2, %v1174_v7  ;;  %v1188_v15 = vpack.c.bf16 %v566_v8, %v566_v8  ;;  %v1175_v16 = vpack.c.bf16 %v553_v9, %v553_v9  ;;  %v567_v17 = vmax.f32 %v527_v10, 0.0 }
 0x10b   : > { %729 = vst.msk [vmem:[%s1560_s8 + $0x78] sm:$0xf] %vm698_vm2, %v1190_v11  ;;  %711 = vst.msk [vmem:[%s1560_s8 + $0x30] sm:$0xf] %vm698_vm2, %v1172_v12  ;;  %v1191_v18 = vpack.c.bf16 %v569_v13, %v569_v13  ;;  %v1173_v20 = vpack.c.bf16 %v551_v14, %v551_v14 }
 0x10c   : > { %727 = vst.msk [vmem:[%s1560_s8 + $0x70] sm:$0xf] %vm698_vm2, %v1188_v15  ;;  %714 = vst.msk [vmem:[%s1560_s8 + $0x3c] sm:$0xf] %vm698_vm2, %v1175_v16  ;;  %v1189_v19 = vpack.c.bf16 %v567_v17, %v567_v17 }
 0x10d   : > { %730 = vst.msk [vmem:[%s1560_s8 + $0x7c] sm:$0xf] %vm698_vm2, %v1191_v18  ;;  %712 = vst.msk [vmem:[%s1560_s8 + $0x34] sm:$0xf] %vm698_vm2, %v1173_v20 }
 0x10e   : > { %728 = vst.msk [vmem:[%s1560_s8 + $0x74] sm:$0xf] %vm698_vm2, %v1189_v19 }
 0x10f   : > { %s1797_s9 = smov (!%p740_p8, %s739_s9), 32 }
 0x110   : > { %s1145_s17 = sshll.u32 %s1797_s9, 6 }
 0x111   : > { %p1148_p9 = scmp.eq.s32.totalorder %s1145_s17, 0 }
 0x112   : > { %s1663_s18 = sshrl.u32 (!%p1148_p9), %s1797_s9, 5 }
 0x113   : > { %748 = sbr.rel (%p1148_p9) target bundleno = 341 (0x155), region = 40  ;;  %p1149_p10 = scmp.le.s32.totalorder (!%p1148_p9), %s1663_s18, 0 }
 0x11a   : > { %1025 = sbr.rel (%p1149_p10) target bundleno = 320 (0x140), region = 112  ;;  %s1790_s15 = smov (!%p1149_p10), %s1657_s14 }
 0x11b   : > { %s1791_s20 = smov (!%p1149_p10), %s1560_s8  ;;  %s1672_s21 = smov (!%p1149_p10), 0  }
 0x11c   : > { %s1674_s22 = smov (!%p1149_p10), 0  }
 0x121 LB: >> { %v764_v21 = vld [vmem:[%s1423_s20] sm:$0xf]  ;;  %v766_v22 = vld [vmem:[%s1423_s20 + $0x4] sm:$0xf]  ;;  %v768_v23 = vld [vmem:[%s1423_s20 + $0x8] sm:$0xf]  ;;  %s1431_s22 = sphi %s1674_s22, %s758_s22   ;;  %s1427_s21 = sphi %s1672_s21, %s1792_s21   ;;  %s1423_s20 = sphi %s1791_s20, %s833_s20   ;;  %s1419_s15 = sphi %s1790_s15, %s834_s15  }
 0x122   : >> { %765 = vst [vmem:[%s1419_s15] sm:$0xf] %v764_v21  ;;  %767 = vst [vmem:[%s1419_s15 + $0x4] sm:$0xf] %v766_v22  ;;  %v770_v24 = vld [vmem:[%s1423_s20 + $0xc] sm:$0xf]  ;;  %s828_s23 = sadd.s32 1, %s1427_s21 }
 0x123   : >> { %769 = vst [vmem:[%s1419_s15 + $0x8] sm:$0xf] %v768_v23  ;;  %v772_v25 = vld [vmem:[%s1423_s20 + $0x10] sm:$0xf]  ;;  %v774_v26 = vld [vmem:[%s1423_s20 + $0x14] sm:$0xf]  ;;  %p829_p11 = scmp.ge.s32.totalorder %s828_s23, %s1663_s18 }
 0x124   : >> { %771 = vst [vmem:[%s1419_s15 + $0xc] sm:$0xf] %v770_v24  ;;  %773 = vst [vmem:[%s1419_s15 + $0x10] sm:$0xf] %v772_v25  ;;  %v776_v27 = vld [vmem:[%s1423_s20 + $0x18] sm:$0xf] }
 0x125   : >> { %775 = vst [vmem:[%s1419_s15 + $0x14] sm:$0xf] %v774_v26  ;;  %v778_v28 = vld [vmem:[%s1423_s20 + $0x1c] sm:$0xf]  ;;  %v780_v29 = vld [vmem:[%s1423_s20 + $0x20] sm:$0xf] }
 0x126   : >> { %777 = vst [vmem:[%s1419_s15 + $0x18] sm:$0xf] %v776_v27  ;;  %779 = vst [vmem:[%s1419_s15 + $0x1c] sm:$0xf] %v778_v28  ;;  %v782_v30 = vld [vmem:[%s1423_s20 + $0x24] sm:$0xf] }
 0x127   : >> { %781 = vst [vmem:[%s1419_s15 + $0x20] sm:$0xf] %v780_v29  ;;  %v784_v31 = vld [vmem:[%s1423_s20 + $0x28] sm:$0xf]  ;;  %v786_v32 = vld [vmem:[%s1423_s20 + $0x2c] sm:$0xf] }
 0x128   : >> { %783 = vst [vmem:[%s1419_s15 + $0x24] sm:$0xf] %v782_v30  ;;  %785 = vst [vmem:[%s1419_s15 + $0x28] sm:$0xf] %v784_v31  ;;  %v788_v33 = vld [vmem:[%s1423_s20 + $0x30] sm:$0xf] }
 0x129   : >> { %787 = vst [vmem:[%s1419_s15 + $0x2c] sm:$0xf] %v786_v32  ;;  %v790_v34 = vld [vmem:[%s1423_s20 + $0x34] sm:$0xf]  ;;  %v792_v35 = vld [vmem:[%s1423_s20 + $0x38] sm:$0xf] }
 0x12a   : >> { %789 = vst [vmem:[%s1419_s15 + $0x30] sm:$0xf] %v788_v33  ;;  %791 = vst [vmem:[%s1419_s15 + $0x34] sm:$0xf] %v790_v34  ;;  %v794_v36 = vld [vmem:[%s1423_s20 + $0x3c] sm:$0xf] }
 0x12b   : >> { %793 = vst [vmem:[%s1419_s15 + $0x38] sm:$0xf] %v792_v35  ;;  %v796_v37 = vld [vmem:[%s1423_s20 + $0x40] sm:$0xf]  ;;  %v798_v38 = vld [vmem:[%s1423_s20 + $0x44] sm:$0xf] }
 0x12c   : >> { %795 = vst [vmem:[%s1419_s15 + $0x3c] sm:$0xf] %v794_v36  ;;  %797 = vst [vmem:[%s1419_s15 + $0x40] sm:$0xf] %v796_v37  ;;  %v800_v39 = vld [vmem:[%s1423_s20 + $0x48] sm:$0xf] }
 0x12d   : >> { %799 = vst [vmem:[%s1419_s15 + $0x44] sm:$0xf] %v798_v38  ;;  %v802_v40 = vld [vmem:[%s1423_s20 + $0x4c] sm:$0xf]  ;;  %v804_v41 = vld [vmem:[%s1423_s20 + $0x50] sm:$0xf] }
 0x12e   : >> { %801 = vst [vmem:[%s1419_s15 + $0x48] sm:$0xf] %v800_v39  ;;  %803 = vst [vmem:[%s1419_s15 + $0x4c] sm:$0xf] %v802_v40  ;;  %v806_v42 = vld [vmem:[%s1423_s20 + $0x54] sm:$0xf] }
 0x12f   : >> { %805 = vst [vmem:[%s1419_s15 + $0x50] sm:$0xf] %v804_v41  ;;  %v808_v43 = vld [vmem:[%s1423_s20 + $0x58] sm:$0xf]  ;;  %v810_v44 = vld [vmem:[%s1423_s20 + $0x5c] sm:$0xf] }
 0x130   : >> { %807 = vst [vmem:[%s1419_s15 + $0x54] sm:$0xf] %v806_v42  ;;  %809 = vst [vmem:[%s1419_s15 + $0x58] sm:$0xf] %v808_v43  ;;  %v812_v45 = vld [vmem:[%s1423_s20 + $0x60] sm:$0xf] }
 0x131   : >> { %811 = vst [vmem:[%s1419_s15 + $0x5c] sm:$0xf] %v810_v44  ;;  %v814_v46 = vld [vmem:[%s1423_s20 + $0x64] sm:$0xf]  ;;  %v816_v47 = vld [vmem:[%s1423_s20 + $0x68] sm:$0xf] }
 0x132   : >> { %813 = vst [vmem:[%s1419_s15 + $0x60] sm:$0xf] %v812_v45  ;;  %815 = vst [vmem:[%s1419_s15 + $0x64] sm:$0xf] %v814_v46  ;;  %v818_v48 = vld [vmem:[%s1423_s20 + $0x6c] sm:$0xf] }
 0x133   : >> { %817 = vst [vmem:[%s1419_s15 + $0x68] sm:$0xf] %v816_v47  ;;  %v820_v49 = vld [vmem:[%s1423_s20 + $0x70] sm:$0xf]  ;;  %v822_v50 = vld [vmem:[%s1423_s20 + $0x74] sm:$0xf] }
 0x134   : >> { %819 = vst [vmem:[%s1419_s15 + $0x6c] sm:$0xf] %v818_v48  ;;  %821 = vst [vmem:[%s1419_s15 + $0x70] sm:$0xf] %v820_v49  ;;  %v824_v51 = vld [vmem:[%s1423_s20 + $0x78] sm:$0xf] }
 0x135   : >> { %823 = vst [vmem:[%s1419_s15 + $0x74] sm:$0xf] %v822_v50  ;;  %v826_v52 = vld [vmem:[%s1423_s20 + $0x7c] sm:$0xf]  ;;  %825 = vst [vmem:[%s1419_s15 + $0x78] sm:$0xf] %v824_v51 }
 0x136   : >> { %827 = vst [vmem:[%s1419_s15 + $0x7c] sm:$0xf] %v826_v52  ;;  %s1799_s23 = smov (%p829_p11, %s828_s23), 0  ;;  %s758_s22 = sadd.s32 1, %s1431_s22  }
 0x137   : >> { %s1150_s24 = sshll.u32 %s1799_s23, 7  ;;  %p757_p12 = scmp.ge.s32.totalorder %s758_s22, %s1663_s18 }
 0x138   : >> { %s833_s20 = scalar_lea.vmem %s1560_s8, %s1150_s24 [#allocation2]   ;;  %s834_s15 = scalar_lea.vmem %s1657_s14, %s1150_s24  }
 0x139   : >> { %s1792_s21 = smov %s1799_s23  ;;  %760 = sbr.rel (!%p757_p12) target bundleno = 289 (0x121), region = 118 }
 0x140 PF: > { %s1767_s25 = sand.u32 31, %s1797_s9   ;;  %s1193_s26 = sshll.u32 %s1663_s18, 7 }
 0x141   : > { %s839_s27 = scalar_lea.vmem %s1560_s8, %s1193_s26 [#allocation2]   ;;  %s841_s28 = scalar_lea.vmem %s1657_s14, %s1193_s26  }
 0x142   : > { %p1155_p13 = scmp.le.s32.totalorder %s1767_s25, 0 }
 0x143   : > { %s1433_s29 = smov (!%p1155_p13), %s841_s28   ;;  %s1437_s30 = smov (!%p1155_p13), %s839_s27  }
 0x144   : > { %1039 = sbr.rel (%p1155_p13) target bundleno = 341 (0x155), region = 123  ;;  %s1441_s4 = smov (!%p1155_p13), 0  }
 0x145   : > { %s1445_s5 = smov (!%p1155_p13), 0  }
 0x14b LB: >> { %v851_v53 = vld [vmem:[%s1439_s30] sm:$0xf]  ;;  %s853_s6 = sadd.s32 1, %s1443_s4  ;;  %s845_s5 = sadd.s32 1, %s1447_s5   ;;  %s1447_s5 = sphi %s1445_s5, %s845_s5   ;;  %s1443_s4 = sphi %s1441_s4, %s1442_s4   ;;  %s1439_s30 = sphi %s1437_s30, %s858_s30   ;;  %s1435_s29 = sphi %s1433_s29, %s859_s29  }
 0x14c   : >> { %852 = vst [vmem:[%s1435_s29] sm:$0xf] %v851_v53  ;;  %p854_p0 = scmp.ge.s32.totalorder %s853_s6, %s1767_s25  ;;  %p844_p1 = scmp.ge.s32.totalorder %s845_s5, %s1767_s25 }
 0x14e   : >> { %s1801_s6 = smov (%p854_p0, %s853_s6), 0  ;;  %847 = sbr.rel (!%p844_p1) target bundleno = 331 (0x14b), region = 129 }
 0x14f   : >> { %s1156_s7 = sshll.u32 %s1801_s6, 2  ;;  %s1442_s4 = smov %s1801_s6  }
 0x150   : >> { %s858_s30 = scalar_lea.vmem %s839_s27, %s1156_s7 [#allocation2]   ;;  %s859_s29 = scalar_lea.vmem %s841_s28, %s1156_s7  }
 0x155 PF: > { %p10_p2 = scmp.ge.s32.totalorder %s1484_s16, 8   ;;  %s1793_s12 = smov %s1411_s13 }
 0x156   : > { %s1794_s13 = smov %s1492_s19  ;;  %s1795_s14 = smov %s1484_s16 }
 0x157   :  { %12 = sbr.rel (!%p10_p2) target bundleno = 2 (0x2), region = 140 }

// kernel: naive_model_forward.5
= control target key start
LH: loop header
LB: loop body
LE: loop exit
PB: predicated region body
PF: predicated region fallthrough
CT: control target
= control target key end

     0   :  { %s1621_s12 = smov 0   ;;  %s1623_s13 = smov 0   ;;  %s1974_s0 = inlined_call_operand.vmem [shape: bf16[288,144], index: 0, kind: input, shape index: {}]   ;;  %s1975_s1 = inlined_call_operand.vmem [shape: bf16[144,32], index: 1, kind: input, shape index: {}]   ;;  %s1976_s2 = inlined_call_operand.vmem [shape: f32[1,32], index: 2, kind: input, shape index: {}]   ;;  %s1977_s3 = inlined_call_operand.vmem [shape: bf16[288,32], index: 3, kind: output, shape index: {}]  }
   0x1   :  { %s1625_s14 = smov 0  }
   0x2 LB: > { %s1634_s15 = sadd.s32 4294967295, %s1566_s14   ;;  %s1636_s16 = sadd.s32 1, %s1566_s14   ;;  %s1566_s14 = sphi %s1625_s14, %s1984_s14   ;;  %s1562_s13 = sphi %s1623_s13, %s1983_s13   ;;  %s1558_s12 = sphi %s1621_s12, %s1982_s12  }
   0x3   : > { %s85_s17 = ssub.s32 %s1566_s14, %s1636_s16  ;;  %s88_s18 = sadd.s32 1, %s1562_s13 }
   0x4   : > { %p86_p0 = scmp.eq.s32.totalorder %s85_s17, 0  ;;  %p98_p1 = scmp.ne.s32.totalorder %s1562_s13, %s1558_s12 }
   0x5   : > { %p99_p2 = scmp.eq.s32.totalorder %s1634_s15, 1  ;;  %p1200_p3 = scmp.ge.s32.totalorder %s1566_s14, 1 }
   0x6   : > { %s1644_s19 = scalar_select %p86_p0, %s1562_s13, %s88_s18  }
   0x7   : > { %p1646_p4 = por %p99_p2, %p98_p1  ;;  %p149_p5 = scmp.lt.s32.totalorder %s1566_s14, 3 }
   0x9   : > { %p150_p6 = pnand %p1200_p3, %p149_p5 }
   0xa   : > { %v1455_v0 = vld [vmem:[%s1975_s1] sm:$0xff] (!%p150_p6)   ;;  %v1600_v1 = vmov (!%p150_p6), 0   ;;  %s1654_s23 = sshll.u32 (!%p150_p6), %s1634_s15, 5  ;;  %v1456_v2 = vld [vmem:[%s1975_s1 + $0x8] sm:$0xff] (!%p150_p6)   ;;  %v1457_v3 = vld [vmem:[%s1975_s1 + $0x10] sm:$0xff] (!%p150_p6)   ;;  %vm456_vm0 = vcmask (!%p150_p6), 130048  }
   0xb   : > { %153 = sbr.rel (%p150_p6) target bundleno = 395 (0x18b), region = 32  ;;  %505 = vmatprep.subr.bf16.mxu0 (!%p150_p6), %v1600_v1  ;;  %1348 = vmatprep.subr.bf16.mxu1 (!%p150_p6), %v1600_v1  ;;  %p184_p7 = scmp.lt.s32.totalorder (!%p150_p6), %s1654_s23, 35  ;;  %v1458_v4 = vld [vmem:[%s1975_s1 + $0x18] sm:$0xff] (!%p150_p6)   ;;  %v1459_v7 = vld [vmem:[%s1975_s1 + $0x20] sm:$0xff] (!%p150_p6)   ;;  %v1460_v8 = vld [vmem:[%s1975_s1 + $0x28] sm:$0xff] (!%p150_p6)   ;;  %vm826_vm1 = vcmask (!%p150_p6), 257024  }
   0xc   : > { %506 = vmatpush1.bf16.msra.mxu0 (!%p150_p6), %v1455_v0  ;;  %1357 = vmatpush1.bf16.msra.mxu1 (!%p150_p6), %v1455_v0  ;;  %v1461_v9 = vld [vmem:[%s1975_s1 + $0x30] sm:$0xff] (!%p150_p6)   ;;  %v1462_v10 = vld [vmem:[%s1975_s1 + $0x38] sm:$0xff] (!%p150_p6)   ;;  %v1463_v11 = vld [vmem:[%s1975_s1 + $0x40] sm:$0xff] (!%p150_p6)   ;;  %s175_s25 = sand.u32 (!%p150_p6), 1, %s1558_s12  }
   0xd   : > { %507 = vmatprep.subr.bf16.mxu0 (!%p150_p6), %v1600_v1  ;;  %1349 = vmatprep.subr.bf16.mxu1 (!%p150_p6), %v1600_v1  ;;  %v1739_v42 = vld [vmem:[%s1976_s2] ss:$0 sm:$0xff] (!%p150_p6)  ;;  %s1201_s28 = sshll.u32 (!%p150_p6), %s175_s25, 7 }
   0xe   : > { %s1745_s12 = scalar_lea.vmem (!%p150_p6), [#allocation2], %s1201_s28  }
  0x10   : > { %508 = vmatpush1.bf16.msra.mxu0 (!%p150_p6), %v1456_v2  ;;  %1358 = vmatpush1.bf16.msra.mxu1 (!%p150_p6), %v1456_v2 }
  0x11   : > { %509 = vmatprep.subr.bf16.mxu0 (!%p150_p6), %v1600_v1  ;;  %1350 = vmatprep.subr.bf16.mxu1 (!%p150_p6), %v1600_v1 }
  0x12   : > { %s185_s26 = scalar_select %p184_p7, %s1654_s23, 35 }
  0x13   : > { %s1345_s30 = sshll.u32 (%p1646_p4), %s1634_s15, 7 }
  0x14   : > { %s1312_s29 = sshll.u32 %s185_s26, 3  ;;  %510 = vmatpush1.bf16.msra.mxu0 %v1457_v3  ;;  %1359 = vmatpush1.bf16.msra.mxu1 %v1457_v3  ;;  %s1846_s6 = scalar_lea.vmem (%p1646_p4), %s1977_s3, %s1345_s30  }
  0x15   : > { %s1667_s5 = scalar_lea.vmem %s1974_s0, %s1312_s29  ;;  %511 = vmatprep.subr.bf16.mxu0 %v1600_v1  ;;  %1351 = vmatprep.subr.bf16.mxu1 %v1600_v1  ;;  %s867_s29 = ssub.s32 (%p1646_p4), 36, %s1654_s23 }
  0x16   : > { %v1466_v5 = vld [vmem:[%s1667_s5 + $0x4] ss:$8 sps:$4 sm:$0xff]   ;;  %v1464_v12 = vld [vmem:[%s1667_s5] ss:$8 sps:$4 sm:$0xff]   ;;  %v1470_v14 = vld [vmem:[%s1667_s5 + $0x14] ss:$8 sps:$4 sm:$0xff]  }
  0x17   : > { %v1469_v6 = vld [vmem:[%s1667_s5 + $0x84] ss:$8 sps:$4 sm:$0xff]   ;;  %1247 = vmatprep.mubr.msk.bf16.mxu0 %vm456_vm0, %v1466_v5  ;;  %v1467_v13 = vld [vmem:[%s1667_s5 + $0x80] ss:$8 sps:$4 sm:$0xff]   ;;  %v1472_v15 = vld [vmem:[%s1667_s5 + $0x94] ss:$8 sps:$4 sm:$0xff]  }
  0x18   : > { %1255 = vmatprep.mubr.msk.bf16.mxu1 %vm456_vm0, %v1469_v6  ;;  %512 = vmatpush1.bf16.msra.mxu0 %v1458_v4  ;;  %v1474_v16 = vld [vmem:[%s1667_s5 + $0x10] ss:$8 sps:$4 sm:$0xff]   ;;  %v1476_v18 = vld [vmem:[%s1667_s5 + $0x24] ss:$8 sps:$4 sm:$0xff]   ;;  %v1480_v20 = vld [vmem:[%s1667_s5 + $0x20] ss:$8 sps:$4 sm:$0xff]  }
  0x19   : > { %1360 = vmatpush1.bf16.msra.mxu1 %v1458_v4  ;;  %513 = vmatprep.subr.bf16.mxu0 %v1600_v1  ;;  %v1475_v17 = vld [vmem:[%s1667_s5 + $0x90] ss:$8 sps:$4 sm:$0xff]   ;;  %v1478_v19 = vld [vmem:[%s1667_s5 + $0xa4] ss:$8 sps:$4 sm:$0xff]   ;;  %v1481_v21 = vld [vmem:[%s1667_s5 + $0xa0] ss:$8 sps:$4 sm:$0xff]  }
  0x1a   : > { %1352 = vmatprep.subr.bf16.mxu1 %v1600_v1  ;;  %v1482_v22 = vld [vmem:[%s1667_s5 + $0x34] ss:$8 sps:$4 sm:$0xff]   ;;  %v1486_v24 = vld [vmem:[%s1667_s5 + $0x30] ss:$8 sps:$4 sm:$0xff]   ;;  %v1488_v26 = vld [vmem:[%s1667_s5 + $0x44] ss:$8 sps:$4 sm:$0xff]  }
  0x1b   : > { %v1484_v23 = vld [vmem:[%s1667_s5 + $0xb4] ss:$8 sps:$4 sm:$0xff]   ;;  %v1487_v25 = vld [vmem:[%s1667_s5 + $0xb0] ss:$8 sps:$4 sm:$0xff]   ;;  %v1490_v27 = vld [vmem:[%s1667_s5 + $0xc4] ss:$8 sps:$4 sm:$0xff]  }
  0x1c   : > { %514 = vmatpush1.bf16.msra.mxu0 %v1459_v7  ;;  %v1492_v28 = vld [vmem:[%s1667_s5 + $0x40] ss:$8 sps:$4 sm:$0xff]   ;;  %v1494_v30 = vld [vmem:[%s1667_s5 + $0x54] ss:$8 sps:$4 sm:$0xff]   ;;  %v1498_v32 = vld [vmem:[%s1667_s5 + $0x50] ss:$8 sps:$4 sm:$0xff]  }
  0x1d   : > { %1361 = vmatpush1.bf16.msra.mxu1 %v1459_v7  ;;  %515 = vmatprep.subr.bf16.mxu0 %v1600_v1  ;;  %v1493_v29 = vld [vmem:[%s1667_s5 + $0xc0] ss:$8 sps:$4 sm:$0xff]   ;;  %v1496_v31 = vld [vmem:[%s1667_s5 + $0xd4] ss:$8 sps:$4 sm:$0xff]   ;;  %v1499_v33 = vld [vmem:[%s1667_s5 + $0xd0] ss:$8 sps:$4 sm:$0xff]  }
  0x1e   : > { %1353 = vmatprep.subr.bf16.mxu1 %v1600_v1  ;;  %v1500_v34 = vld [vmem:[%s1667_s5 + $0x64] ss:$8 sps:$4 sm:$0xff]   ;;  %v1504_v36 = vld [vmem:[%s1667_s5 + $0x60] ss:$8 sps:$4 sm:$0xff]   ;;  %v1506_v38 = vld [vmem:[%s1667_s5 + $0x74] ss:$8 sps:$4 sm:$0xff]  }
  0x1f   : > { %v1502_v35 = vld [vmem:[%s1667_s5 + $0xe4] ss:$8 sps:$4 sm:$0xff]   ;;  %v1505_v37 = vld [vmem:[%s1667_s5 + $0xe0] ss:$8 sps:$4 sm:$0xff]   ;;  %v1508_v39 = vld [vmem:[%s1667_s5 + $0xf4] ss:$8 sps:$4 sm:$0xff]  }
  0x20   : > { %516 = vmatpush1.bf16.msra.mxu0 %v1460_v8  ;;  %v1510_v40 = vld [vmem:[%s1667_s5 + $0x70] ss:$8 sps:$4 sm:$0xff]   ;;  %p868_p8 = scmp.lt.s32.totalorder (%p1646_p4), %s867_s29, 32 }
  0x21   : > { %1362 = vmatpush1.bf16.msra.mxu1 %v1460_v8  ;;  %517 = vmatprep.subr.bf16.mxu0 %v1600_v1  ;;  %v1511_v41 = vld [vmem:[%s1667_s5 + $0xf0] ss:$8 sps:$4 sm:$0xff]  }
  0x22   : > { %1354 = vmatprep.subr.bf16.mxu1 %v1600_v1 }
  0x24   : > { %518 = vmatpush1.bf16.msra.mxu0 %v1461_v9 }
  0x25   : > { %1363 = vmatpush1.bf16.msra.mxu1 %v1461_v9  ;;  %519 = vmatprep.subr.bf16.mxu0 %v1600_v1 }
  0x26   : > { %1355 = vmatprep.subr.bf16.mxu1 %v1600_v1 }
  0x28   : > { %520 = vmatpush1.bf16.msra.mxu0 %v1462_v10 }
  0x29   : > { %1364 = vmatpush1.bf16.msra.mxu1 %v1462_v10  ;;  %521 = vmatprep.subr.bf16.mxu0 %v1600_v1 }
  0x2a   : > { %1356 = vmatprep.subr.bf16.mxu1 %v1600_v1 }
  0x2c   : > { %522 = vmatpush1.bf16.msra.mxu0 %v1463_v11 }
  0x2d   : > { %1365 = vmatpush1.bf16.msra.mxu1 %v1463_v11 }
  0x2f   : > { %538 = vmatmul.mubr.bf16.vlgmr.msra.gmra.mrb[0].mxu0 %v1464_v12 }
  0x30   : > { %602 = vmatmul.mubr.bf16.vlgmr.msra.gmra.mrb[0].mxu1 %v1467_v13  ;;  %1248 = vmatprep.mubr.msk.bf16.mxu0 %vm456_vm0, %v1470_v14 }
  0x31   : > { %1256 = vmatprep.mubr.msk.bf16.mxu1 %vm456_vm0, %v1472_v15 }
  0x37   : > { %546 = vmatmul.mubr.bf16.gmra.mrb[4].mxu0 %v1474_v16 }
  0x38   : > { %610 = vmatmul.mubr.bf16.gmra.mrb[4].mxu1 %v1475_v17  ;;  %1249 = vmatprep.mubr.msk.bf16.mxu0 %vm456_vm0, %v1476_v18 }
  0x39   : > { %1257 = vmatprep.mubr.msk.bf16.mxu1 %vm456_vm0, %v1478_v19 }
  0x3f   : > { %554 = vmatmul.mubr.bf16.gmra.mrb[8].mxu0 %v1480_v20 }
  0x40   : > { %618 = vmatmul.mubr.bf16.gmra.mrb[8].mxu1 %v1481_v21  ;;  %1250 = vmatprep.mubr.msk.bf16.mxu0 %vm456_vm0, %v1482_v22 }
  0x41   : > { %1258 = vmatprep.mubr.msk.bf16.mxu1 %vm456_vm0, %v1484_v23 }
  0x47   : > { %562 = vmatmul.mubr.bf16.gmra.mrb[12].mxu0 %v1486_v24 }
  0x48   : > { %626 = vmatmul.mubr.bf16.gmra.mrb[12].mxu1 %v1487_v25  ;;  %1251 = vmatprep.mubr.msk.bf16.mxu0 %vm456_vm0, %v1488_v26 }
  0x49   : > { %1259 = vmatprep.mubr.msk.bf16.mxu1 %vm456_vm0, %v1490_v27 }
  0x4f   : > { %570 = vmatmul.mubr.bf16.gmra.mrb[16].mxu0 %v1492_v28 }
  0x50   : > { %634 = vmatmul.mubr.bf16.gmra.mrb[16].mxu1 %v1493_v29  ;;  %1252 = vmatprep.mubr.msk.bf16.mxu0 %vm456_vm0, %v1494_v30 }
  0x51   : > { %1260 = vmatprep.mubr.msk.bf16.mxu1 %vm456_vm0, %v1496_v31 }
  0x57   : > { %578 = vmatmul.mubr.bf16.gmra.mrb[20].mxu0 %v1498_v32 }
  0x58   : > { %642 = vmatmul.mubr.bf16.gmra.mrb[20].mxu1 %v1499_v33  ;;  %1253 = vmatprep.mubr.msk.bf16.mxu0 %vm456_vm0, %v1500_v34 }
  0x59   : > { %1261 = vmatprep.mubr.msk.bf16.mxu1 %vm456_vm0, %v1502_v35 }
  0x5f   : > { %586 = vmatmul.mubr.bf16.gmra.mrb[24].mxu0 %v1504_v36 }
  0x60   : > { %650 = vmatmul.mubr.bf16.gmra.mrb[24].mxu1 %v1505_v37  ;;  %1254 = vmatprep.mubr.msk.bf16.mxu0 %vm456_vm0, %v1506_v38 }
  0x61   : > { %1262 = vmatprep.mubr.msk.bf16.mxu1 %vm456_vm0, %v1508_v39 }
  0x67   : > { %594 = vmatmul.mubr.bf16.gmra.mrb[28].mxu0 %v1510_v40 }
  0x68   : > { %658 = vmatmul.mubr.bf16.gmra.mrb[28].mxu1 %v1511_v41 }
 0x102   : > { %v539_v43 = vpop.f32.mrb[0].mxu0 }
 0x103   : > { %v603_v44 = vpop.f32.mrb[0].mxu1  ;;  %v540_v45 = vadd.f32 %v1739_v42, %v539_v43  ;;  %v541_v47 = vpop.f32.mrb[1].mxu0 }
 0x104   : > { %v604_v46 = vadd.f32 %v1739_v42, %v603_v44  ;;  %v605_v48 = vpop.f32.mrb[1].mxu1  ;;  %v542_v49 = vpop.f32.mrb[2].mxu0 }
 0x105   : > { %v606_v50 = vpop.f32.mrb[2].mxu1  ;;  %v666_v51 = vmax.f32 %v540_v45, 0.0  ;;  %v543_v53 = vadd.f32 %v1739_v42, %v542_v49  ;;  %v544_v55 = vpop.f32.mrb[3].mxu0 }
 0x106   : > { %v682_v52 = vmax.f32 %v604_v46, 0.0  ;;  %v607_v54 = vadd.f32 %v1739_v42, %v606_v50  ;;  %v608_v56 = vpop.f32.mrb[3].mxu1 }
 0x107   : > { %v1313_v57 = vpack.c.bf16 %v666_v51, %v666_v51  ;;  %v667_v59 = vmax.f32 %v543_v53, 0.0 }
 0x108   : > { %v1329_v58 = vpack.c.bf16 %v682_v52, %v682_v52  ;;  %v683_v60 = vmax.f32 %v607_v54, 0.0 }
 0x109   : > { %827 = vst.msk [vmem:[%s1745_s12] sm:$0xf] %vm826_vm1, %v1313_v57  ;;  %v1314_v61 = vpack.c.bf16 %v667_v59, %v667_v59 }
 0x10a   : > { %843 = vst.msk [vmem:[%s1745_s12 + $0x40] sm:$0xf] %vm826_vm1, %v1329_v58  ;;  %v1330_v62 = vpack.c.bf16 %v683_v60, %v683_v60  ;;  %v547_v63 = vpop.f32.mrb[4].mxu0 }
 0x10b   : > { %v611_v0 = vpop.f32.mrb[4].mxu1  ;;  %828 = vst.msk [vmem:[%s1745_s12 + $0x4] sm:$0xf] %vm826_vm1, %v1314_v61  ;;  %v548_v1 = vadd.f32 %v1739_v42, %v547_v63  ;;  %v549_v3 = vpop.f32.mrb[5].mxu0 }
 0x10c   : > { %844 = vst.msk [vmem:[%s1745_s12 + $0x44] sm:$0xf] %vm826_vm1, %v1330_v62  ;;  %v612_v2 = vadd.f32 %v1739_v42, %v611_v0  ;;  %v613_v4 = vpop.f32.mrb[5].mxu1  ;;  %v550_v5 = vpop.f32.mrb[6].mxu0 }
 0x10d   : > { %v614_v6 = vpop.f32.mrb[6].mxu1  ;;  %v668_v7 = vmax.f32 %v548_v1, 0.0  ;;  %v551_v9 = vadd.f32 %v1739_v42, %v550_v5  ;;  %v552_v11 = vpop.f32.mrb[7].mxu0 }
 0x10e   : > { %v684_v8 = vmax.f32 %v612_v2, 0.0  ;;  %v615_v10 = vadd.f32 %v1739_v42, %v614_v6  ;;  %v616_v12 = vpop.f32.mrb[7].mxu1 }
 0x10f   : > { %v1315_v13 = vpack.c.bf16 %v668_v7, %v668_v7  ;;  %v669_v15 = vmax.f32 %v551_v9, 0.0 }
 0x110   : > { %v1331_v14 = vpack.c.bf16 %v684_v8, %v684_v8  ;;  %v685_v16 = vmax.f32 %v615_v10, 0.0 }
 0x111   : > { %829 = vst.msk [vmem:[%s1745_s12 + $0x8] sm:$0xf] %vm826_vm1, %v1315_v13  ;;  %v1316_v17 = vpack.c.bf16 %v669_v15, %v669_v15 }
 0x112   : > { %845 = vst.msk [vmem:[%s1745_s12 + $0x48] sm:$0xf] %vm826_vm1, %v1331_v14  ;;  %v1332_v18 = vpack.c.bf16 %v685_v16, %v685_v16  ;;  %v555_v19 = vpop.f32.mrb[8].mxu0 }
 0x113   : > { %v619_v20 = vpop.f32.mrb[8].mxu1  ;;  %830 = vst.msk [vmem:[%s1745_s12 + $0xc] sm:$0xf] %vm826_vm1, %v1316_v17  ;;  %v556_v21 = vadd.f32 %v1739_v42, %v555_v19  ;;  %v557_v23 = vpop.f32.mrb[9].mxu0 }
 0x114   : > { %846 = vst.msk [vmem:[%s1745_s12 + $0x4c] sm:$0xf] %vm826_vm1, %v1332_v18  ;;  %v620_v22 = vadd.f32 %v1739_v42, %v619_v20  ;;  %v621_v24 = vpop.f32.mrb[9].mxu1  ;;  %v558_v25 = vpop.f32.mrb[10].mxu0 }
 0x115   : > { %v622_v26 = vpop.f32.mrb[10].mxu1  ;;  %v670_v27 = vmax.f32 %v556_v21, 0.0  ;;  %v559_v29 = vadd.f32 %v1739_v42, %v558_v25  ;;  %v560_v31 = vpop.f32.mrb[11].mxu0 }
 0x116   : > { %v686_v28 = vmax.f32 %v620_v22, 0.0  ;;  %v623_v30 = vadd.f32 %v1739_v42, %v622_v26  ;;  %v624_v32 = vpop.f32.mrb[11].mxu1 }
 0x117   : > { %v1317_v33 = vpack.c.bf16 %v670_v27, %v670_v27  ;;  %v671_v35 = vmax.f32 %v559_v29, 0.0 }
 0x118   : > { %v1333_v34 = vpack.c.bf16 %v686_v28, %v686_v28  ;;  %v687_v36 = vmax.f32 %v623_v30, 0.0 }
 0x119   : > { %831 = vst.msk [vmem:[%s1745_s12 + $0x10] sm:$0xf] %vm826_vm1, %v1317_v33  ;;  %v1318_v37 = vpack.c.bf16 %v671_v35, %v671_v35 }
 0x11a   : > { %847 = vst.msk [vmem:[%s1745_s12 + $0x50] sm:$0xf] %vm826_vm1, %v1333_v34  ;;  %v1334_v38 = vpack.c.bf16 %v687_v36, %v687_v36  ;;  %v563_v39 = vpop.f32.mrb[12].mxu0 }
 0x11b   : > { %v627_v40 = vpop.f32.mrb[12].mxu1  ;;  %832 = vst.msk [vmem:[%s1745_s12 + $0x14] sm:$0xf] %vm826_vm1, %v1318_v37  ;;  %v564_v41 = vadd.f32 %v1739_v42, %v563_v39  ;;  %v565_v44 = vpop.f32.mrb[13].mxu0 }
 0x11c   : > { %848 = vst.msk [vmem:[%s1745_s12 + $0x54] sm:$0xf] %vm826_vm1, %v1334_v38  ;;  %v628_v43 = vadd.f32 %v1739_v42, %v627_v40  ;;  %v629_v45 = vpop.f32.mrb[13].mxu1  ;;  %v566_v46 = vpop.f32.mrb[14].mxu0 }
 0x11d   : > { %v630_v47 = vpop.f32.mrb[14].mxu1  ;;  %v672_v48 = vmax.f32 %v564_v41, 0.0  ;;  %v567_v50 = vadd.f32 %v1739_v42, %v566_v46  ;;  %v568_v52 = vpop.f32.mrb[15].mxu0 }
 0x11e   : > { %v688_v49 = vmax.f32 %v628_v43, 0.0  ;;  %v631_v51 = vadd.f32 %v1739_v42, %v630_v47  ;;  %v632_v53 = vpop.f32.mrb[15].mxu1 }
 0x11f   : > { %v1319_v54 = vpack.c.bf16 %v672_v48, %v672_v48  ;;  %v673_v56 = vmax.f32 %v567_v50, 0.0 }
 0x120   : > { %v1335_v55 = vpack.c.bf16 %v688_v49, %v688_v49  ;;  %v689_v57 = vmax.f32 %v631_v51, 0.0 }
 0x121   : > { %833 = vst.msk [vmem:[%s1745_s12 + $0x18] sm:$0xf] %vm826_vm1, %v1319_v54  ;;  %v1320_v58 = vpack.c.bf16 %v673_v56, %v673_v56 }
 0x122   : > { %849 = vst.msk [vmem:[%s1745_s12 + $0x58] sm:$0xf] %vm826_vm1, %v1335_v55  ;;  %v1336_v59 = vpack.c.bf16 %v689_v57, %v689_v57  ;;  %v571_v60 = vpop.f32.mrb[16].mxu0 }
 0x123   : > { %v635_v61 = vpop.f32.mrb[16].mxu1  ;;  %834 = vst.msk [vmem:[%s1745_s12 + $0x1c] sm:$0xf] %vm826_vm1, %v1320_v58  ;;  %v572_v62 = vadd.f32 %v1739_v42, %v571_v60  ;;  %v573_v0 = vpop.f32.mrb[17].mxu0 }
 0x124   : > { %850 = vst.msk [vmem:[%s1745_s12 + $0x5c] sm:$0xf] %vm826_vm1, %v1336_v59  ;;  %v636_v63 = vadd.f32 %v1739_v42, %v635_v61  ;;  %v637_v1 = vpop.f32.mrb[17].mxu1  ;;  %v574_v2 = vpop.f32.mrb[18].mxu0 }
 0x125   : > { %v638_v3 = vpop.f32.mrb[18].mxu1  ;;  %v674_v4 = vmax.f32 %v572_v62, 0.0  ;;  %v575_v6 = vadd.f32 %v1739_v42, %v574_v2  ;;  %v576_v8 = vpop.f32.mrb[19].mxu0 }
 0x126   : > { %v690_v5 = vmax.f32 %v636_v63, 0.0  ;;  %v639_v7 = vadd.f32 %v1739_v42, %v638_v3  ;;  %v640_v9 = vpop.f32.mrb[19].mxu1 }
 0x127   : > { %v1321_v10 = vpack.c.bf16 %v674_v4, %v674_v4  ;;  %v675_v12 = vmax.f32 %v575_v6, 0.0 }
 0x128   : > { %v1337_v11 = vpack.c.bf16 %v690_v5, %v690_v5  ;;  %v691_v13 = vmax.f32 %v639_v7, 0.0 }
 0x129   : > { %835 = vst.msk [vmem:[%s1745_s12 + $0x20] sm:$0xf] %vm826_vm1, %v1321_v10  ;;  %v1322_v14 = vpack.c.bf16 %v675_v12, %v675_v12 }
 0x12a   : > { %851 = vst.msk [vmem:[%s1745_s12 + $0x60] sm:$0xf] %vm826_vm1, %v1337_v11  ;;  %v1338_v15 = vpack.c.bf16 %v691_v13, %v691_v13  ;;  %v579_v16 = vpop.f32.mrb[20].mxu0 }
 0x12b   : > { %v643_v17 = vpop.f32.mrb[20].mxu1  ;;  %836 = vst.msk [vmem:[%s1745_s12 + $0x24] sm:$0xf] %vm826_vm1, %v1322_v14  ;;  %v580_v18 = vadd.f32 %v1739_v42, %v579_v16  ;;  %v581_v20 = vpop.f32.mrb[21].mxu0 }
 0x12c   : > { %852 = vst.msk [vmem:[%s1745_s12 + $0x64] sm:$0xf] %vm826_vm1, %v1338_v15  ;;  %v644_v19 = vadd.f32 %v1739_v42, %v643_v17  ;;  %v645_v21 = vpop.f32.mrb[21].mxu1  ;;  %v582_v22 = vpop.f32.mrb[22].mxu0 }
 0x12d   : > { %v646_v23 = vpop.f32.mrb[22].mxu1  ;;  %v676_v24 = vmax.f32 %v580_v18, 0.0  ;;  %v583_v26 = vadd.f32 %v1739_v42, %v582_v22  ;;  %v584_v28 = vpop.f32.mrb[23].mxu0 }
 0x12e   : > { %v692_v25 = vmax.f32 %v644_v19, 0.0  ;;  %v647_v27 = vadd.f32 %v1739_v42, %v646_v23  ;;  %v648_v29 = vpop.f32.mrb[23].mxu1 }
 0x12f   : > { %v1323_v30 = vpack.c.bf16 %v676_v24, %v676_v24  ;;  %v677_v32 = vmax.f32 %v583_v26, 0.0 }
 0x130   : > { %v1339_v31 = vpack.c.bf16 %v692_v25, %v692_v25  ;;  %v693_v33 = vmax.f32 %v647_v27, 0.0 }
 0x131   : > { %837 = vst.msk [vmem:[%s1745_s12 + $0x28] sm:$0xf] %vm826_vm1, %v1323_v30  ;;  %v1324_v34 = vpack.c.bf16 %v677_v32, %v677_v32 }
 0x132   : > { %853 = vst.msk [vmem:[%s1745_s12 + $0x68] sm:$0xf] %vm826_vm1, %v1339_v31  ;;  %v1340_v35 = vpack.c.bf16 %v693_v33, %v693_v33  ;;  %v587_v36 = vpop.f32.mrb[24].mxu0 }
 0x133   : > { %v651_v37 = vpop.f32.mrb[24].mxu1  ;;  %838 = vst.msk [vmem:[%s1745_s12 + $0x2c] sm:$0xf] %vm826_vm1, %v1324_v34  ;;  %v588_v38 = vadd.f32 %v1739_v42, %v587_v36  ;;  %v589_v40 = vpop.f32.mrb[25].mxu0 }
 0x134   : > { %854 = vst.msk [vmem:[%s1745_s12 + $0x6c] sm:$0xf] %vm826_vm1, %v1340_v35  ;;  %v652_v39 = vadd.f32 %v1739_v42, %v651_v37  ;;  %v653_v41 = vpop.f32.mrb[25].mxu1  ;;  %v590_v43 = vpop.f32.mrb[26].mxu0 }
 0x135   : > { %v654_v44 = vpop.f32.mrb[26].mxu1  ;;  %v678_v45 = vmax.f32 %v588_v38, 0.0  ;;  %v591_v47 = vadd.f32 %v1739_v42, %v590_v43  ;;  %v592_v49 = vpop.f32.mrb[27].mxu0 }
 0x136   : > { %v694_v46 = vmax.f32 %v652_v39, 0.0  ;;  %v655_v48 = vadd.f32 %v1739_v42, %v654_v44  ;;  %v656_v50 = vpop.f32.mrb[27].mxu1 }
 0x137   : > { %v1325_v51 = vpack.c.bf16 %v678_v45, %v678_v45  ;;  %v679_v53 = vmax.f32 %v591_v47, 0.0 }
 0x138   : > { %v1341_v52 = vpack.c.bf16 %v694_v46, %v694_v46  ;;  %v695_v54 = vmax.f32 %v655_v48, 0.0 }
 0x139   : > { %839 = vst.msk [vmem:[%s1745_s12 + $0x30] sm:$0xf] %vm826_vm1, %v1325_v51  ;;  %v1326_v55 = vpack.c.bf16 %v679_v53, %v679_v53 }
 0x13a   : > { %855 = vst.msk [vmem:[%s1745_s12 + $0x70] sm:$0xf] %vm826_vm1, %v1341_v52  ;;  %v1342_v56 = vpack.c.bf16 %v695_v54, %v695_v54  ;;  %v595_v57 = vpop.f32.mrb[28].mxu0 }
 0x13b   : > { %v659_v58 = vpop.f32.mrb[28].mxu1  ;;  %840 = vst.msk [vmem:[%s1745_s12 + $0x34] sm:$0xf] %vm826_vm1, %v1326_v55  ;;  %v596_v59 = vadd.f32 %v1739_v42, %v595_v57  ;;  %v597_v61 = vpop.f32.mrb[29].mxu0 }
 0x13c   : > { %856 = vst.msk [vmem:[%s1745_s12 + $0x74] sm:$0xf] %vm826_vm1, %v1342_v56  ;;  %v660_v60 = vadd.f32 %v1739_v42, %v659_v58  ;;  %v661_v62 = vpop.f32.mrb[29].mxu1  ;;  %v598_v63 = vpop.f32.mrb[30].mxu0 }
 0x13d   : > { %v662_v0 = vpop.f32.mrb[30].mxu1  ;;  %v680_v1 = vmax.f32 %v596_v59, 0.0  ;;  %v599_v3 = vadd.f32 %v1739_v42, %v598_v63  ;;  %v600_v5 = vpop.f32.mrb[31].mxu0 }
 0x13e   : > { %v696_v2 = vmax.f32 %v660_v60, 0.0  ;;  %v663_v4 = vadd.f32 %v1739_v42, %v662_v0  ;;  %v664_v6 = vpop.f32.mrb[31].mxu1  ;;  %865 = sbr.rel (!%p1646_p4) target bundleno = 395 (0x18b), region = 36 }
 0x13f   : > { %v1327_v7 = vpack.c.bf16 %v680_v1, %v680_v1  ;;  %v681_v9 = vmax.f32 %v599_v3, 0.0 }
 0x140   : > { %v1343_v8 = vpack.c.bf16 %v696_v2, %v696_v2  ;;  %v697_v10 = vmax.f32 %v663_v4, 0.0 }
 0x141   : > { %841 = vst.msk [vmem:[%s1745_s12 + $0x38] sm:$0xf] %vm826_vm1, %v1327_v7  ;;  %v1328_v11 = vpack.c.bf16 %v681_v9, %v681_v9 }
 0x142   : > { %857 = vst.msk [vmem:[%s1745_s12 + $0x78] sm:$0xf] %vm826_vm1, %v1343_v8  ;;  %v1344_v12 = vpack.c.bf16 %v697_v10, %v697_v10 }
 0x143   : > { %842 = vst.msk [vmem:[%s1745_s12 + $0x3c] sm:$0xf] %vm826_vm1, %v1328_v11 }
 0x144   : > { %858 = vst.msk [vmem:[%s1745_s12 + $0x7c] sm:$0xf] %vm826_vm1, %v1344_v12 }
 0x145   : > { %s1986_s29 = smov (!%p868_p8, %s867_s29), 32 }
 0x146   : > { %s1297_s7 = sshll.u32 %s1986_s29, 6 }
 0x147   : > { %p1300_p9 = scmp.eq.s32.totalorder %s1297_s7, 0 }
 0x148   : > { %s1852_s8 = sshrl.u32 (!%p1300_p9), %s1986_s29, 5 }
 0x149   : > { %876 = sbr.rel (%p1300_p9) target bundleno = 395 (0x18b), region = 40  ;;  %p1301_p10 = scmp.le.s32.totalorder (!%p1300_p9), %s1852_s8, 0 }
 0x150   : > { %1153 = sbr.rel (%p1301_p10) target bundleno = 374 (0x176), region = 112  ;;  %s1979_s15 = smov (!%p1301_p10), %s1846_s6 }
 0x151   : > { %s1980_s20 = smov (!%p1301_p10), %s1745_s12  ;;  %s1861_s23 = smov (!%p1301_p10), 0  }
 0x152   : > { %s1863_s9 = smov (!%p1301_p10), 0  }
 0x157 LB: >> { %v892_v42 = vld [vmem:[%s1574_s20] sm:$0xf]  ;;  %v894_v13 = vld [vmem:[%s1574_s20 + $0x4] sm:$0xf]  ;;  %v896_v14 = vld [vmem:[%s1574_s20 + $0x8] sm:$0xf]  ;;  %s1582_s9 = sphi %s1863_s9, %s886_s9   ;;  %s1578_s23 = sphi %s1861_s23, %s1981_s23   ;;  %s1574_s20 = sphi %s1980_s20, %s961_s20   ;;  %s1570_s15 = sphi %s1979_s15, %s962_s15  }
 0x158   : >> { %893 = vst [vmem:[%s1570_s15] sm:$0xf] %v892_v42  ;;  %895 = vst [vmem:[%s1570_s15 + $0x4] sm:$0xf] %v894_v13  ;;  %v898_v15 = vld [vmem:[%s1574_s20 + $0xc] sm:$0xf]  ;;  %s956_s10 = sadd.s32 1, %s1578_s23 }
 0x159   : >> { %897 = vst [vmem:[%s1570_s15 + $0x8] sm:$0xf] %v896_v14  ;;  %v900_v16 = vld [vmem:[%s1574_s20 + $0x10] sm:$0xf]  ;;  %v902_v17 = vld [vmem:[%s1574_s20 + $0x14] sm:$0xf]  ;;  %p957_p11 = scmp.ge.s32.totalorder %s956_s10, %s1852_s8 }
 0x15a   : >> { %899 = vst [vmem:[%s1570_s15 + $0xc] sm:$0xf] %v898_v15  ;;  %901 = vst [vmem:[%s1570_s15 + $0x10] sm:$0xf] %v900_v16  ;;  %v904_v18 = vld [vmem:[%s1574_s20 + $0x18] sm:$0xf] }
 0x15b   : >> { %903 = vst [vmem:[%s1570_s15 + $0x14] sm:$0xf] %v902_v17  ;;  %v906_v19 = vld [vmem:[%s1574_s20 + $0x1c] sm:$0xf]  ;;  %v908_v20 = vld [vmem:[%s1574_s20 + $0x20] sm:$0xf] }
 0x15c   : >> { %905 = vst [vmem:[%s1570_s15 + $0x18] sm:$0xf] %v904_v18  ;;  %907 = vst [vmem:[%s1570_s15 + $0x1c] sm:$0xf] %v906_v19  ;;  %v910_v21 = vld [vmem:[%s1574_s20 + $0x24] sm:$0xf] }
 0x15d   : >> { %909 = vst [vmem:[%s1570_s15 + $0x20] sm:$0xf] %v908_v20  ;;  %v912_v22 = vld [vmem:[%s1574_s20 + $0x28] sm:$0xf]  ;;  %v914_v23 = vld [vmem:[%s1574_s20 + $0x2c] sm:$0xf] }
 0x15e   : >> { %911 = vst [vmem:[%s1570_s15 + $0x24] sm:$0xf] %v910_v21  ;;  %913 = vst [vmem:[%s1570_s15 + $0x28] sm:$0xf] %v912_v22  ;;  %v916_v24 = vld [vmem:[%s1574_s20 + $0x30] sm:$0xf] }
 0x15f   : >> { %915 = vst [vmem:[%s1570_s15 + $0x2c] sm:$0xf] %v914_v23  ;;  %v918_v25 = vld [vmem:[%s1574_s20 + $0x34] sm:$0xf]  ;;  %v920_v26 = vld [vmem:[%s1574_s20 + $0x38] sm:$0xf] }
 0x160   : >> { %917 = vst [vmem:[%s1570_s15 + $0x30] sm:$0xf] %v916_v24  ;;  %919 = vst [vmem:[%s1570_s15 + $0x34] sm:$0xf] %v918_v25  ;;  %v922_v27 = vld [vmem:[%s1574_s20 + $0x3c] sm:$0xf] }
 0x161   : >> { %921 = vst [vmem:[%s1570_s15 + $0x38] sm:$0xf] %v920_v26  ;;  %v924_v28 = vld [vmem:[%s1574_s20 + $0x40] sm:$0xf]  ;;  %v926_v29 = vld [vmem:[%s1574_s20 + $0x44] sm:$0xf] }
 0x162   : >> { %923 = vst [vmem:[%s1570_s15 + $0x3c] sm:$0xf] %v922_v27  ;;  %925 = vst [vmem:[%s1570_s15 + $0x40] sm:$0xf] %v924_v28  ;;  %v928_v30 = vld [vmem:[%s1574_s20 + $0x48] sm:$0xf] }
 0x163   : >> { %927 = vst [vmem:[%s1570_s15 + $0x44] sm:$0xf] %v926_v29  ;;  %v930_v31 = vld [vmem:[%s1574_s20 + $0x4c] sm:$0xf]  ;;  %v932_v32 = vld [vmem:[%s1574_s20 + $0x50] sm:$0xf] }
 0x164   : >> { %929 = vst [vmem:[%s1570_s15 + $0x48] sm:$0xf] %v928_v30  ;;  %931 = vst [vmem:[%s1570_s15 + $0x4c] sm:$0xf] %v930_v31  ;;  %v934_v33 = vld [vmem:[%s1574_s20 + $0x54] sm:$0xf] }
 0x165   : >> { %933 = vst [vmem:[%s1570_s15 + $0x50] sm:$0xf] %v932_v32  ;;  %v936_v34 = vld [vmem:[%s1574_s20 + $0x58] sm:$0xf]  ;;  %v938_v35 = vld [vmem:[%s1574_s20 + $0x5c] sm:$0xf] }
 0x166   : >> { %935 = vst [vmem:[%s1570_s15 + $0x54] sm:$0xf] %v934_v33  ;;  %937 = vst [vmem:[%s1570_s15 + $0x58] sm:$0xf] %v936_v34  ;;  %v940_v36 = vld [vmem:[%s1574_s20 + $0x60] sm:$0xf] }
 0x167   : >> { %939 = vst [vmem:[%s1570_s15 + $0x5c] sm:$0xf] %v938_v35  ;;  %v942_v37 = vld [vmem:[%s1574_s20 + $0x64] sm:$0xf]  ;;  %v944_v38 = vld [vmem:[%s1574_s20 + $0x68] sm:$0xf] }
 0x168   : >> { %941 = vst [vmem:[%s1570_s15 + $0x60] sm:$0xf] %v940_v36  ;;  %943 = vst [vmem:[%s1570_s15 + $0x64] sm:$0xf] %v942_v37  ;;  %v946_v39 = vld [vmem:[%s1574_s20 + $0x6c] sm:$0xf] }
 0x169   : >> { %945 = vst [vmem:[%s1570_s15 + $0x68] sm:$0xf] %v944_v38  ;;  %v948_v40 = vld [vmem:[%s1574_s20 + $0x70] sm:$0xf]  ;;  %v950_v41 = vld [vmem:[%s1574_s20 + $0x74] sm:$0xf] }
 0x16a   : >> { %947 = vst [vmem:[%s1570_s15 + $0x6c] sm:$0xf] %v946_v39  ;;  %949 = vst [vmem:[%s1570_s15 + $0x70] sm:$0xf] %v948_v40  ;;  %v952_v43 = vld [vmem:[%s1574_s20 + $0x78] sm:$0xf] }
 0x16b   : >> { %951 = vst [vmem:[%s1570_s15 + $0x74] sm:$0xf] %v950_v41  ;;  %v954_v44 = vld [vmem:[%s1574_s20 + $0x7c] sm:$0xf]  ;;  %953 = vst [vmem:[%s1570_s15 + $0x78] sm:$0xf] %v952_v43 }
 0x16c   : >> { %955 = vst [vmem:[%s1570_s15 + $0x7c] sm:$0xf] %v954_v44  ;;  %s1988_s10 = smov (%p957_p11, %s956_s10), 0  ;;  %s886_s9 = sadd.s32 1, %s1582_s9  }
 0x16d   : >> { %s1302_s11 = sshll.u32 %s1988_s10, 7  ;;  %p885_p12 = scmp.ge.s32.totalorder %s886_s9, %s1852_s8 }
 0x16e   : >> { %s961_s20 = scalar_lea.vmem %s1745_s12, %s1302_s11 [#allocation2]   ;;  %s962_s15 = scalar_lea.vmem %s1846_s6, %s1302_s11  }
 0x16f   : >> { %s1981_s23 = smov %s1988_s10  ;;  %888 = sbr.rel (!%p885_p12) target bundleno = 343 (0x157), region = 118 }
 0x176 PF: > { %s1956_s14 = sand.u32 31, %s1986_s29   ;;  %s1346_s17 = sshll.u32 %s1852_s8, 7 }
 0x177   : > { %s967_s18 = scalar_lea.vmem %s1745_s12, %s1346_s17 [#allocation2]   ;;  %s969_s21 = scalar_lea.vmem %s1846_s6, %s1346_s17  }
 0x178   : > { %p1307_p13 = scmp.le.s32.totalorder %s1956_s14, 0 }
 0x179   : > { %s1584_s22 = smov (!%p1307_p13), %s969_s21   ;;  %s1588_s24 = smov (!%p1307_p13), %s967_s18  }
 0x17a   : > { %1167 = sbr.rel (%p1307_p13) target bundleno = 395 (0x18b), region = 123  ;;  %s1592_s25 = smov (!%p1307_p13), 0  }
 0x17b   : > { %s1596_s26 = smov (!%p1307_p13), 0  }
 0x181 LB: >> { %v979_v45 = vld [vmem:[%s1590_s24] sm:$0xf]  ;;  %s981_s27 = sadd.s32 1, %s1594_s25  ;;  %s973_s26 = sadd.s32 1, %s1598_s26   ;;  %s1598_s26 = sphi %s1596_s26, %s973_s26   ;;  %s1594_s25 = sphi %s1592_s25, %s1593_s25   ;;  %s1590_s24 = sphi %s1588_s24, %s986_s24   ;;  %s1586_s22 = sphi %s1584_s22, %s987_s22  }
 0x182   : >> { %980 = vst [vmem:[%s1586_s22] sm:$0xf] %v979_v45  ;;  %p982_p0 = scmp.ge.s32.totalorder %s981_s27, %s1956_s14  ;;  %p972_p1 = scmp.ge.s32.totalorder %s973_s26, %s1956_s14 }
 0x184   : >> { %s1990_s27 = smov (%p982_p0, %s981_s27), 0  ;;  %975 = sbr.rel (!%p972_p1) target bundleno = 385 (0x181), region = 129 }
 0x185   : >> { %s1308_s28 = sshll.u32 %s1990_s27, 2  ;;  %s1593_s25 = smov %s1990_s27  }
 0x186   : >> { %s986_s24 = scalar_lea.vmem %s967_s18, %s1308_s28 [#allocation2]   ;;  %s987_s22 = scalar_lea.vmem %s969_s21, %s1308_s28  }
 0x18b PF: > { %p10_p2 = scmp.ge.s32.totalorder %s1636_s16, 4   ;;  %s1982_s12 = smov %s1562_s13 }
 0x18c   : > { %s1983_s13 = smov %s1644_s19  ;;  %s1984_s14 = smov %s1636_s16 }
 0x18d   :  { %12 = sbr.rel (!%p10_p2) target bundleno = 2 (0x2), region = 140 }

// kernel: naive_model_forward.6
= control target key start
LH: loop header
LB: loop body
LE: loop exit
PB: predicated region body
PF: predicated region fallthrough
CT: control target
= control target key end

     0   :  { %vm235_vm0 = vcmask 261120   ;;  %vm412_vm1 = vcmask 519168   ;;  %vm419_vm2 = vcmask 516096   ;;  %s722_s1 = inlined_call_operand.vmem [shape: bf16[288,64], index: 1, kind: input, shape index: {}]   ;;  %s723_s0 = inlined_call_operand.vmem [shape: bf16[50,288], index: 0, kind: input, shape index: {}]   ;;  %s724_s2 = inlined_call_operand.vmem [shape: f32[1,64], index: 2, kind: input, shape index: {}]   ;;  %s725_s3 = inlined_call_operand.vmem [shape: bf16[50,64], index: 3, kind: output, shape index: {}]  }
   0x1   :  { %v548_v0 = vld [vmem:[%s722_s1 + $0x40] sm:$0xff]   ;;  %v550_v2 = vld [vmem:[%s722_s1 + $0x48] sm:$0xff]   ;;  %v552_v4 = vld [vmem:[%s722_s1 + $0x50] sm:$0xff]  }
   0x2   :  { %v549_v1 = vld [vmem:[%s722_s1] sm:$0xff]   ;;  %474 = vmatprep.subr.bf16.mxu0 %v548_v0  ;;  %532 = vmatprep.subr.bf16.mxu1 %v548_v0  ;;  %v551_v3 = vld [vmem:[%s722_s1 + $0x8] sm:$0xff]   ;;  %v553_v5 = vld [vmem:[%s722_s1 + $0x10] sm:$0xff]  }
   0x3   :  { %475 = vmatpush3.bf16.msra.mxu0 %v549_v1  ;;  %540 = vmatpush3.bf16.msra.mxu1 %v549_v1  ;;  %v554_v6 = vld [vmem:[%s722_s1 + $0x58] sm:$0xff]   ;;  %v556_v8 = vld [vmem:[%s722_s1 + $0x60] sm:$0xff]   ;;  %v558_v10 = vld [vmem:[%s722_s1 + $0x68] sm:$0xff]  }
   0x4   :  { %476 = vmatprep.subr.bf16.mxu0 %v550_v2  ;;  %533 = vmatprep.subr.bf16.mxu1 %v550_v2  ;;  %v555_v7 = vld [vmem:[%s722_s1 + $0x18] sm:$0xff]   ;;  %v557_v9 = vld [vmem:[%s722_s1 + $0x20] sm:$0xff]   ;;  %v27_v12 = vld [vmem:[%s723_s0 + $0x48] sm:$0x11] }
   0x5   :  { %v566_v11 = vld [vmem:[%s723_s0 + $0x4] ss:$12 sps:$4 sm:$0xff]   ;;  %v436_v13 = vcombine.high %v27_v12, %v27_v12  ;;  %v559_v14 = vld [vmem:[%s722_s1 + $0x28] sm:$0xff]   ;;  %v562_v17 = vld [vmem:[%s722_s1 + $0x78] sm:$0xff]   ;;  %v435_v21 = vcombine.low %v27_v12, %v27_v12 }
   0x6   :  { %v560_v15 = vld [vmem:[%s722_s1 + $0x70] sm:$0xff]   ;;  %280 = vmatprep.mubr.bf16.mxu0 %v566_v11  ;;  %v563_v18 = vld [vmem:[%s722_s1 + $0x38] sm:$0xff]   ;;  %v569_v19 = vld [vmem:[%s722_s1 + $0x80] sm:$0xff]  }
   0x7   :  { %477 = vmatpush3.bf16.msra.mxu0 %v551_v3  ;;  %541 = vmatpush3.bf16.msra.mxu1 %v551_v3  ;;  %v561_v16 = vld [vmem:[%s722_s1 + $0x30] sm:$0xff]   ;;  %v564_v20 = vld [vmem:[%s723_s0] ss:$12 sps:$4 sm:$0xff]   ;;  %v571_v22 = vld [vmem:[%s723_s0 + $0x1c] ss:$12 sps:$4 sm:$0xff]  }
   0x8   :  { %478 = vmatprep.subr.bf16.mxu0 %v552_v4  ;;  %534 = vmatprep.subr.bf16.mxu1 %v552_v4  ;;  %v570_v23 = vld [vmem:[%s722_s1 + $0x88] sm:$0xff]   ;;  %v574_v25 = vld [vmem:[%s723_s0 + $0x18] ss:$12 sps:$4 sm:$0xff]   ;;  %v576_v27 = vld [vmem:[%s723_s0 + $0x34] ss:$12 sps:$4 sm:$0xff]  }
   0x9   :  { %304 = vmatprep.mubr.bf16.mxu1 %v436_v13  ;;  %v573_v24 = vld [vmem:[%s723_s0 + $0x8] ss:$12 sps:$4 sm:$0xff]   ;;  %v575_v26 = vld [vmem:[%s723_s0 + $0x20] ss:$12 sps:$4 sm:$0xff]   ;;  %v578_v28 = vld [vmem:[%s723_s0 + $0x38] ss:$12 sps:$4 sm:$0xff]  }
   0xa   :  { %v579_v29 = vld [vmem:[%s723_s0 + $0x30] ss:$12 sps:$4 sm:$0xff]   ;;  %v425_v42 = vld [vmem:[%s724_s2] ss:$0 sm:$0xff] }
   0xb   :  { %479 = vmatpush3.bf16.msra.mxu0 %v553_v5  ;;  %542 = vmatpush3.bf16.msra.mxu1 %v553_v5  ;;  %v580_v30 = vld [vmem:[%s723_s0 + $0x50] ss:$0 sps:$4 sm:$0x11]  }
   0xc   :  { %480 = vmatprep.subr.bf16.mxu0 %v554_v6  ;;  %535 = vmatprep.subr.bf16.mxu1 %v554_v6 }
   0xf   :  { %481 = vmatpush3.bf16.msra.mxu0 %v555_v7  ;;  %543 = vmatpush3.bf16.msra.mxu1 %v555_v7 }
  0x10   :  { %482 = vmatprep.subr.bf16.mxu0 %v556_v8  ;;  %536 = vmatprep.subr.bf16.mxu1 %v556_v8 }
  0x13   :  { %483 = vmatpush3.bf16.msra.mxu0 %v557_v9  ;;  %544 = vmatpush3.bf16.msra.mxu1 %v557_v9 }
  0x14   :  { %484 = vmatprep.subr.bf16.mxu0 %v558_v10  ;;  %537 = vmatprep.subr.bf16.mxu1 %v558_v10 }
  0x17   :  { %485 = vmatpush3.bf16.msra.mxu0 %v559_v14  ;;  %545 = vmatpush3.bf16.msra.mxu1 %v559_v14 }
  0x18   :  { %486 = vmatprep.subr.bf16.mxu0 %v560_v15  ;;  %538 = vmatprep.subr.bf16.mxu1 %v560_v15 }
  0x1b   :  { %487 = vmatpush3.bf16.msra.mxu0 %v561_v16  ;;  %546 = vmatpush3.bf16.msra.mxu1 %v561_v16 }
  0x1c   :  { %488 = vmatprep.subr.bf16.mxu0 %v562_v17  ;;  %539 = vmatprep.subr.bf16.mxu1 %v562_v17 }
  0x1f   :  { %489 = vmatpush3.bf16.msra.mxu0 %v563_v18  ;;  %547 = vmatpush3.bf16.msra.mxu1 %v563_v18 }
  0x20   :  { %520 = vmatprep.subr.bf16.mxu1 %v569_v19 }
  0x22   :  { %281 = vmatmul.mubr.bf16.vlgmr.msra.gmra.mrb[0].mxu0 %v564_v20  ;;  %305 = vmatmul.mubr.bf16.vlgmr.msra.gmra.mrb[0].mxu1 %v435_v21 }
  0x23   :  { %521 = vmatpush3.bf16.msra.mxu1 %v569_v19  ;;  %288 = vmatprep.mubr.bf16.mxu0 %v571_v22 }
  0x24   :  { %522 = vmatprep.subr.bf16.mxu1 %v570_v23  ;;  %524 = vmatprep.mubr.msk.bf16.mxu1 %vm235_vm0, %v573_v24 }
  0x27   :  { %523 = vmatpush3.bf16.msra.mxu1 %v570_v23 }
  0x2a   :  { %289 = vmatmul.mubr.bf16.gmra.mrb[4].mxu0 %v574_v25  ;;  %525 = vmatmul.mubr.msk.bf16.vlgmr.msra.gmra.mrb[4].mxu1 %vm235_vm0, %v575_v26 }
  0x2b   :  { %296 = vmatprep.mubr.bf16.mxu0 %v576_v27  ;;  %528 = vmatprep.mubr.msk.bf16.mxu1 %vm235_vm0, %v578_v28 }
  0x32   :  { %297 = vmatmul.mubr.bf16.gmra.mrb[8].mxu0 %v579_v29  ;;  %529 = vmatmul.mubr.msk.bf16.gmra.mrb[8].mxu1 %vm235_vm0, %v580_v30 }
  0xf5   :  { %v490_v31 = vpop.f32.mrb[0].mxu0  ;;  %v508_v32 = vpop.f32.mrb[0].mxu1 }
  0xf6   :  { %v491_v33 = vpop.f32.mrb[1].mxu0  ;;  %v509_v34 = vpop.f32.mrb[1].mxu1 }
  0xf7   :  { %v492_v35 = vadd.f32 %v491_v33, %v490_v31  ;;  %v493_v36 = vpop.f32.mrb[2].mxu0  ;;  %v510_v37 = vadd.f32 %v509_v34, %v508_v32  ;;  %v511_v38 = vpop.f32.mrb[2].mxu1 }
  0xf8   :  { %v494_v39 = vpop.f32.mrb[3].mxu0  ;;  %v512_v40 = vpop.f32.mrb[3].mxu1 }
  0xf9   :  { %v495_v41 = vadd.f32 %v494_v39, %v493_v36  ;;  %v283_v45 = vadd.f32 %v492_v35, %v425_v42  ;;  %v307_v63 = vadd.f32 %v510_v37, %v425_v42 }
  0xfb   :  { %v286_v52 = vadd.f32 %v495_v41, %v425_v42 }
  0xfd   :  { %v496_v43 = vpop.f32.mrb[4].mxu0  ;;  %v526_v44 = vpop.f32.mrb[4].mxu1 }
  0xfe   :  { %v497_v46 = vpop.f32.mrb[5].mxu0  ;;  %v346_v47 = vpop.f32.mrb[5].mxu1 }
  0xff   :  { %v498_v48 = vadd.f32 %v497_v46, %v496_v43  ;;  %v347_v49 = vadd.f32 %v346_v47, %v283_v45  ;;  %v499_v50 = vpop.f32.mrb[6].mxu0  ;;  %v527_v51 = vpop.f32.mrb[6].mxu1 }
 0x100   :  { %v500_v53 = vpop.f32.mrb[7].mxu0  ;;  %v349_v54 = vpop.f32.mrb[7].mxu1 }
 0x101   :  { %v291_v55 = vadd.f32 %v498_v48, %v425_v42  ;;  %v376_v56 = vmax.f32 %v347_v49, 0.0  ;;  %v501_v57 = vadd.f32 %v500_v53, %v499_v50  ;;  %v350_v58 = vadd.f32 %v349_v54, %v286_v52 }
 0x103   :  { %v355_v59 = vadd.f32 %v526_v44, %v291_v55  ;;  %v467_v60 = vpack.c.bf16 %v376_v56, %v376_v56  ;;  %v294_v61 = vadd.f32 %v501_v57, %v425_v42  ;;  %v377_v62 = vmax.f32 %v350_v58, 0.0 }
 0x105   :  { %v378_v0 = vmax.f32 %v355_v59, 0.0  ;;  %413 = vst.msk [vmem:[%s725_s3] sm:$0xf] %vm412_vm1, %v467_v60  ;;  %v358_v1 = vadd.f32 %v527_v51, %v294_v61  ;;  %v468_v2 = vpack.c.bf16 %v377_v62, %v377_v62  ;;  %v502_v3 = vpop.f32.mrb[8].mxu0  ;;  %v530_v4 = vpop.f32.mrb[8].mxu1 }
 0x106   :  { %v371_v5 = vadd.f32 %v530_v4, %v307_v63  ;;  %v503_v6 = vpop.f32.mrb[9].mxu0  ;;  %v362_v7 = vpop.f32.mrb[9].mxu1 }
 0x107   :  { %v469_v8 = vpack.c.bf16 %v378_v0, %v378_v0  ;;  %v379_v9 = vmax.f32 %v358_v1, 0.0  ;;  %414 = vst.msk [vmem:[%s725_s3 + $0x4] sm:$0xf] %vm412_vm1, %v468_v2  ;;  %v504_v10 = vadd.f32 %v503_v6, %v502_v3  ;;  %v505_v11 = vpop.f32.mrb[10].mxu0  ;;  %v531_v12 = vpop.f32.mrb[10].mxu1 }
 0x108   :  { %v382_v13 = vmax.f32 %v371_v5, 0.0  ;;  %v506_v14 = vpop.f32.mrb[11].mxu0  ;;  %v365_v15 = vpop.f32.mrb[11].mxu1 }
 0x109   :  { %415 = vst.msk [vmem:[%s725_s3 + $0x8] sm:$0xf] %vm412_vm1, %v469_v8  ;;  %v470_v16 = vpack.c.bf16 %v379_v9, %v379_v9  ;;  %v299_v17 = vadd.f32 %v504_v10, %v425_v42  ;;  %v507_v18 = vadd.f32 %v506_v14, %v505_v11 }
 0x10a   :  { %v473_v19 = vpack.c.bf16 %v382_v13, %v382_v13 }
 0x10b   :  { %416 = vst.msk [vmem:[%s725_s3 + $0xc] sm:$0xf] %vm412_vm1, %v470_v16  ;;  %v363_v20 = vadd.f32 %v362_v7, %v299_v17  ;;  %v302_v21 = vadd.f32 %v507_v18, %v425_v42 }
 0x10c   :  { %420 = vst.msk [vmem:[%s725_s3 + $0x18] sm:$0x1] %vm419_vm2, %v473_v19 }
 0x10d   :  { %v380_v22 = vmax.f32 %v363_v20, 0.0  ;;  %v366_v23 = vadd.f32 %v365_v15, %v302_v21 }
 0x10f   :  { %v471_v24 = vpack.c.bf16 %v380_v22, %v380_v22  ;;  %v381_v25 = vmax.f32 %v366_v23, 0.0 }
 0x111   :  { %417 = vst.msk [vmem:[%s725_s3 + $0x10] sm:$0xf] %vm412_vm1, %v471_v24  ;;  %v472_v26 = vpack.c.bf16 %v381_v25, %v381_v25 }
 0x113   :  { %418 = vst.msk [vmem:[%s725_s3 + $0x14] sm:$0xf] %vm412_vm1, %v472_v26 }

// kernel: naive_model_forward.7
= control target key start
LH: loop header
LB: loop body
LE: loop exit
PB: predicated region body
PF: predicated region fallthrough
CT: control target
= control target key end

     0   :  { %v832_v36 = vlaneseq  ;;  %v10164_v37 = vmov 1966171168   ;;  %vm4569_vm0 = vcmask 523264   ;;  %s13233_s0 = inlined_call_operand.vmem [shape: bf16[2,1600], index: 0, kind: input, shape index: {}]   ;;  %s13234_s1 = inlined_call_operand.vmem [shape: bf16[1600,800], index: 1, kind: input, shape index: {}]   ;;  %s13235_s2 = inlined_call_operand.vmem [shape: f32[1,800], index: 2, kind: input, shape index: {}]   ;;  %s13236_s3 = inlined_call_operand.vmem [shape: bf16[800,400], index: 3, kind: input, shape index: {}]   ;;  %s13237_s4 = inlined_call_operand.vmem [shape: f32[1,400], index: 4, kind: input, shape index: {}]   ;;  %s13238_s5 = inlined_call_operand.vmem [shape: bf16[400,10], index: 5, kind: input, shape index: {}]   ;;  %s13239_s6 = inlined_call_operand.vmem [shape: f32[1,10], index: 6, kind: input, shape index: {}]   ;;  %s13240_s7 = inlined_call_operand.hbm [shape: f32[2,10], index: 7, kind: output, shape index: {}]  }
   0x1   :  { %v8810_v0 = vld [vmem:[%s13234_s1 + $0x4] ss:$28 sps:$4 sm:$0xff]   ;;  %v8816_v4 = vld [vmem:[%s13234_s1 + $0x3c] ss:$28 sps:$4 sm:$0xff]   ;;  %v8822_v8 = vld [vmem:[%s13234_s1 + $0x74] ss:$28 sps:$4 sm:$0xff]   ;;  %v871_v38 = vunpack.c.l.s4 %v10164_v37 }
   0x2   :  { %v8812_v1 = vld [vmem:[%s13234_s1 + $0x384] ss:$28 sps:$4 sm:$0xff]   ;;  %4573 = vmatprep.subr.bf16.mxu1 %v8810_v0  ;;  %v8818_v5 = vld [vmem:[%s13234_s1 + $0x3bc] ss:$28 sps:$4 sm:$0xff]   ;;  %v8824_v9 = vld [vmem:[%s13234_s1 + $0x3f4] ss:$28 sps:$4 sm:$0xff]  }
   0x3   :  { %v8814_v2 = vld [vmem:[%s13234_s1] ss:$28 sps:$4 sm:$0xff]   ;;  %4614 = vmatprep.subr.bf16.mxu0 %v8812_v1  ;;  %v8820_v6 = vld [vmem:[%s13234_s1 + $0x38] ss:$28 sps:$4 sm:$0xff]   ;;  %v8826_v10 = vld [vmem:[%s13234_s1 + $0x70] ss:$28 sps:$4 sm:$0xff]   ;;  %v872_v43 = vunpack.c.0.s8 %v871_v38 }
   0x4   :  { %v8815_v3 = vld [vmem:[%s13234_s1 + $0x380] ss:$28 sps:$4 sm:$0xff]   ;;  %4574 = vmatpush1.bf16.msra.mxu1 %v8814_v2  ;;  %v8821_v7 = vld [vmem:[%s13234_s1 + $0x3b8] ss:$28 sps:$4 sm:$0xff]   ;;  %v8827_v11 = vld [vmem:[%s13234_s1 + $0x3f0] ss:$28 sps:$4 sm:$0xff]  }
   0x5   :  { %4615 = vmatpush1.bf16.msra.mxu0 %v8815_v3  ;;  %4575 = vmatprep.subr.bf16.mxu1 %v8816_v4  ;;  %v8828_v12 = vld [vmem:[%s13234_s1 + $0xac] ss:$28 sps:$4 sm:$0xff]   ;;  %v8834_v16 = vld [vmem:[%s13234_s1 + $0xe4] ss:$28 sps:$4 sm:$0xff]   ;;  %v8840_v20 = vld [vmem:[%s13234_s1 + $0x11c] ss:$28 sps:$4 sm:$0xff]  }
   0x6   :  { %4616 = vmatprep.subr.bf16.mxu0 %v8818_v5  ;;  %v8830_v13 = vld [vmem:[%s13234_s1 + $0x42c] ss:$28 sps:$4 sm:$0xff]   ;;  %v8836_v17 = vld [vmem:[%s13234_s1 + $0x464] ss:$28 sps:$4 sm:$0xff]   ;;  %v8842_v21 = vld [vmem:[%s13234_s1 + $0x49c] ss:$28 sps:$4 sm:$0xff]  }
   0x7   :  { %v8832_v14 = vld [vmem:[%s13234_s1 + $0xa8] ss:$28 sps:$4 sm:$0xff]   ;;  %v8838_v18 = vld [vmem:[%s13234_s1 + $0xe0] ss:$28 sps:$4 sm:$0xff]   ;;  %v8844_v22 = vld [vmem:[%s13234_s1 + $0x118] ss:$28 sps:$4 sm:$0xff]  }
   0x8   :  { %4576 = vmatpush1.bf16.msra.mxu1 %v8820_v6  ;;  %v8833_v15 = vld [vmem:[%s13234_s1 + $0x428] ss:$28 sps:$4 sm:$0xff]   ;;  %v8839_v19 = vld [vmem:[%s13234_s1 + $0x460] ss:$28 sps:$4 sm:$0xff]   ;;  %v8845_v23 = vld [vmem:[%s13234_s1 + $0x498] ss:$28 sps:$4 sm:$0xff]  }
   0x9   :  { %4617 = vmatpush1.bf16.msra.mxu0 %v8821_v7  ;;  %4577 = vmatprep.subr.bf16.mxu1 %v8822_v8  ;;  %v8846_v24 = vld [vmem:[%s13234_s1 + $0x154] ss:$28 sps:$4 sm:$0xff]   ;;  %v8852_v28 = vld [vmem:[%s13234_s1 + $0x18c] ss:$28 sps:$4 sm:$0xff]   ;;  %v8858_v32 = vld [vmem:[%s13234_s1 + $0x1c4] ss:$28 sps:$4 sm:$0xff]  }
   0xa   :  { %4618 = vmatprep.subr.bf16.mxu0 %v8824_v9  ;;  %v8848_v25 = vld [vmem:[%s13234_s1 + $0x4d4] ss:$28 sps:$4 sm:$0xff]   ;;  %v8854_v29 = vld [vmem:[%s13234_s1 + $0x50c] ss:$28 sps:$4 sm:$0xff]   ;;  %v8860_v33 = vld [vmem:[%s13234_s1 + $0x544] ss:$28 sps:$4 sm:$0xff]  }
   0xb   :  { %v8850_v26 = vld [vmem:[%s13234_s1 + $0x150] ss:$28 sps:$4 sm:$0xff]   ;;  %v8856_v30 = vld [vmem:[%s13234_s1 + $0x188] ss:$28 sps:$4 sm:$0xff]   ;;  %v8862_v34 = vld [vmem:[%s13234_s1 + $0x1c0] ss:$28 sps:$4 sm:$0xff]  }
   0xc   :  { %4578 = vmatpush1.bf16.msra.mxu1 %v8826_v10  ;;  %v8851_v27 = vld [vmem:[%s13234_s1 + $0x4d0] ss:$28 sps:$4 sm:$0xff]   ;;  %v8857_v31 = vld [vmem:[%s13234_s1 + $0x508] ss:$28 sps:$4 sm:$0xff]   ;;  %v8863_v35 = vld [vmem:[%s13234_s1 + $0x540] ss:$28 sps:$4 sm:$0xff]  }
   0xd   :  { %4619 = vmatpush1.bf16.msra.mxu0 %v8827_v11  ;;  %4579 = vmatprep.subr.bf16.mxu1 %v8828_v12  ;;  %v8864_v39 = vld [vmem:[%s13234_s1 + $0x1fc] ss:$28 sps:$4 sm:$0xff]   ;;  %v10326_v42 = vshrl.u32 %v832_v36, 7  ;;  %v8870_v45 = vld [vmem:[%s13234_s1 + $0x234] ss:$28 sps:$4 sm:$0xff]   ;;  %v28_v52 = vld [vmem:[%s13233_s0] sm:$0xff] }
   0xe   :  { %4620 = vmatprep.subr.bf16.mxu0 %v8830_v13  ;;  %v8866_v40 = vld [vmem:[%s13234_s1 + $0x57c] ss:$28 sps:$4 sm:$0xff]   ;;  %v8872_v46 = vld [vmem:[%s13234_s1 + $0x5b4] ss:$28 sps:$4 sm:$0xff]   ;;  %v8876_v50 = vld [vmem:[%s13234_s1 + $0x26c] ss:$28 sps:$4 sm:$0xff]   ;;  %v869_v5 = vcombine.high %v28_v52, %v28_v52 }
   0xf   :  { %v8868_v41 = vld [vmem:[%s13234_s1 + $0x1f8] ss:$28 sps:$4 sm:$0xff]   ;;  %v8874_v47 = vld [vmem:[%s13234_s1 + $0x230] ss:$28 sps:$4 sm:$0xff]   ;;  %v10344_v49 = vsub.s32 %v872_v43, %v10326_v42  ;;  %v8880_v53 = vld [vmem:[%s13234_s1 + $0x268] ss:$28 sps:$4 sm:$0xff]  }
  0x10   :  { %4580 = vmatpush1.bf16.msra.mxu1 %v8832_v14  ;;  %v8869_v44 = vld [vmem:[%s13234_s1 + $0x578] ss:$28 sps:$4 sm:$0xff]   ;;  %v8875_v48 = vld [vmem:[%s13234_s1 + $0x5b0] ss:$28 sps:$4 sm:$0xff]   ;;  %v8881_v55 = vld [vmem:[%s13234_s1 + $0x5e8] ss:$28 sps:$4 sm:$0xff]  }
  0x11   :  { %4621 = vmatpush1.bf16.msra.mxu0 %v8833_v15  ;;  %4581 = vmatprep.subr.bf16.mxu1 %v8834_v16  ;;  %v8878_v51 = vld [vmem:[%s13234_s1 + $0x5ec] ss:$28 sps:$4 sm:$0xff]   ;;  %v876_v54 = vrot.slane %v28_v52, %v10344_v49  ;;  %v8882_v56 = vld [vmem:[%s13234_s1 + $0x2a4] ss:$28 sps:$4 sm:$0xff]   ;;  %v8888_v62 = vld [vmem:[%s13234_s1 + $0x2dc] ss:$28 sps:$4 sm:$0xff]   ;;  %v10414_v10 = vrot.slane %v869_v5, %v10344_v49 }
  0x12   :  { %4622 = vmatprep.subr.bf16.mxu0 %v8836_v17  ;;  %v8884_v57 = vld [vmem:[%s13234_s1 + $0x624] ss:$28 sps:$4 sm:$0xff]   ;;  %v8890_v63 = vld [vmem:[%s13234_s1 + $0x65c] ss:$28 sps:$4 sm:$0xff]   ;;  %v8894_v3 = vld [vmem:[%s13234_s1 + $0x314] ss:$28 sps:$4 sm:$0xff]  }
  0x13   :  { %v884_v58 = vcombine.high %v876_v54, %v876_v54  ;;  %v8886_v59 = vld [vmem:[%s13234_s1 + $0x2a0] ss:$28 sps:$4 sm:$0xff]   ;;  %v8892_v1 = vld [vmem:[%s13234_s1 + $0x2d8] ss:$28 sps:$4 sm:$0xff]   ;;  %v8898_v6 = vld [vmem:[%s13234_s1 + $0x310] ss:$28 sps:$4 sm:$0xff]   ;;  %v10420_v12 = vrot.slane %v876_v54, %v10344_v49  ;;  %v885_v16 = vcombine.high %v10414_v10, %v10414_v10 }
  0x14   :  { %4582 = vmatpush1.bf16.msra.mxu1 %v8838_v18  ;;  %v8887_v61 = vld [vmem:[%s13234_s1 + $0x620] ss:$28 sps:$4 sm:$0xff]   ;;  %v8893_v2 = vld [vmem:[%s13234_s1 + $0x658] ss:$28 sps:$4 sm:$0xff]   ;;  %v8899_v7 = vld [vmem:[%s13234_s1 + $0x690] ss:$28 sps:$4 sm:$0xff]  }
  0x15   :  { %4623 = vmatpush1.bf16.msra.mxu0 %v8839_v19  ;;  %4583 = vmatprep.subr.bf16.mxu1 %v8840_v20  ;;  %v10372_v60 = vrot.slane %v884_v58, %v10344_v49  ;;  %v8896_v4 = vld [vmem:[%s13234_s1 + $0x694] ss:$28 sps:$4 sm:$0xff]   ;;  %v8900_v8 = vld [vmem:[%s13234_s1 + $0x34c] ss:$28 sps:$4 sm:$0xff]   ;;  %v8908_v14 = vld [vmem:[%s13234_s1 + $0x704] ss:$28 sps:$4 sm:$0xff]   ;;  %v10438_v18 = vcombine.high %v10420_v12, %v10420_v12 }
  0x16   :  { %4624 = vmatprep.subr.bf16.mxu0 %v8842_v21  ;;  %v8902_v9 = vld [vmem:[%s13234_s1 + $0x6cc] ss:$28 sps:$4 sm:$0xff]   ;;  %v8906_v17 = vld [vmem:[%s13234_s1 + $0x700] ss:$28 sps:$4 sm:$0xff]  }
  0x17   :  { %v10385_v0 = vcombine.high %v10372_v60, %v10372_v60  ;;  %4605 = vmatprep.mubr.bf16.mxu1 %v10372_v60  ;;  %v8904_v11 = vld [vmem:[%s13234_s1 + $0x348] ss:$28 sps:$4 sm:$0xff]   ;;  %v8914_v20 = vld [vmem:[%s13234_s1 + $0x73c] ss:$28 sps:$4 sm:$0xff]  }
  0x18   :  { %4584 = vmatpush1.bf16.msra.mxu1 %v8844_v22  ;;  %v8905_v13 = vld [vmem:[%s13234_s1 + $0x6c8] ss:$28 sps:$4 sm:$0xff]   ;;  %v10450_v22 = vrot.slane %v885_v16, %v10344_v49  ;;  %v8938_v37 = vld [vmem:[%s13234_s1 + $0x81c] ss:$28 sps:$4 sm:$0xff]  }
  0x19   :  { %4625 = vmatpush1.bf16.msra.mxu0 %v8845_v23  ;;  %4585 = vmatprep.subr.bf16.mxu1 %v8846_v24  ;;  %v8911_v15 = vld [vmem:[%s13234_s1 + $0xc] ss:$28 sps:$4 sm:$0xff]   ;;  %v8917_v21 = vld [vmem:[%s13234_s1 + $0x44] ss:$28 sps:$4 sm:$0xff]   ;;  %v8912_v23 = vld [vmem:[%s13234_s1 + $0x738] ss:$28 sps:$4 sm:$0xff]  }
  0x1a   :  { %4626 = vmatprep.subr.bf16.mxu0 %v8848_v25  ;;  %4646 = vmatprep.mubr.bf16.mxu0 %v10385_v0  ;;  %v8909_v19 = vld [vmem:[%s13234_s1 + $0x8] ss:$28 sps:$4 sm:$0xff]   ;;  %v8915_v24 = vld [vmem:[%s13234_s1 + $0x40] ss:$28 sps:$4 sm:$0xff]   ;;  %v8920_v25 = vld [vmem:[%s13234_s1 + $0x774] ss:$28 sps:$4 sm:$0xff]  }
  0x1b   :  { %v8933_v36 = vld [vmem:[%s13234_s1 + $0xe8] ss:$28 sps:$4 sm:$0xff]   ;;  %v8947_v43 = vld [vmem:[%s13234_s1 + $0x15c] ss:$28 sps:$4 sm:$0xff]  }
  0x1c   :  { %4586 = vmatpush1.bf16.msra.mxu1 %v8850_v26  ;;  %v8923_v26 = vld [vmem:[%s13234_s1 + $0x7c] ss:$28 sps:$4 sm:$0xff]   ;;  %v8941_v38 = vld [vmem:[%s13234_s1 + $0x124] ss:$28 sps:$4 sm:$0xff]   ;;  %v8959_v52 = vld [vmem:[%s13234_s1 + $0x1cc] ss:$28 sps:$4 sm:$0xff]  }
  0x1d   :  { %4627 = vmatpush1.bf16.msra.mxu0 %v8851_v27  ;;  %4587 = vmatprep.subr.bf16.mxu1 %v8852_v28  ;;  %v8918_v27 = vld [vmem:[%s13234_s1 + $0x770] ss:$28 sps:$4 sm:$0xff]   ;;  %v8921_v28 = vld [vmem:[%s13234_s1 + $0x78] ss:$28 sps:$4 sm:$0xff]   ;;  %v8957_v54 = vld [vmem:[%s13234_s1 + $0x1c8] ss:$28 sps:$4 sm:$0xff]  }
  0x1e   :  { %4628 = vmatprep.subr.bf16.mxu0 %v8854_v29  ;;  %v8926_v29 = vld [vmem:[%s13234_s1 + $0x7ac] ss:$28 sps:$4 sm:$0xff]   ;;  %v8963_v58 = vld [vmem:[%s13234_s1 + $0x200] ss:$28 sps:$4 sm:$0xff]  }
  0x1f   :  { %v8980_v5 = vld [vmem:[%s13234_s1 + $0x9a4] ss:$28 sps:$4 sm:$0xff]   ;;  %v8995_v16 = vld [vmem:[%s13234_s1 + $0x31c] ss:$28 sps:$4 sm:$0xff]  }
  0x20   :  { %4588 = vmatpush1.bf16.msra.mxu1 %v8856_v30  ;;  %v8929_v30 = vld [vmem:[%s13234_s1 + $0xb4] ss:$28 sps:$4 sm:$0xff]  }
  0x21   :  { %4629 = vmatpush1.bf16.msra.mxu0 %v8857_v31  ;;  %4589 = vmatprep.subr.bf16.mxu1 %v8858_v32  ;;  %v8924_v31 = vld [vmem:[%s13234_s1 + $0x7a8] ss:$28 sps:$4 sm:$0xff]   ;;  %v8927_v32 = vld [vmem:[%s13234_s1 + $0xb0] ss:$28 sps:$4 sm:$0xff]  }
  0x22   :  { %4630 = vmatprep.subr.bf16.mxu0 %v8860_v33  ;;  %v8932_v33 = vld [vmem:[%s13234_s1 + $0x7e4] ss:$28 sps:$4 sm:$0xff]  }
  0x24   :  { %4590 = vmatpush1.bf16.msra.mxu1 %v8862_v34  ;;  %v8935_v34 = vld [vmem:[%s13234_s1 + $0xec] ss:$28 sps:$4 sm:$0xff]  }
  0x25   :  { %4631 = vmatpush1.bf16.msra.mxu0 %v8863_v35  ;;  %4591 = vmatprep.subr.bf16.mxu1 %v8864_v39  ;;  %v8930_v35 = vld [vmem:[%s13234_s1 + $0x7e0] ss:$28 sps:$4 sm:$0xff]   ;;  %v8936_v39 = vld [vmem:[%s13234_s1 + $0x818] ss:$28 sps:$4 sm:$0xff]  }
  0x26   :  { %4632 = vmatprep.subr.bf16.mxu0 %v8866_v40  ;;  %v8939_v40 = vld [vmem:[%s13234_s1 + $0x120] ss:$28 sps:$4 sm:$0xff]  }
  0x28   :  { %4592 = vmatpush1.bf16.msra.mxu1 %v8868_v41  ;;  %v8944_v41 = vld [vmem:[%s13234_s1 + $0x854] ss:$28 sps:$4 sm:$0xff]  }
  0x29   :  { %4633 = vmatpush1.bf16.msra.mxu0 %v8869_v44  ;;  %4593 = vmatprep.subr.bf16.mxu1 %v8870_v45  ;;  %v8942_v44 = vld [vmem:[%s13234_s1 + $0x850] ss:$28 sps:$4 sm:$0xff]   ;;  %v8945_v45 = vld [vmem:[%s13234_s1 + $0x158] ss:$28 sps:$4 sm:$0xff]  }
  0x2a   :  { %4634 = vmatprep.subr.bf16.mxu0 %v8872_v46  ;;  %v8950_v46 = vld [vmem:[%s13234_s1 + $0x88c] ss:$28 sps:$4 sm:$0xff]  }
  0x2c   :  { %4594 = vmatpush1.bf16.msra.mxu1 %v8874_v47  ;;  %v8953_v47 = vld [vmem:[%s13234_s1 + $0x194] ss:$28 sps:$4 sm:$0xff]  }
  0x2d   :  { %4635 = vmatpush1.bf16.msra.mxu0 %v8875_v48  ;;  %4595 = vmatprep.subr.bf16.mxu1 %v8876_v50  ;;  %v8948_v48 = vld [vmem:[%s13234_s1 + $0x888] ss:$28 sps:$4 sm:$0xff]   ;;  %v8951_v50 = vld [vmem:[%s13234_s1 + $0x190] ss:$28 sps:$4 sm:$0xff]  }
  0x2e   :  { %4636 = vmatprep.subr.bf16.mxu0 %v8878_v51  ;;  %v8956_v51 = vld [vmem:[%s13234_s1 + $0x8c4] ss:$28 sps:$4 sm:$0xff]  }
  0x30   :  { %4596 = vmatpush1.bf16.msra.mxu1 %v8880_v53  ;;  %v8954_v53 = vld [vmem:[%s13234_s1 + $0x8c0] ss:$28 sps:$4 sm:$0xff]  }
  0x31   :  { %4637 = vmatpush1.bf16.msra.mxu0 %v8881_v55  ;;  %4597 = vmatprep.subr.bf16.mxu1 %v8882_v56  ;;  %v8962_v55 = vld [vmem:[%s13234_s1 + $0x8fc] ss:$28 sps:$4 sm:$0xff]   ;;  %v8965_v56 = vld [vmem:[%s13234_s1 + $0x204] ss:$28 sps:$4 sm:$0xff]  }
  0x32   :  { %4638 = vmatprep.subr.bf16.mxu0 %v8884_v57  ;;  %v8960_v57 = vld [vmem:[%s13234_s1 + $0x8f8] ss:$28 sps:$4 sm:$0xff]  }
  0x34   :  { %4598 = vmatpush1.bf16.msra.mxu1 %v8886_v59  ;;  %v8968_v59 = vld [vmem:[%s13234_s1 + $0x934] ss:$28 sps:$4 sm:$0xff]  }
  0x35   :  { %4639 = vmatpush1.bf16.msra.mxu0 %v8887_v61  ;;  %4599 = vmatprep.subr.bf16.mxu1 %v8888_v62  ;;  %v8971_v61 = vld [vmem:[%s13234_s1 + $0x23c] ss:$28 sps:$4 sm:$0xff]   ;;  %v8966_v62 = vld [vmem:[%s13234_s1 + $0x930] ss:$28 sps:$4 sm:$0xff]  }
  0x36   :  { %4640 = vmatprep.subr.bf16.mxu0 %v8890_v63  ;;  %v8969_v63 = vld [vmem:[%s13234_s1 + $0x238] ss:$28 sps:$4 sm:$0xff]  }
  0x38   :  { %4600 = vmatpush1.bf16.msra.mxu1 %v8892_v1  ;;  %v8974_v1 = vld [vmem:[%s13234_s1 + $0x96c] ss:$28 sps:$4 sm:$0xff]  }
  0x39   :  { %4641 = vmatpush1.bf16.msra.mxu0 %v8893_v2  ;;  %4601 = vmatprep.subr.bf16.mxu1 %v8894_v3  ;;  %v8977_v2 = vld [vmem:[%s13234_s1 + $0x274] ss:$28 sps:$4 sm:$0xff]   ;;  %v8972_v3 = vld [vmem:[%s13234_s1 + $0x968] ss:$28 sps:$4 sm:$0xff]  }
  0x3a   :  { %4642 = vmatprep.subr.bf16.mxu0 %v8896_v4  ;;  %v8975_v4 = vld [vmem:[%s13234_s1 + $0x270] ss:$28 sps:$4 sm:$0xff]  }
  0x3c   :  { %4602 = vmatpush1.bf16.msra.mxu1 %v8898_v6  ;;  %v8983_v6 = vld [vmem:[%s13234_s1 + $0x2ac] ss:$28 sps:$4 sm:$0xff]  }
  0x3d   :  { %4643 = vmatpush1.bf16.msra.mxu0 %v8899_v7  ;;  %4603 = vmatprep.subr.bf16.mxu1 %v8900_v8  ;;  %v8978_v7 = vld [vmem:[%s13234_s1 + $0x9a0] ss:$28 sps:$4 sm:$0xff]   ;;  %v8981_v8 = vld [vmem:[%s13234_s1 + $0x2a8] ss:$28 sps:$4 sm:$0xff]  }
  0x3e   :  { %4644 = vmatprep.subr.bf16.mxu0 %v8902_v9  ;;  %v8986_v9 = vld [vmem:[%s13234_s1 + $0x9dc] ss:$28 sps:$4 sm:$0xff]  }
  0x40   :  { %4604 = vmatpush1.bf16.msra.mxu1 %v8904_v11  ;;  %v8989_v11 = vld [vmem:[%s13234_s1 + $0x2e4] ss:$28 sps:$4 sm:$0xff]  }
  0x41   :  { %4645 = vmatpush1.bf16.msra.mxu0 %v8905_v13  ;;  %4860 = vmatprep.subr.bf16.mxu1 %v8911_v15  ;;  %v8984_v13 = vld [vmem:[%s13234_s1 + $0x9d8] ss:$28 sps:$4 sm:$0xff]  }
  0x42   :  { %4655 = vmatprep.subr.bf16.mxu0 %v8908_v14  ;;  %v8987_v14 = vld [vmem:[%s13234_s1 + $0x2e0] ss:$28 sps:$4 sm:$0xff]   ;;  %v8992_v15 = vld [vmem:[%s13234_s1 + $0xa14] ss:$28 sps:$4 sm:$0xff]  }
  0x43   :  { %4606 = vmatmul.mubr.bf16.vlgmr.msra.gmra.mrb[0].mxu1 %v10420_v12 }
  0x44   :  { %4647 = vmatmul.mubr.bf16.vlgmr.msra.gmra.mrb[0].mxu0 %v10438_v18  ;;  %4861 = vmatpush1.bf16.msra.mxu1 %v8909_v19  ;;  %v8993_v19 = vld [vmem:[%s13234_s1 + $0x318] ss:$28 sps:$4 sm:$0xff]  }
  0x45   :  { %4656 = vmatpush1.bf16.msra.mxu0 %v8906_v17  ;;  %4862 = vmatprep.subr.bf16.mxu1 %v8917_v21  ;;  %v8990_v17 = vld [vmem:[%s13234_s1 + $0xa10] ss:$28 sps:$4 sm:$0xff]  }
  0x46   :  { %4657 = vmatprep.subr.bf16.mxu0 %v8914_v20  ;;  %4687 = vmatprep.mubr.bf16.mxu0 %v10450_v22  ;;  %v8998_v20 = vld [vmem:[%s13234_s1 + $0xa4c] ss:$28 sps:$4 sm:$0xff]   ;;  %v9001_v21 = vld [vmem:[%s13234_s1 + $0x354] ss:$28 sps:$4 sm:$0xff]  }
  0x47   :  { %4892 = vmatprep.mubr.bf16.mxu1 %v10372_v60 }
  0x48   :  { %4863 = vmatpush1.bf16.msra.mxu1 %v8915_v24  ;;  %v8999_v24 = vld [vmem:[%s13234_s1 + $0x350] ss:$28 sps:$4 sm:$0xff]  }
  0x49   :  { %4658 = vmatpush1.bf16.msra.mxu0 %v8912_v23  ;;  %4864 = vmatprep.subr.bf16.mxu1 %v8923_v26  ;;  %v8996_v23 = vld [vmem:[%s13234_s1 + $0xa48] ss:$28 sps:$4 sm:$0xff]  }
  0x4a   :  { %4659 = vmatprep.subr.bf16.mxu0 %v8920_v25  ;;  %v9005_v25 = vld [vmem:[%s13234_s1 + $0xa84] ss:$28 sps:$4 sm:$0xff]   ;;  %v9008_v26 = vld [vmem:[%s13234_s1 + $0x38c] ss:$28 sps:$4 sm:$0xff]  }
  0x4c   :  { %4865 = vmatpush1.bf16.msra.mxu1 %v8921_v28  ;;  %v10641_v28 = vrot.slane %v10414_v10, %v10344_v49  ;;  %v10654_v10 = vcombine.high %v10450_v22, %v10450_v22 }
  0x4d   :  { %4660 = vmatpush1.bf16.msra.mxu0 %v8918_v27  ;;  %4866 = vmatprep.subr.bf16.mxu1 %v8929_v30  ;;  %v9003_v27 = vld [vmem:[%s13234_s1 + $0xa80] ss:$28 sps:$4 sm:$0xff]  }
  0x4e   :  { %4661 = vmatprep.subr.bf16.mxu0 %v8926_v29  ;;  %v9006_v29 = vld [vmem:[%s13234_s1 + $0x388] ss:$28 sps:$4 sm:$0xff]   ;;  %v9011_v30 = vld [vmem:[%s13234_s1 + $0xabc] ss:$28 sps:$4 sm:$0xff]  }
  0x50   :  { %4867 = vmatpush1.bf16.msra.mxu1 %v8927_v32  ;;  %v9009_v32 = vld [vmem:[%s13234_s1 + $0xab8] ss:$28 sps:$4 sm:$0xff]  }
  0x51   :  { %4662 = vmatpush1.bf16.msra.mxu0 %v8924_v31  ;;  %4868 = vmatprep.subr.bf16.mxu1 %v8935_v34  ;;  %v9014_v31 = vld [vmem:[%s13234_s1 + $0x3c4] ss:$28 sps:$4 sm:$0xff]   ;;  %v9017_v34 = vld [vmem:[%s13234_s1 + $0xaf4] ss:$28 sps:$4 sm:$0xff]  }
  0x52   :  { %4663 = vmatprep.subr.bf16.mxu0 %v8932_v33  ;;  %v9012_v33 = vld [vmem:[%s13234_s1 + $0x3c0] ss:$28 sps:$4 sm:$0xff]  }
  0x54   :  { %4869 = vmatpush1.bf16.msra.mxu1 %v8933_v36  ;;  %v9015_v36 = vld [vmem:[%s13234_s1 + $0xaf0] ss:$28 sps:$4 sm:$0xff]  }
  0x55   :  { %4664 = vmatpush1.bf16.msra.mxu0 %v8930_v35  ;;  %4870 = vmatprep.subr.bf16.mxu1 %v8941_v38  ;;  %v9020_v35 = vld [vmem:[%s13234_s1 + $0x3fc] ss:$28 sps:$4 sm:$0xff]   ;;  %v9023_v38 = vld [vmem:[%s13234_s1 + $0xb2c] ss:$28 sps:$4 sm:$0xff]  }
  0x56   :  { %4665 = vmatprep.subr.bf16.mxu0 %v8938_v37  ;;  %v9018_v37 = vld [vmem:[%s13234_s1 + $0x3f8] ss:$28 sps:$4 sm:$0xff]  }
  0x58   :  { %4871 = vmatpush1.bf16.msra.mxu1 %v8939_v40  ;;  %v9021_v40 = vld [vmem:[%s13234_s1 + $0xb28] ss:$28 sps:$4 sm:$0xff]  }
  0x59   :  { %4666 = vmatpush1.bf16.msra.mxu0 %v8936_v39  ;;  %4872 = vmatprep.subr.bf16.mxu1 %v8947_v43  ;;  %v9026_v39 = vld [vmem:[%s13234_s1 + $0x434] ss:$28 sps:$4 sm:$0xff]   ;;  %v9029_v43 = vld [vmem:[%s13234_s1 + $0xb64] ss:$28 sps:$4 sm:$0xff]  }
  0x5a   :  { %4667 = vmatprep.subr.bf16.mxu0 %v8944_v41  ;;  %v9024_v41 = vld [vmem:[%s13234_s1 + $0x430] ss:$28 sps:$4 sm:$0xff]  }
  0x5c   :  { %4873 = vmatpush1.bf16.msra.mxu1 %v8945_v45  ;;  %v9027_v45 = vld [vmem:[%s13234_s1 + $0xb60] ss:$28 sps:$4 sm:$0xff]  }
  0x5d   :  { %4668 = vmatpush1.bf16.msra.mxu0 %v8942_v44  ;;  %4874 = vmatprep.subr.bf16.mxu1 %v8953_v47  ;;  %v9032_v44 = vld [vmem:[%s13234_s1 + $0x46c] ss:$28 sps:$4 sm:$0xff]   ;;  %v9035_v47 = vld [vmem:[%s13234_s1 + $0xb9c] ss:$28 sps:$4 sm:$0xff]  }
  0x5e   :  { %4669 = vmatprep.subr.bf16.mxu0 %v8950_v46  ;;  %v9030_v46 = vld [vmem:[%s13234_s1 + $0x468] ss:$28 sps:$4 sm:$0xff]  }
  0x60   :  { %4875 = vmatpush1.bf16.msra.mxu1 %v8951_v50  ;;  %v9033_v50 = vld [vmem:[%s13234_s1 + $0xb98] ss:$28 sps:$4 sm:$0xff]  }
  0x61   :  { %4670 = vmatpush1.bf16.msra.mxu0 %v8948_v48  ;;  %4876 = vmatprep.subr.bf16.mxu1 %v8959_v52  ;;  %v9038_v48 = vld [vmem:[%s13234_s1 + $0x4a4] ss:$28 sps:$4 sm:$0xff]   ;;  %v9041_v52 = vld [vmem:[%s13234_s1 + $0xbd4] ss:$28 sps:$4 sm:$0xff]  }
  0x62   :  { %4671 = vmatprep.subr.bf16.mxu0 %v8956_v51  ;;  %v9036_v51 = vld [vmem:[%s13234_s1 + $0x4a0] ss:$28 sps:$4 sm:$0xff]  }
  0x64   :  { %4877 = vmatpush1.bf16.msra.mxu1 %v8957_v54  ;;  %v9039_v54 = vld [vmem:[%s13234_s1 + $0xbd0] ss:$28 sps:$4 sm:$0xff]  }
  0x65   :  { %4672 = vmatpush1.bf16.msra.mxu0 %v8954_v53  ;;  %4878 = vmatprep.subr.bf16.mxu1 %v8965_v56  ;;  %v9044_v53 = vld [vmem:[%s13234_s1 + $0x4dc] ss:$28 sps:$4 sm:$0xff]   ;;  %v9047_v56 = vld [vmem:[%s13234_s1 + $0xc0c] ss:$28 sps:$4 sm:$0xff]  }
  0x66   :  { %4673 = vmatprep.subr.bf16.mxu0 %v8962_v55  ;;  %v9042_v55 = vld [vmem:[%s13234_s1 + $0x4d8] ss:$28 sps:$4 sm:$0xff]  }
  0x68   :  { %4879 = vmatpush1.bf16.msra.mxu1 %v8963_v58  ;;  %v9045_v58 = vld [vmem:[%s13234_s1 + $0xc08] ss:$28 sps:$4 sm:$0xff]  }
  0x69   :  { %4674 = vmatpush1.bf16.msra.mxu0 %v8960_v57  ;;  %4880 = vmatprep.subr.bf16.mxu1 %v8971_v61  ;;  %v9050_v57 = vld [vmem:[%s13234_s1 + $0x514] ss:$28 sps:$4 sm:$0xff]   ;;  %v9053_v61 = vld [vmem:[%s13234_s1 + $0xc44] ss:$28 sps:$4 sm:$0xff]  }
  0x6a   :  { %4675 = vmatprep.subr.bf16.mxu0 %v8968_v59  ;;  %v9048_v59 = vld [vmem:[%s13234_s1 + $0x510] ss:$28 sps:$4 sm:$0xff]  }
  0x6c   :  { %4881 = vmatpush1.bf16.msra.mxu1 %v8969_v63  ;;  %v9051_v63 = vld [vmem:[%s13234_s1 + $0xc40] ss:$28 sps:$4 sm:$0xff]  }
  0x6d   :  { %4676 = vmatpush1.bf16.msra.mxu0 %v8966_v62  ;;  %4882 = vmatprep.subr.bf16.mxu1 %v8977_v2  ;;  %v9056_v62 = vld [vmem:[%s13234_s1 + $0x54c] ss:$28 sps:$4 sm:$0xff]   ;;  %v9059_v2 = vld [vmem:[%s13234_s1 + $0xc7c] ss:$28 sps:$4 sm:$0xff]  }
  0x6e   :  { %4677 = vmatprep.subr.bf16.mxu0 %v8974_v1  ;;  %v9054_v1 = vld [vmem:[%s13234_s1 + $0x548] ss:$28 sps:$4 sm:$0xff]  }
  0x70   :  { %4883 = vmatpush1.bf16.msra.mxu1 %v8975_v4  ;;  %v9057_v4 = vld [vmem:[%s13234_s1 + $0xc78] ss:$28 sps:$4 sm:$0xff]  }
  0x71   :  { %4678 = vmatpush1.bf16.msra.mxu0 %v8972_v3  ;;  %4884 = vmatprep.subr.bf16.mxu1 %v8983_v6  ;;  %v9062_v3 = vld [vmem:[%s13234_s1 + $0x584] ss:$28 sps:$4 sm:$0xff]   ;;  %v9065_v6 = vld [vmem:[%s13234_s1 + $0xcb4] ss:$28 sps:$4 sm:$0xff]  }
  0x72   :  { %4679 = vmatprep.subr.bf16.mxu0 %v8980_v5  ;;  %v9060_v5 = vld [vmem:[%s13234_s1 + $0x580] ss:$28 sps:$4 sm:$0xff]  }
  0x74   :  { %4885 = vmatpush1.bf16.msra.mxu1 %v8981_v8  ;;  %v9063_v8 = vld [vmem:[%s13234_s1 + $0xcb0] ss:$28 sps:$4 sm:$0xff]  }
  0x75   :  { %4680 = vmatpush1.bf16.msra.mxu0 %v8978_v7  ;;  %4886 = vmatprep.subr.bf16.mxu1 %v8989_v11  ;;  %v9068_v7 = vld [vmem:[%s13234_s1 + $0x5bc] ss:$28 sps:$4 sm:$0xff]   ;;  %v9071_v11 = vld [vmem:[%s13234_s1 + $0xcec] ss:$28 sps:$4 sm:$0xff]  }
  0x76   :  { %4681 = vmatprep.subr.bf16.mxu0 %v8986_v9  ;;  %v9066_v9 = vld [vmem:[%s13234_s1 + $0x5b8] ss:$28 sps:$4 sm:$0xff]  }
  0x78   :  { %4887 = vmatpush1.bf16.msra.mxu1 %v8987_v14  ;;  %v9069_v14 = vld [vmem:[%s13234_s1 + $0xce8] ss:$28 sps:$4 sm:$0xff]  }
  0x79   :  { %4682 = vmatpush1.bf16.msra.mxu0 %v8984_v13  ;;  %4888 = vmatprep.subr.bf16.mxu1 %v8995_v16  ;;  %v9074_v13 = vld [vmem:[%s13234_s1 + $0x5f4] ss:$28 sps:$4 sm:$0xff]   ;;  %v9077_v16 = vld [vmem:[%s13234_s1 + $0xd24] ss:$28 sps:$4 sm:$0xff]  }
  0x7a   :  { %4683 = vmatprep.subr.bf16.mxu0 %v8992_v15  ;;  %v9072_v15 = vld [vmem:[%s13234_s1 + $0x5f0] ss:$28 sps:$4 sm:$0xff]  }
  0x7c   :  { %4889 = vmatpush1.bf16.msra.mxu1 %v8993_v19  ;;  %v9075_v19 = vld [vmem:[%s13234_s1 + $0xd20] ss:$28 sps:$4 sm:$0xff]  }
  0x7d   :  { %4684 = vmatpush1.bf16.msra.mxu0 %v8990_v17  ;;  %4890 = vmatprep.subr.bf16.mxu1 %v9001_v21  ;;  %v9080_v17 = vld [vmem:[%s13234_s1 + $0x62c] ss:$28 sps:$4 sm:$0xff]   ;;  %v9083_v21 = vld [vmem:[%s13234_s1 + $0xd5c] ss:$28 sps:$4 sm:$0xff]  }
  0x7e   :  { %4685 = vmatprep.subr.bf16.mxu0 %v8998_v20  ;;  %v9078_v20 = vld [vmem:[%s13234_s1 + $0x628] ss:$28 sps:$4 sm:$0xff]  }
  0x80   :  { %4891 = vmatpush1.bf16.msra.mxu1 %v8999_v24  ;;  %v9081_v24 = vld [vmem:[%s13234_s1 + $0xd58] ss:$28 sps:$4 sm:$0xff]  }
  0x81   :  { %4686 = vmatpush1.bf16.msra.mxu0 %v8996_v23  ;;  %4901 = vmatprep.subr.bf16.mxu1 %v9008_v26  ;;  %v9086_v23 = vld [vmem:[%s13234_s1 + $0x664] ss:$28 sps:$4 sm:$0xff]   ;;  %v9089_v26 = vld [vmem:[%s13234_s1 + $0xd94] ss:$28 sps:$4 sm:$0xff]  }
  0x82   :  { %4696 = vmatprep.subr.bf16.mxu0 %v9005_v25  ;;  %v9084_v25 = vld [vmem:[%s13234_s1 + $0x660] ss:$28 sps:$4 sm:$0xff]  }
  0x83   :  { %4893 = vmatmul.mubr.bf16.vlgmr.msra.gmra.mrb[4].mxu1 %v10420_v12 }
  0x84   :  { %4688 = vmatmul.mubr.bf16.vlgmr.msra.gmra.mrb[0].mxu0 %v10641_v28  ;;  %4902 = vmatpush1.bf16.msra.mxu1 %v9006_v29  ;;  %v10819_v29 = vld.sshfl [vmem:[%s13233_s0 + $0x8] sm:$0x37 pattern:$0x75316420] }
  0x85   :  { %4697 = vmatpush1.bf16.msra.mxu0 %v9003_v27  ;;  %4903 = vmatprep.subr.bf16.mxu1 %v9014_v31  ;;  %v9092_v27 = vld [vmem:[%s13234_s1 + $0x69c] ss:$28 sps:$4 sm:$0xff]  }
  0x86   :  { %4698 = vmatprep.subr.bf16.mxu0 %v9011_v30  ;;  %4728 = vmatprep.mubr.bf16.mxu0 %v10654_v10  ;;  %v9087_v30 = vld [vmem:[%s13234_s1 + $0xd90] ss:$28 sps:$4 sm:$0xff]   ;;  %v9090_v31 = vld [vmem:[%s13234_s1 + $0x698] ss:$28 sps:$4 sm:$0xff]  }
  0x87   :  { %4933 = vmatprep.mubr.bf16.mxu1 %v10385_v0 }
  0x88   :  { %4904 = vmatpush1.bf16.msra.mxu1 %v9012_v33  ;;  %v9098_v33 = vld [vmem:[%s13234_s1 + $0x6d4] ss:$28 sps:$4 sm:$0xff]  }
  0x89   :  { %4699 = vmatpush1.bf16.msra.mxu0 %v9009_v32  ;;  %4905 = vmatprep.subr.bf16.mxu1 %v9020_v35  ;;  %v9095_v32 = vld [vmem:[%s13234_s1 + $0xdcc] ss:$28 sps:$4 sm:$0xff]  }
  0x8a   :  { %4700 = vmatprep.subr.bf16.mxu0 %v9017_v34  ;;  %v9093_v34 = vld [vmem:[%s13234_s1 + $0xdc8] ss:$28 sps:$4 sm:$0xff]   ;;  %v9096_v35 = vld [vmem:[%s13234_s1 + $0x6d0] ss:$28 sps:$4 sm:$0xff]  }
  0x8c   :  { %4906 = vmatpush1.bf16.msra.mxu1 %v9018_v37  ;;  %v9104_v37 = vld [vmem:[%s13234_s1 + $0x70c] ss:$28 sps:$4 sm:$0xff]  }
  0x8d   :  { %4701 = vmatpush1.bf16.msra.mxu0 %v9015_v36  ;;  %4907 = vmatprep.subr.bf16.mxu1 %v9026_v39  ;;  %v9101_v36 = vld [vmem:[%s13234_s1 + $0xe04] ss:$28 sps:$4 sm:$0xff]   ;;  %v10849_v39 = vcombine.high %v10641_v28, %v10641_v28 }
  0x8e   :  { %4702 = vmatprep.subr.bf16.mxu0 %v9023_v38  ;;  %v933_v38 = vcombine.high %v10819_v29, %v10819_v29 }
  0x90   :  { %4908 = vmatpush1.bf16.msra.mxu1 %v9024_v41  ;;  %v9102_v41 = vld [vmem:[%s13234_s1 + $0x708] ss:$28 sps:$4 sm:$0xff]  }
  0x91   :  { %4703 = vmatpush1.bf16.msra.mxu0 %v9021_v40  ;;  %4909 = vmatprep.subr.bf16.mxu1 %v9032_v44  ;;  %v9099_v40 = vld [vmem:[%s13234_s1 + $0xe00] ss:$28 sps:$4 sm:$0xff]  }
  0x92   :  { %4704 = vmatprep.subr.bf16.mxu0 %v9029_v43  ;;  %v9107_v43 = vld [vmem:[%s13234_s1 + $0xe3c] ss:$28 sps:$4 sm:$0xff]   ;;  %v9110_v44 = vld [vmem:[%s13234_s1 + $0x744] ss:$28 sps:$4 sm:$0xff]  }
  0x94   :  { %4910 = vmatpush1.bf16.msra.mxu1 %v9030_v46  ;;  %v9105_v46 = vld [vmem:[%s13234_s1 + $0xe38] ss:$28 sps:$4 sm:$0xff]  }
  0x95   :  { %4705 = vmatpush1.bf16.msra.mxu0 %v9027_v45  ;;  %4911 = vmatprep.subr.bf16.mxu1 %v9038_v48  ;;  %v10864_v45 = vrot.slane %v933_v38, %v10344_v49  ;;  %v9113_v48 = vld [vmem:[%s13234_s1 + $0xe74] ss:$28 sps:$4 sm:$0xff]   ;;  %v9182_v38 = vld [vmem:[%s13234_s1 + $0x9e4] ss:$28 sps:$4 sm:$0xff]  }
  0x96   :  { %4706 = vmatprep.subr.bf16.mxu0 %v9035_v47  ;;  %v9108_v47 = vld [vmem:[%s13234_s1 + $0x740] ss:$28 sps:$4 sm:$0xff]  }
  0x98   :  { %4912 = vmatpush1.bf16.msra.mxu1 %v9036_v51  ;;  %v9111_v51 = vld [vmem:[%s13234_s1 + $0xe70] ss:$28 sps:$4 sm:$0xff]  }
  0x99   :  { %4707 = vmatpush1.bf16.msra.mxu0 %v9033_v50  ;;  %4913 = vmatprep.subr.bf16.mxu1 %v9044_v53  ;;  %v9116_v50 = vld [vmem:[%s13234_s1 + $0x77c] ss:$28 sps:$4 sm:$0xff]   ;;  %v9119_v53 = vld [vmem:[%s13234_s1 + $0xeac] ss:$28 sps:$4 sm:$0xff]  }
  0x9a   :  { %4708 = vmatprep.subr.bf16.mxu0 %v9041_v52  ;;  %v9114_v52 = vld [vmem:[%s13234_s1 + $0x778] ss:$28 sps:$4 sm:$0xff]  }
  0x9c   :  { %4914 = vmatpush1.bf16.msra.mxu1 %v9042_v55  ;;  %v9117_v55 = vld [vmem:[%s13234_s1 + $0xea8] ss:$28 sps:$4 sm:$0xff]  }
  0x9d   :  { %4709 = vmatpush1.bf16.msra.mxu0 %v9039_v54  ;;  %4915 = vmatprep.subr.bf16.mxu1 %v9050_v57  ;;  %v9122_v54 = vld [vmem:[%s13234_s1 + $0x7b4] ss:$28 sps:$4 sm:$0xff]   ;;  %v9125_v57 = vld [vmem:[%s13234_s1 + $0xee4] ss:$28 sps:$4 sm:$0xff]  }
  0x9e   :  { %4710 = vmatprep.subr.bf16.mxu0 %v9047_v56  ;;  %v9120_v56 = vld [vmem:[%s13234_s1 + $0x7b0] ss:$28 sps:$4 sm:$0xff]  }
  0xa0   :  { %4916 = vmatpush1.bf16.msra.mxu1 %v9048_v59  ;;  %v9123_v59 = vld [vmem:[%s13234_s1 + $0xee0] ss:$28 sps:$4 sm:$0xff]  }
  0xa1   :  { %4711 = vmatpush1.bf16.msra.mxu0 %v9045_v58  ;;  %4917 = vmatprep.subr.bf16.mxu1 %v9056_v62  ;;  %v9128_v58 = vld [vmem:[%s13234_s1 + $0x7ec] ss:$28 sps:$4 sm:$0xff]   ;;  %v9131_v62 = vld [vmem:[%s13234_s1 + $0xf1c] ss:$28 sps:$4 sm:$0xff]  }
  0xa2   :  { %4712 = vmatprep.subr.bf16.mxu0 %v9053_v61  ;;  %v9126_v61 = vld [vmem:[%s13234_s1 + $0x7e8] ss:$28 sps:$4 sm:$0xff]  }
  0xa4   :  { %4918 = vmatpush1.bf16.msra.mxu1 %v9054_v1  ;;  %v9129_v1 = vld [vmem:[%s13234_s1 + $0xf18] ss:$28 sps:$4 sm:$0xff]  }
  0xa5   :  { %4713 = vmatpush1.bf16.msra.mxu0 %v9051_v63  ;;  %4919 = vmatprep.subr.bf16.mxu1 %v9062_v3  ;;  %v9134_v63 = vld [vmem:[%s13234_s1 + $0x824] ss:$28 sps:$4 sm:$0xff]   ;;  %v9137_v3 = vld [vmem:[%s13234_s1 + $0xf54] ss:$28 sps:$4 sm:$0xff]  }
  0xa6   :  { %4714 = vmatprep.subr.bf16.mxu0 %v9059_v2  ;;  %v9132_v2 = vld [vmem:[%s13234_s1 + $0x820] ss:$28 sps:$4 sm:$0xff]  }
  0xa8   :  { %4920 = vmatpush1.bf16.msra.mxu1 %v9060_v5  ;;  %v9135_v5 = vld [vmem:[%s13234_s1 + $0xf50] ss:$28 sps:$4 sm:$0xff]  }
  0xa9   :  { %4715 = vmatpush1.bf16.msra.mxu0 %v9057_v4  ;;  %4921 = vmatprep.subr.bf16.mxu1 %v9068_v7  ;;  %v9140_v4 = vld [vmem:[%s13234_s1 + $0x85c] ss:$28 sps:$4 sm:$0xff]   ;;  %v9143_v7 = vld [vmem:[%s13234_s1 + $0xf8c] ss:$28 sps:$4 sm:$0xff]  }
  0xaa   :  { %4716 = vmatprep.subr.bf16.mxu0 %v9065_v6  ;;  %v9138_v6 = vld [vmem:[%s13234_s1 + $0x858] ss:$28 sps:$4 sm:$0xff]  }
  0xac   :  { %4922 = vmatpush1.bf16.msra.mxu1 %v9066_v9  ;;  %v9141_v9 = vld [vmem:[%s13234_s1 + $0xf88] ss:$28 sps:$4 sm:$0xff]  }
  0xad   :  { %4717 = vmatpush1.bf16.msra.mxu0 %v9063_v8  ;;  %4923 = vmatprep.subr.bf16.mxu1 %v9074_v13  ;;  %v9146_v8 = vld [vmem:[%s13234_s1 + $0x894] ss:$28 sps:$4 sm:$0xff]   ;;  %v9149_v13 = vld [vmem:[%s13234_s1 + $0xfc4] ss:$28 sps:$4 sm:$0xff]  }
  0xae   :  { %4718 = vmatprep.subr.bf16.mxu0 %v9071_v11  ;;  %v9144_v11 = vld [vmem:[%s13234_s1 + $0x890] ss:$28 sps:$4 sm:$0xff]  }
  0xb0   :  { %4924 = vmatpush1.bf16.msra.mxu1 %v9072_v15  ;;  %v9147_v15 = vld [vmem:[%s13234_s1 + $0xfc0] ss:$28 sps:$4 sm:$0xff]  }
  0xb1   :  { %4719 = vmatpush1.bf16.msra.mxu0 %v9069_v14  ;;  %4925 = vmatprep.subr.bf16.mxu1 %v9080_v17  ;;  %v9152_v14 = vld [vmem:[%s13234_s1 + $0x8cc] ss:$28 sps:$4 sm:$0xff]   ;;  %v9155_v17 = vld [vmem:[%s13234_s1 + $0xffc] ss:$28 sps:$4 sm:$0xff]  }
  0xb2   :  { %4720 = vmatprep.subr.bf16.mxu0 %v9077_v16  ;;  %v9150_v16 = vld [vmem:[%s13234_s1 + $0x8c8] ss:$28 sps:$4 sm:$0xff]  }
  0xb4   :  { %4926 = vmatpush1.bf16.msra.mxu1 %v9078_v20  ;;  %v9153_v20 = vld [vmem:[%s13234_s1 + $0xff8] ss:$28 sps:$4 sm:$0xff]  }
  0xb5   :  { %4721 = vmatpush1.bf16.msra.mxu0 %v9075_v19  ;;  %4927 = vmatprep.subr.bf16.mxu1 %v9086_v23  ;;  %v9158_v19 = vld [vmem:[%s13234_s1 + $0x904] ss:$28 sps:$4 sm:$0xff]   ;;  %v9161_v23 = vld [vmem:[%s13234_s1 + $0x1034] ss:$28 sps:$4 sm:$0xff]  }
  0xb6   :  { %4722 = vmatprep.subr.bf16.mxu0 %v9083_v21  ;;  %v9156_v21 = vld [vmem:[%s13234_s1 + $0x900] ss:$28 sps:$4 sm:$0xff]  }
  0xb8   :  { %4928 = vmatpush1.bf16.msra.mxu1 %v9084_v25  ;;  %v9159_v25 = vld [vmem:[%s13234_s1 + $0x1030] ss:$28 sps:$4 sm:$0xff]  }
  0xb9   :  { %4723 = vmatpush1.bf16.msra.mxu0 %v9081_v24  ;;  %4929 = vmatprep.subr.bf16.mxu1 %v9092_v27  ;;  %v9164_v24 = vld [vmem:[%s13234_s1 + $0x93c] ss:$28 sps:$4 sm:$0xff]   ;;  %v9167_v27 = vld [vmem:[%s13234_s1 + $0x106c] ss:$28 sps:$4 sm:$0xff]  }
  0xba   :  { %4724 = vmatprep.subr.bf16.mxu0 %v9089_v26  ;;  %v9162_v26 = vld [vmem:[%s13234_s1 + $0x938] ss:$28 sps:$4 sm:$0xff]  }
  0xbc   :  { %4930 = vmatpush1.bf16.msra.mxu1 %v9090_v31  ;;  %v9165_v31 = vld [vmem:[%s13234_s1 + $0x1068] ss:$28 sps:$4 sm:$0xff]  }
  0xbd   :  { %4725 = vmatpush1.bf16.msra.mxu0 %v9087_v30  ;;  %4931 = vmatprep.subr.bf16.mxu1 %v9098_v33  ;;  %v9170_v30 = vld [vmem:[%s13234_s1 + $0x974] ss:$28 sps:$4 sm:$0xff]   ;;  %v9173_v33 = vld [vmem:[%s13234_s1 + $0x10a4] ss:$28 sps:$4 sm:$0xff]  }
  0xbe   :  { %4726 = vmatprep.subr.bf16.mxu0 %v9095_v32  ;;  %v9168_v32 = vld [vmem:[%s13234_s1 + $0x970] ss:$28 sps:$4 sm:$0xff]  }
  0xc0   :  { %4932 = vmatpush1.bf16.msra.mxu1 %v9096_v35  ;;  %v9171_v35 = vld [vmem:[%s13234_s1 + $0x10a0] ss:$28 sps:$4 sm:$0xff]  }
  0xc1   :  { %4727 = vmatpush1.bf16.msra.mxu0 %v9093_v34  ;;  %4942 = vmatprep.subr.bf16.mxu1 %v9104_v37  ;;  %v9176_v34 = vld [vmem:[%s13234_s1 + $0x9ac] ss:$28 sps:$4 sm:$0xff]   ;;  %v9179_v37 = vld [vmem:[%s13234_s1 + $0x10dc] ss:$28 sps:$4 sm:$0xff]  }
  0xc2   :  { %4737 = vmatprep.subr.bf16.mxu0 %v9101_v36  ;;  %v9174_v36 = vld [vmem:[%s13234_s1 + $0x9a8] ss:$28 sps:$4 sm:$0xff]  }
  0xc3   :  { %4934 = vmatmul.mubr.bf16.vlgmr.msra.gmra.mrb[4].mxu1 %v10438_v18 }
  0xc4   :  { %4729 = vmatmul.mubr.bf16.vlgmr.msra.gmra.mrb[0].mxu0 %v10849_v39  ;;  %4943 = vmatpush1.bf16.msra.mxu1 %v9102_v41  ;;  %v9180_v41 = vld [vmem:[%s13234_s1 + $0x9e0] ss:$28 sps:$4 sm:$0xff]  }
  0xc5   :  { %4738 = vmatpush1.bf16.msra.mxu0 %v9099_v40  ;;  %4944 = vmatprep.subr.bf16.mxu1 %v9110_v44  ;;  %v9177_v40 = vld [vmem:[%s13234_s1 + $0x10d8] ss:$28 sps:$4 sm:$0xff]  }
  0xc6   :  { %4739 = vmatprep.subr.bf16.mxu0 %v9107_v43  ;;  %4769 = vmatprep.mubr.bf16.mxu0 %v10864_v45  ;;  %v9185_v43 = vld [vmem:[%s13234_s1 + $0x1114] ss:$28 sps:$4 sm:$0xff]   ;;  %v9188_v44 = vld [vmem:[%s13234_s1 + $0xa1c] ss:$28 sps:$4 sm:$0xff]  }
  0xc7   :  { %4974 = vmatprep.mubr.bf16.mxu1 %v10450_v22 }
  0xc8   :  { %4945 = vmatpush1.bf16.msra.mxu1 %v9108_v47  ;;  %v9186_v47 = vld [vmem:[%s13234_s1 + $0xa18] ss:$28 sps:$4 sm:$0xff]  }
  0xc9   :  { %4740 = vmatpush1.bf16.msra.mxu0 %v9105_v46  ;;  %4946 = vmatprep.subr.bf16.mxu1 %v9116_v50  ;;  %v9183_v46 = vld [vmem:[%s13234_s1 + $0x1110] ss:$28 sps:$4 sm:$0xff]  }
  0xca   :  { %4741 = vmatprep.subr.bf16.mxu0 %v9113_v48  ;;  %v9191_v48 = vld [vmem:[%s13234_s1 + $0x114c] ss:$28 sps:$4 sm:$0xff]   ;;  %v9194_v50 = vld [vmem:[%s13234_s1 + $0xa54] ss:$28 sps:$4 sm:$0xff]  }
  0xcc   :  { %4947 = vmatpush1.bf16.msra.mxu1 %v9114_v52  ;;  %v9192_v52 = vld [vmem:[%s13234_s1 + $0xa50] ss:$28 sps:$4 sm:$0xff]  }
  0xcd   :  { %4742 = vmatpush1.bf16.msra.mxu0 %v9111_v51  ;;  %4948 = vmatprep.subr.bf16.mxu1 %v9122_v54  ;;  %v9189_v51 = vld [vmem:[%s13234_s1 + $0x1148] ss:$28 sps:$4 sm:$0xff]  }
  0xce   :  { %4743 = vmatprep.subr.bf16.mxu0 %v9119_v53  ;;  %v9197_v53 = vld [vmem:[%s13234_s1 + $0x1184] ss:$28 sps:$4 sm:$0xff]   ;;  %v9200_v54 = vld [vmem:[%s13234_s1 + $0xa8c] ss:$28 sps:$4 sm:$0xff]  }
  0xd0   :  { %4949 = vmatpush1.bf16.msra.mxu1 %v9120_v56  ;;  %v11055_v56 = vrot.slane %v10819_v29, %v10344_v49  ;;  %v11068_v29 = vcombine.high %v10864_v45, %v10864_v45 }
  0xd1   :  { %4744 = vmatpush1.bf16.msra.mxu0 %v9117_v55  ;;  %4950 = vmatprep.subr.bf16.mxu1 %v9128_v58  ;;  %v9195_v55 = vld [vmem:[%s13234_s1 + $0x1180] ss:$28 sps:$4 sm:$0xff]  }
  0xd2   :  { %4745 = vmatprep.subr.bf16.mxu0 %v9125_v57  ;;  %v9198_v57 = vld [vmem:[%s13234_s1 + $0xa88] ss:$28 sps:$4 sm:$0xff]   ;;  %v9203_v58 = vld [vmem:[%s13234_s1 + $0x11bc] ss:$28 sps:$4 sm:$0xff]  }
  0xd4   :  { %4951 = vmatpush1.bf16.msra.mxu1 %v9126_v61  ;;  %v9201_v61 = vld [vmem:[%s13234_s1 + $0x11b8] ss:$28 sps:$4 sm:$0xff]  }
  0xd5   :  { %4746 = vmatpush1.bf16.msra.mxu0 %v9123_v59  ;;  %4952 = vmatprep.subr.bf16.mxu1 %v9134_v63  ;;  %v9206_v59 = vld [vmem:[%s13234_s1 + $0xac4] ss:$28 sps:$4 sm:$0xff]   ;;  %v9209_v63 = vld [vmem:[%s13234_s1 + $0x11f4] ss:$28 sps:$4 sm:$0xff]  }
  0xd6   :  { %4747 = vmatprep.subr.bf16.mxu0 %v9131_v62  ;;  %v9204_v62 = vld [vmem:[%s13234_s1 + $0xac0] ss:$28 sps:$4 sm:$0xff]  }
  0xd8   :  { %4953 = vmatpush1.bf16.msra.mxu1 %v9132_v2  ;;  %v9207_v2 = vld [vmem:[%s13234_s1 + $0x11f0] ss:$28 sps:$4 sm:$0xff]  }
  0xd9   :  { %4748 = vmatpush1.bf16.msra.mxu0 %v9129_v1  ;;  %4954 = vmatprep.subr.bf16.mxu1 %v9140_v4  ;;  %v9212_v1 = vld [vmem:[%s13234_s1 + $0xafc] ss:$28 sps:$4 sm:$0xff]   ;;  %v9215_v4 = vld [vmem:[%s13234_s1 + $0x122c] ss:$28 sps:$4 sm:$0xff]  }
  0xda   :  { %4749 = vmatprep.subr.bf16.mxu0 %v9137_v3  ;;  %v9210_v3 = vld [vmem:[%s13234_s1 + $0xaf8] ss:$28 sps:$4 sm:$0xff]  }
  0xdc   :  { %4955 = vmatpush1.bf16.msra.mxu1 %v9138_v6  ;;  %v9213_v6 = vld [vmem:[%s13234_s1 + $0x1228] ss:$28 sps:$4 sm:$0xff]  }
  0xdd   :  { %4750 = vmatpush1.bf16.msra.mxu0 %v9135_v5  ;;  %4956 = vmatprep.subr.bf16.mxu1 %v9146_v8  ;;  %v9218_v5 = vld [vmem:[%s13234_s1 + $0xb34] ss:$28 sps:$4 sm:$0xff]   ;;  %v9221_v8 = vld [vmem:[%s13234_s1 + $0x1264] ss:$28 sps:$4 sm:$0xff]  }
  0xde   :  { %4751 = vmatprep.subr.bf16.mxu0 %v9143_v7  ;;  %v9216_v7 = vld [vmem:[%s13234_s1 + $0xb30] ss:$28 sps:$4 sm:$0xff]  }
  0xe0   :  { %4957 = vmatpush1.bf16.msra.mxu1 %v9144_v11  ;;  %v9219_v11 = vld [vmem:[%s13234_s1 + $0x1260] ss:$28 sps:$4 sm:$0xff]  }
  0xe1   :  { %4752 = vmatpush1.bf16.msra.mxu0 %v9141_v9  ;;  %4958 = vmatprep.subr.bf16.mxu1 %v9152_v14  ;;  %v9224_v9 = vld [vmem:[%s13234_s1 + $0xb6c] ss:$28 sps:$4 sm:$0xff]   ;;  %v9227_v14 = vld [vmem:[%s13234_s1 + $0x129c] ss:$28 sps:$4 sm:$0xff]  }
  0xe2   :  { %4753 = vmatprep.subr.bf16.mxu0 %v9149_v13  ;;  %v9222_v13 = vld [vmem:[%s13234_s1 + $0xb68] ss:$28 sps:$4 sm:$0xff]  }
  0xe4   :  { %4959 = vmatpush1.bf16.msra.mxu1 %v9150_v16  ;;  %v9225_v16 = vld [vmem:[%s13234_s1 + $0x1298] ss:$28 sps:$4 sm:$0xff]  }
  0xe5   :  { %4754 = vmatpush1.bf16.msra.mxu0 %v9147_v15  ;;  %4960 = vmatprep.subr.bf16.mxu1 %v9158_v19  ;;  %v9230_v15 = vld [vmem:[%s13234_s1 + $0xba4] ss:$28 sps:$4 sm:$0xff]   ;;  %v9233_v19 = vld [vmem:[%s13234_s1 + $0x12d4] ss:$28 sps:$4 sm:$0xff]  }
  0xe6   :  { %4755 = vmatprep.subr.bf16.mxu0 %v9155_v17  ;;  %v9228_v17 = vld [vmem:[%s13234_s1 + $0xba0] ss:$28 sps:$4 sm:$0xff]  }
  0xe8   :  { %4961 = vmatpush1.bf16.msra.mxu1 %v9156_v21 }
  0xe9   :  { %4756 = vmatpush1.bf16.msra.mxu0 %v9153_v20  ;;  %4962 = vmatprep.subr.bf16.mxu1 %v9164_v24  ;;  %v9236_v20 = vld [vmem:[%s13234_s1 + $0xbdc] ss:$28 sps:$4 sm:$0xff]   ;;  %v9231_v24 = vld [vmem:[%s13234_s1 + $0x12d0] ss:$28 sps:$4 sm:$0xff]  }
  0xea   :  { %4757 = vmatprep.subr.bf16.mxu0 %v9161_v23 }
  0xec   :  { %4963 = vmatpush1.bf16.msra.mxu1 %v9162_v26 }
  0xed   :  { %4758 = vmatpush1.bf16.msra.mxu0 %v9159_v25  ;;  %4964 = vmatprep.subr.bf16.mxu1 %v9170_v30  ;;  %v9234_v25 = vld [vmem:[%s13234_s1 + $0xbd8] ss:$28 sps:$4 sm:$0xff]  }
  0xee   :  { %4759 = vmatprep.subr.bf16.mxu0 %v9167_v27  ;;  %v9239_v27 = vld [vmem:[%s13234_s1 + $0x130c] ss:$28 sps:$4 sm:$0xff]   ;;  %v9242_v30 = vld [vmem:[%s13234_s1 + $0xc14] ss:$28 sps:$4 sm:$0xff]  }
  0xf0   :  { %4965 = vmatpush1.bf16.msra.mxu1 %v9168_v32  ;;  %v9237_v32 = vld [vmem:[%s13234_s1 + $0x1308] ss:$28 sps:$4 sm:$0xff]  }
  0xf1   :  { %4760 = vmatpush1.bf16.msra.mxu0 %v9165_v31  ;;  %4966 = vmatprep.subr.bf16.mxu1 %v9176_v34  ;;  %v9245_v34 = vld [vmem:[%s13234_s1 + $0x1344] ss:$28 sps:$4 sm:$0xff]  }
  0xf2   :  { %4761 = vmatprep.subr.bf16.mxu0 %v9173_v33  ;;  %v9240_v33 = vld [vmem:[%s13234_s1 + $0xc10] ss:$28 sps:$4 sm:$0xff]  }
  0xf4   :  { %4967 = vmatpush1.bf16.msra.mxu1 %v9174_v36  ;;  %v9243_v36 = vld [vmem:[%s13234_s1 + $0x1340] ss:$28 sps:$4 sm:$0xff]  }
  0xf5   :  { %4762 = vmatpush1.bf16.msra.mxu0 %v9171_v35  ;;  %4968 = vmatprep.subr.bf16.mxu1 %v9182_v38  ;;  %v9248_v35 = vld [vmem:[%s13234_s1 + $0xc4c] ss:$28 sps:$4 sm:$0xff]   ;;  %v9251_v38 = vld [vmem:[%s13234_s1 + $0x137c] ss:$28 sps:$4 sm:$0xff]  }
  0xf6   :  { %4763 = vmatprep.subr.bf16.mxu0 %v9179_v37  ;;  %v9246_v37 = vld [vmem:[%s13234_s1 + $0xc48] ss:$28 sps:$4 sm:$0xff]  }
  0xf8   :  { %4969 = vmatpush1.bf16.msra.mxu1 %v9180_v41  ;;  %v9249_v41 = vld [vmem:[%s13234_s1 + $0x1378] ss:$28 sps:$4 sm:$0xff]  }
  0xf9   :  { %4764 = vmatpush1.bf16.msra.mxu0 %v9177_v40  ;;  %4970 = vmatprep.subr.bf16.mxu1 %v9188_v44  ;;  %v9254_v40 = vld [vmem:[%s13234_s1 + $0xc84] ss:$28 sps:$4 sm:$0xff]   ;;  %v9257_v44 = vld [vmem:[%s13234_s1 + $0x13b4] ss:$28 sps:$4 sm:$0xff]  }
  0xfa   :  { %4765 = vmatprep.subr.bf16.mxu0 %v9185_v43  ;;  %v9252_v43 = vld [vmem:[%s13234_s1 + $0xc80] ss:$28 sps:$4 sm:$0xff]  }
  0xfc   :  { %4971 = vmatpush1.bf16.msra.mxu1 %v9186_v47  ;;  %v9255_v47 = vld [vmem:[%s13234_s1 + $0x13b0] ss:$28 sps:$4 sm:$0xff]  }
  0xfd   :  { %4766 = vmatpush1.bf16.msra.mxu0 %v9183_v46  ;;  %4972 = vmatprep.subr.bf16.mxu1 %v9194_v50  ;;  %v9260_v46 = vld [vmem:[%s13234_s1 + $0xcbc] ss:$28 sps:$4 sm:$0xff]   ;;  %v9263_v50 = vld [vmem:[%s13234_s1 + $0x13ec] ss:$28 sps:$4 sm:$0xff]  }
  0xfe   :  { %4767 = vmatprep.subr.bf16.mxu0 %v9191_v48  ;;  %v9258_v48 = vld [vmem:[%s13234_s1 + $0xcb8] ss:$28 sps:$4 sm:$0xff]  }
 0x100   :  { %4973 = vmatpush1.bf16.msra.mxu1 %v9192_v52  ;;  %v9261_v52 = vld [vmem:[%s13234_s1 + $0x13e8] ss:$28 sps:$4 sm:$0xff]  }
 0x101   :  { %4768 = vmatpush1.bf16.msra.mxu0 %v9189_v51  ;;  %4983 = vmatprep.subr.bf16.mxu1 %v9200_v54  ;;  %v9266_v51 = vld [vmem:[%s13234_s1 + $0xcf4] ss:$28 sps:$4 sm:$0xff]   ;;  %v9269_v54 = vld [vmem:[%s13234_s1 + $0x1424] ss:$28 sps:$4 sm:$0xff]  }
 0x102   :  { %4778 = vmatprep.subr.bf16.mxu0 %v9197_v53  ;;  %v9264_v53 = vld [vmem:[%s13234_s1 + $0xcf0] ss:$28 sps:$4 sm:$0xff]  }
 0x103   :  { %4975 = vmatmul.mubr.bf16.vlgmr.msra.gmra.mrb[4].mxu1 %v10641_v28 }
 0x104   :  { %4770 = vmatmul.mubr.bf16.vlgmr.msra.gmra.mrb[0].mxu0 %v11055_v56  ;;  %4984 = vmatpush1.bf16.msra.mxu1 %v9198_v57  ;;  %v9267_v57 = vld [vmem:[%s13234_s1 + $0x1420] ss:$28 sps:$4 sm:$0xff]  }
 0x105   :  { %4779 = vmatpush1.bf16.msra.mxu0 %v9195_v55  ;;  %4985 = vmatprep.subr.bf16.mxu1 %v9206_v59  ;;  %v9272_v55 = vld [vmem:[%s13234_s1 + $0xd2c] ss:$28 sps:$4 sm:$0xff]   ;;  %v9275_v59 = vld [vmem:[%s13234_s1 + $0x145c] ss:$28 sps:$4 sm:$0xff]  }
 0x106   :  { %4780 = vmatprep.subr.bf16.mxu0 %v9203_v58  ;;  %4810 = vmatprep.mubr.bf16.mxu0 %v11068_v29  ;;  %v9270_v58 = vld [vmem:[%s13234_s1 + $0xd28] ss:$28 sps:$4 sm:$0xff]  }
 0x107   :  { %5015 = vmatprep.mubr.bf16.mxu1 %v10654_v10 }
 0x108   :  { %4986 = vmatpush1.bf16.msra.mxu1 %v9204_v62  ;;  %v9273_v62 = vld [vmem:[%s13234_s1 + $0x1458] ss:$28 sps:$4 sm:$0xff]  }
 0x109   :  { %4781 = vmatpush1.bf16.msra.mxu0 %v9201_v61  ;;  %4987 = vmatprep.subr.bf16.mxu1 %v9212_v1  ;;  %v9278_v61 = vld [vmem:[%s13234_s1 + $0xd64] ss:$28 sps:$4 sm:$0xff]   ;;  %v9281_v1 = vld [vmem:[%s13234_s1 + $0x1494] ss:$28 sps:$4 sm:$0xff]  }
 0x10a   :  { %4782 = vmatprep.subr.bf16.mxu0 %v9209_v63  ;;  %v9276_v63 = vld [vmem:[%s13234_s1 + $0xd60] ss:$28 sps:$4 sm:$0xff]  }
 0x10c   :  { %4988 = vmatpush1.bf16.msra.mxu1 %v9210_v3  ;;  %v9279_v3 = vld [vmem:[%s13234_s1 + $0x1490] ss:$28 sps:$4 sm:$0xff]  }
 0x10d   :  { %4783 = vmatpush1.bf16.msra.mxu0 %v9207_v2  ;;  %4989 = vmatprep.subr.bf16.mxu1 %v9218_v5  ;;  %v9284_v2 = vld [vmem:[%s13234_s1 + $0xd9c] ss:$28 sps:$4 sm:$0xff]   ;;  %v9287_v5 = vld [vmem:[%s13234_s1 + $0x14cc] ss:$28 sps:$4 sm:$0xff]  }
 0x10e   :  { %4784 = vmatprep.subr.bf16.mxu0 %v9215_v4  ;;  %v9282_v4 = vld [vmem:[%s13234_s1 + $0xd98] ss:$28 sps:$4 sm:$0xff]  }
 0x110   :  { %4990 = vmatpush1.bf16.msra.mxu1 %v9216_v7  ;;  %v9285_v7 = vld [vmem:[%s13234_s1 + $0x14c8] ss:$28 sps:$4 sm:$0xff]  }
 0x111   :  { %4785 = vmatpush1.bf16.msra.mxu0 %v9213_v6  ;;  %4991 = vmatprep.subr.bf16.mxu1 %v9224_v9  ;;  %v9290_v6 = vld [vmem:[%s13234_s1 + $0xdd4] ss:$28 sps:$4 sm:$0xff]   ;;  %v9293_v9 = vld [vmem:[%s13234_s1 + $0x1504] ss:$28 sps:$4 sm:$0xff]  }
 0x112   :  { %4786 = vmatprep.subr.bf16.mxu0 %v9221_v8  ;;  %v9288_v8 = vld [vmem:[%s13234_s1 + $0xdd0] ss:$28 sps:$4 sm:$0xff]  }
 0x114   :  { %4992 = vmatpush1.bf16.msra.mxu1 %v9222_v13  ;;  %v11260_v13 = vcombine.high %v11055_v56, %v11055_v56 }
 0x115   :  { %4787 = vmatpush1.bf16.msra.mxu0 %v9219_v11  ;;  %4993 = vmatprep.subr.bf16.mxu1 %v9230_v15  ;;  %v9296_v11 = vld [vmem:[%s13234_s1 + $0xe0c] ss:$28 sps:$4 sm:$0xff]  }
 0x116   :  { %4788 = vmatprep.subr.bf16.mxu0 %v9227_v14  ;;  %v11134_v21 = vpop.f32.mrb[0].mxu1  ;;  %v9291_v14 = vld [vmem:[%s13234_s1 + $0x1500] ss:$28 sps:$4 sm:$0xff]   ;;  %v9294_v15 = vld [vmem:[%s13234_s1 + $0xe08] ss:$28 sps:$4 sm:$0xff]  }
 0x117   :  { %v11136_v23 = vpop.f32.mrb[1].mxu1 }
 0x118   :  { %4994 = vmatpush1.bf16.msra.mxu1 %v9228_v17  ;;  %v4611_v26 = vpop.f32.mrb[2].mxu1  ;;  %v9302_v17 = vld [vmem:[%s13234_s1 + $0xe44] ss:$28 sps:$4 sm:$0xff]  }
 0x119   :  { %4789 = vmatpush1.bf16.msra.mxu0 %v9225_v16  ;;  %4995 = vmatprep.subr.bf16.mxu1 %v9236_v20  ;;  %v4612_v31 = vpop.f32.mrb[3].mxu1  ;;  %v9299_v16 = vld [vmem:[%s13234_s1 + $0x153c] ss:$28 sps:$4 sm:$0xff]   ;;  %v10165_v26 = vmov 0  }
 0x11a   :  { %4790 = vmatprep.subr.bf16.mxu0 %v9233_v19  ;;  %v9297_v19 = vld [vmem:[%s13234_s1 + $0x1538] ss:$28 sps:$4 sm:$0xff]   ;;  %v9300_v20 = vld [vmem:[%s13234_s1 + $0xe40] ss:$28 sps:$4 sm:$0xff]   ;;  %v9303_v31 = vld [vmem:[%s13234_s1 + $0x1570] ss:$28 sps:$4 sm:$0xff]  }
 0x11c   :  { %4996 = vmatpush1.bf16.msra.mxu1 %v9234_v25  ;;  %v9308_v25 = vld [vmem:[%s13234_s1 + $0xe7c] ss:$28 sps:$4 sm:$0xff]  }
 0x11d   :  { %4791 = vmatpush1.bf16.msra.mxu0 %v9231_v24  ;;  %4997 = vmatprep.subr.bf16.mxu1 %v9242_v30  ;;  %v9305_v24 = vld [vmem:[%s13234_s1 + $0x1574] ss:$28 sps:$4 sm:$0xff]  }
 0x11e   :  { %4792 = vmatprep.subr.bf16.mxu0 %v9239_v27  ;;  %v10137_v27 = vld [vmem:[%s13233_s0 + $0x8] sm:$0x1f] }
 0x11f   :  { %v918_v30 = vcombine.high %v10137_v27, %v10137_v27  ;;  %v9370_v27 = vld [vmem:[%s13234_s1 + $0x10e0] ss:$28 sps:$4 sm:$0xff]  }
 0x120   :  { %4998 = vmatpush1.bf16.msra.mxu1 %v9240_v33  ;;  %v9311_v33 = vld [vmem:[%s13234_s1 + $0x15ac] ss:$28 sps:$4 sm:$0xff]  }
 0x121   :  { %4793 = vmatpush1.bf16.msra.mxu0 %v9237_v32  ;;  %4999 = vmatprep.subr.bf16.mxu1 %v9248_v35  ;;  %v9306_v32 = vld [vmem:[%s13234_s1 + $0xe78] ss:$28 sps:$4 sm:$0xff]   ;;  %v932_v35 = vrot.slane %v918_v30, %v10344_v49  ;;  %v9373_v30 = vld [vmem:[%s13234_s1 + $0x208] ss:$28 sps:$4 sm:$0xff]  }
 0x122   :  { %4794 = vmatprep.subr.bf16.mxu0 %v9245_v34  ;;  %v9314_v34 = vld [vmem:[%s13234_s1 + $0xeb4] ss:$28 sps:$4 sm:$0xff]  }
 0x124   :  { %5000 = vmatpush1.bf16.msra.mxu1 %v9246_v37  ;;  %v9312_v37 = vld [vmem:[%s13234_s1 + $0xeb0] ss:$28 sps:$4 sm:$0xff]  }
 0x125   :  { %4795 = vmatpush1.bf16.msra.mxu0 %v9243_v36  ;;  %5001 = vmatprep.subr.bf16.mxu1 %v9254_v40  ;;  %v9309_v36 = vld [vmem:[%s13234_s1 + $0x15a8] ss:$28 sps:$4 sm:$0xff]   ;;  %v9321_v40 = vld [vmem:[%s13234_s1 + $0x14] ss:$28 sps:$4 sm:$0xff]  }
 0x126   :  { %4796 = vmatprep.subr.bf16.mxu0 %v9251_v38  ;;  %v9318_v38 = vld [vmem:[%s13234_s1 + $0xeec] ss:$28 sps:$4 sm:$0xff]  }
 0x128   :  { %5002 = vmatpush1.bf16.msra.mxu1 %v9252_v43  ;;  %v9319_v43 = vld [vmem:[%s13234_s1 + $0x10] ss:$28 sps:$4 sm:$0xff]  }
 0x129   :  { %4797 = vmatpush1.bf16.msra.mxu0 %v9249_v41  ;;  %5003 = vmatprep.subr.bf16.mxu1 %v9260_v46  ;;  %v9316_v41 = vld [vmem:[%s13234_s1 + $0xee8] ss:$28 sps:$4 sm:$0xff]  }
 0x12a   :  { %4798 = vmatprep.subr.bf16.mxu0 %v9257_v44  ;;  %v11325_v44 = vrot.slane %v932_v35, %v10344_v49  ;;  %v9324_v46 = vld [vmem:[%s13234_s1 + $0xf24] ss:$28 sps:$4 sm:$0xff]   ;;  %v9384_v35 = vld [vmem:[%s13234_s1 + $0x1154] ss:$28 sps:$4 sm:$0xff]  }
 0x12b   :  { %v9325_v49 = vld [vmem:[%s13234_s1 + $0x48] ss:$28 sps:$4 sm:$0xff]  }
 0x12c   :  { %5004 = vmatpush1.bf16.msra.mxu1 %v9258_v48  ;;  %v9322_v48 = vld [vmem:[%s13234_s1 + $0xf20] ss:$28 sps:$4 sm:$0xff]  }
 0x12d   :  { %4799 = vmatpush1.bf16.msra.mxu0 %v9255_v47  ;;  %5005 = vmatprep.subr.bf16.mxu1 %v9266_v51  ;;  %v9327_v47 = vld [vmem:[%s13234_s1 + $0x4c] ss:$28 sps:$4 sm:$0xff]   ;;  %v9333_v51 = vld [vmem:[%s13234_s1 + $0x84] ss:$28 sps:$4 sm:$0xff]  }
 0x12e   :  { %4800 = vmatprep.subr.bf16.mxu0 %v9263_v50  ;;  %v9330_v50 = vld [vmem:[%s13234_s1 + $0xf5c] ss:$28 sps:$4 sm:$0xff]  }
 0x130   :  { %5006 = vmatpush1.bf16.msra.mxu1 %v9264_v53  ;;  %v9331_v53 = vld [vmem:[%s13234_s1 + $0x80] ss:$28 sps:$4 sm:$0xff]  }
 0x131   :  { %4801 = vmatpush1.bf16.msra.mxu0 %v9261_v52  ;;  %5007 = vmatprep.subr.bf16.mxu1 %v9272_v55  ;;  %v9328_v52 = vld [vmem:[%s13234_s1 + $0xf58] ss:$28 sps:$4 sm:$0xff]  }
 0x132   :  { %4802 = vmatprep.subr.bf16.mxu0 %v9269_v54  ;;  %v9336_v54 = vld [vmem:[%s13234_s1 + $0xf94] ss:$28 sps:$4 sm:$0xff]   ;;  %v9339_v55 = vld [vmem:[%s13234_s1 + $0xbc] ss:$28 sps:$4 sm:$0xff]  }
 0x134   :  { %5008 = vmatpush1.bf16.msra.mxu1 %v9270_v58  ;;  %v9337_v58 = vld [vmem:[%s13234_s1 + $0xb8] ss:$28 sps:$4 sm:$0xff]  }
 0x135   :  { %4803 = vmatpush1.bf16.msra.mxu0 %v9267_v57  ;;  %5009 = vmatprep.subr.bf16.mxu1 %v9278_v61  ;;  %v9334_v57 = vld [vmem:[%s13234_s1 + $0xf90] ss:$28 sps:$4 sm:$0xff]  }
 0x136   :  { %4804 = vmatprep.subr.bf16.mxu0 %v9275_v59  ;;  %v9342_v59 = vld [vmem:[%s13234_s1 + $0xfcc] ss:$28 sps:$4 sm:$0xff]   ;;  %v9345_v61 = vld [vmem:[%s13234_s1 + $0xf4] ss:$28 sps:$4 sm:$0xff]  }
 0x138   :  { %5010 = vmatpush1.bf16.msra.mxu1 %v9276_v63  ;;  %v9343_v63 = vld [vmem:[%s13234_s1 + $0xf0] ss:$28 sps:$4 sm:$0xff]  }
 0x139   :  { %4805 = vmatpush1.bf16.msra.mxu0 %v9273_v62  ;;  %5011 = vmatprep.subr.bf16.mxu1 %v9284_v2  ;;  %v9340_v62 = vld [vmem:[%s13234_s1 + $0xfc8] ss:$28 sps:$4 sm:$0xff]  }
 0x13a   :  { %4806 = vmatprep.subr.bf16.mxu0 %v9281_v1  ;;  %v9348_v1 = vld [vmem:[%s13234_s1 + $0x1004] ss:$28 sps:$4 sm:$0xff]   ;;  %v9351_v2 = vld [vmem:[%s13234_s1 + $0x12c] ss:$28 sps:$4 sm:$0xff]  }
 0x13c   :  { %5012 = vmatpush1.bf16.msra.mxu1 %v9282_v4  ;;  %v9349_v4 = vld [vmem:[%s13234_s1 + $0x128] ss:$28 sps:$4 sm:$0xff]  }
 0x13d   :  { %4807 = vmatpush1.bf16.msra.mxu0 %v9279_v3  ;;  %5013 = vmatprep.subr.bf16.mxu1 %v9290_v6  ;;  %v9346_v3 = vld [vmem:[%s13234_s1 + $0x1000] ss:$28 sps:$4 sm:$0xff]  }
 0x13e   :  { %4808 = vmatprep.subr.bf16.mxu0 %v9287_v5  ;;  %v9354_v5 = vld [vmem:[%s13234_s1 + $0x103c] ss:$28 sps:$4 sm:$0xff]   ;;  %v9357_v6 = vld [vmem:[%s13234_s1 + $0x164] ss:$28 sps:$4 sm:$0xff]  }
 0x140   :  { %5014 = vmatpush1.bf16.msra.mxu1 %v9288_v8  ;;  %v9355_v8 = vld [vmem:[%s13234_s1 + $0x160] ss:$28 sps:$4 sm:$0xff]  }
 0x141   :  { %4809 = vmatpush1.bf16.msra.mxu0 %v9285_v7  ;;  %5024 = vmatprep.subr.bf16.mxu1 %v9296_v11  ;;  %v9352_v7 = vld [vmem:[%s13234_s1 + $0x1038] ss:$28 sps:$4 sm:$0xff]  }
 0x142   :  { %4819 = vmatprep.subr.bf16.mxu0 %v9293_v9  ;;  %v9360_v9 = vld [vmem:[%s13234_s1 + $0x1074] ss:$28 sps:$4 sm:$0xff]   ;;  %v9363_v11 = vld [vmem:[%s13234_s1 + $0x19c] ss:$28 sps:$4 sm:$0xff]  }
 0x143   :  { %5016 = vmatmul.mubr.bf16.vlgmr.msra.gmra.mrb[4].mxu1 %v10849_v39 }
 0x144   :  { %4811 = vmatmul.mubr.bf16.vlgmr.msra.gmra.mrb[0].mxu0 %v11260_v13  ;;  %5025 = vmatpush1.bf16.msra.mxu1 %v9294_v15  ;;  %v9361_v15 = vld [vmem:[%s13234_s1 + $0x198] ss:$28 sps:$4 sm:$0xff]  }
 0x145   :  { %4820 = vmatpush1.bf16.msra.mxu0 %v9291_v14  ;;  %5026 = vmatprep.subr.bf16.mxu1 %v9302_v17  ;;  %v9358_v14 = vld [vmem:[%s13234_s1 + $0x1070] ss:$28 sps:$4 sm:$0xff]  }
 0x146   :  { %4821 = vmatprep.subr.bf16.mxu0 %v9299_v16  ;;  %4851 = vmatprep.mubr.bf16.mxu0 %v10165_v26  ;;  %v9366_v16 = vld [vmem:[%s13234_s1 + $0x10ac] ss:$28 sps:$4 sm:$0xff]   ;;  %v9369_v17 = vld [vmem:[%s13234_s1 + $0x1d4] ss:$28 sps:$4 sm:$0xff]  }
 0x147   :  { %5056 = vmatprep.mubr.bf16.mxu1 %v10864_v45 }
 0x148   :  { %5027 = vmatpush1.bf16.msra.mxu1 %v9300_v20  ;;  %v9367_v20 = vld [vmem:[%s13234_s1 + $0x1d0] ss:$28 sps:$4 sm:$0xff]  }
 0x149   :  { %4822 = vmatpush1.bf16.msra.mxu0 %v9297_v19  ;;  %5028 = vmatprep.subr.bf16.mxu1 %v9308_v25  ;;  %v9364_v19 = vld [vmem:[%s13234_s1 + $0x10a8] ss:$28 sps:$4 sm:$0xff]  }
 0x14a   :  { %4823 = vmatprep.subr.bf16.mxu0 %v9305_v24  ;;  %v9372_v24 = vld [vmem:[%s13234_s1 + $0x10e4] ss:$28 sps:$4 sm:$0xff]   ;;  %v9375_v25 = vld [vmem:[%s13234_s1 + $0x20c] ss:$28 sps:$4 sm:$0xff]  }
 0x14c   :  { %5029 = vmatpush1.bf16.msra.mxu1 %v9306_v32  ;;  %v9381_v32 = vld [vmem:[%s13234_s1 + $0x244] ss:$28 sps:$4 sm:$0xff]  }
 0x14d   :  { %4824 = vmatpush1.bf16.msra.mxu0 %v9303_v31  ;;  %5030 = vmatprep.subr.bf16.mxu1 %v9314_v34  ;;  %v9378_v31 = vld [vmem:[%s13234_s1 + $0x111c] ss:$28 sps:$4 sm:$0xff]  }
 0x14e   :  { %4825 = vmatprep.subr.bf16.mxu0 %v9311_v33  ;;  %v9376_v33 = vld [vmem:[%s13234_s1 + $0x1118] ss:$28 sps:$4 sm:$0xff]   ;;  %v9379_v34 = vld [vmem:[%s13234_s1 + $0x240] ss:$28 sps:$4 sm:$0xff]  }
 0x150   :  { %5031 = vmatpush1.bf16.msra.mxu1 %v9312_v37  ;;  %v9382_v37 = vld [vmem:[%s13234_s1 + $0x1150] ss:$28 sps:$4 sm:$0xff]  }
 0x151   :  { %4826 = vmatpush1.bf16.msra.mxu0 %v9309_v36  ;;  %5032 = vmatprep.subr.bf16.mxu1 %v9318_v38  ;;  %v9387_v36 = vld [vmem:[%s13234_s1 + $0x27c] ss:$28 sps:$4 sm:$0xff]  }
 0x152   :  { %5147 = vmatprep.subr.bf16.mxu0 %v9321_v40  ;;  %v9385_v38 = vld [vmem:[%s13234_s1 + $0x278] ss:$28 sps:$4 sm:$0xff]   ;;  %v9390_v40 = vld [vmem:[%s13234_s1 + $0x118c] ss:$28 sps:$4 sm:$0xff]  }
 0x154   :  { %8297 = vmatmul.mubr.msk.bf16.vlgmr.msra.gmra.mrb[0].mxu0 %vm4569_vm0, %v11325_v44  ;;  %5033 = vmatpush1.bf16.msra.mxu1 %v9316_v41  ;;  %v9393_v41 = vld [vmem:[%s13234_s1 + $0x2b4] ss:$28 sps:$4 sm:$0xff]  }
 0x155   :  { %5148 = vmatpush1.bf16.msra.mxu0 %v9319_v43  ;;  %5034 = vmatprep.subr.bf16.mxu1 %v9324_v46  ;;  %v9388_v43 = vld [vmem:[%s13234_s1 + $0x1188] ss:$28 sps:$4 sm:$0xff]   ;;  %v9391_v46 = vld [vmem:[%s13234_s1 + $0x2b0] ss:$28 sps:$4 sm:$0xff]  }
 0x156   :  { %5149 = vmatprep.subr.bf16.mxu0 %v9327_v47  ;;  %5179 = vmatprep.mubr.bf16.mxu0 %v10372_v60  ;;  %v9396_v47 = vld [vmem:[%s13234_s1 + $0x11c4] ss:$28 sps:$4 sm:$0xff]  }
 0x158   :  { %5035 = vmatpush1.bf16.msra.mxu1 %v9322_v48  ;;  %v9399_v48 = vld [vmem:[%s13234_s1 + $0x2ec] ss:$28 sps:$4 sm:$0xff]  }
 0x159   :  { %5150 = vmatpush1.bf16.msra.mxu0 %v9325_v49  ;;  %5036 = vmatprep.subr.bf16.mxu1 %v9330_v50  ;;  %v9394_v49 = vld [vmem:[%s13234_s1 + $0x11c0] ss:$28 sps:$4 sm:$0xff]   ;;  %v9397_v50 = vld [vmem:[%s13234_s1 + $0x2e8] ss:$28 sps:$4 sm:$0xff]  }
 0x15a   :  { %5151 = vmatprep.subr.bf16.mxu0 %v9333_v51  ;;  %v9402_v51 = vld [vmem:[%s13234_s1 + $0x11fc] ss:$28 sps:$4 sm:$0xff]  }
 0x15c   :  { %5037 = vmatpush1.bf16.msra.mxu1 %v9328_v52  ;;  %v9405_v52 = vld [vmem:[%s13234_s1 + $0x324] ss:$28 sps:$4 sm:$0xff]  }
 0x15d   :  { %5152 = vmatpush1.bf16.msra.mxu0 %v9331_v53  ;;  %5038 = vmatprep.subr.bf16.mxu1 %v9336_v54  ;;  %v9400_v53 = vld [vmem:[%s13234_s1 + $0x11f8] ss:$28 sps:$4 sm:$0xff]   ;;  %v9403_v54 = vld [vmem:[%s13234_s1 + $0x320] ss:$28 sps:$4 sm:$0xff]  }
 0x15e   :  { %5153 = vmatprep.subr.bf16.mxu0 %v9339_v55  ;;  %v9408_v55 = vld [vmem:[%s13234_s1 + $0x1234] ss:$28 sps:$4 sm:$0xff]  }
 0x160   :  { %5039 = vmatpush1.bf16.msra.mxu1 %v9334_v57  ;;  %v9411_v57 = vld [vmem:[%s13234_s1 + $0x35c] ss:$28 sps:$4 sm:$0xff]  }
 0x161   :  { %5154 = vmatpush1.bf16.msra.mxu0 %v9337_v58  ;;  %5040 = vmatprep.subr.bf16.mxu1 %v9342_v59  ;;  %v9406_v58 = vld [vmem:[%s13234_s1 + $0x1230] ss:$28 sps:$4 sm:$0xff]   ;;  %v9409_v59 = vld [vmem:[%s13234_s1 + $0x358] ss:$28 sps:$4 sm:$0xff]  }
 0x162   :  { %5155 = vmatprep.subr.bf16.mxu0 %v9345_v61  ;;  %v9414_v61 = vld [vmem:[%s13234_s1 + $0x126c] ss:$28 sps:$4 sm:$0xff]  }
 0x164   :  { %5041 = vmatpush1.bf16.msra.mxu1 %v9340_v62  ;;  %v9417_v62 = vld [vmem:[%s13234_s1 + $0x394] ss:$28 sps:$4 sm:$0xff]  }
 0x165   :  { %5156 = vmatpush1.bf16.msra.mxu0 %v9343_v63  ;;  %5042 = vmatprep.subr.bf16.mxu1 %v9348_v1  ;;  %v9412_v63 = vld [vmem:[%s13234_s1 + $0x1268] ss:$28 sps:$4 sm:$0xff]   ;;  %v9415_v1 = vld [vmem:[%s13234_s1 + $0x390] ss:$28 sps:$4 sm:$0xff]  }
 0x166   :  { %5157 = vmatprep.subr.bf16.mxu0 %v9351_v2  ;;  %v9420_v2 = vld [vmem:[%s13234_s1 + $0x12a4] ss:$28 sps:$4 sm:$0xff]  }
 0x168   :  { %5043 = vmatpush1.bf16.msra.mxu1 %v9346_v3  ;;  %v9423_v3 = vld [vmem:[%s13234_s1 + $0x3cc] ss:$28 sps:$4 sm:$0xff]  }
 0x169   :  { %5158 = vmatpush1.bf16.msra.mxu0 %v9349_v4  ;;  %5044 = vmatprep.subr.bf16.mxu1 %v9354_v5  ;;  %v9418_v4 = vld [vmem:[%s13234_s1 + $0x12a0] ss:$28 sps:$4 sm:$0xff]   ;;  %v9421_v5 = vld [vmem:[%s13234_s1 + $0x3c8] ss:$28 sps:$4 sm:$0xff]  }
 0x16a   :  { %5159 = vmatprep.subr.bf16.mxu0 %v9357_v6  ;;  %v9426_v6 = vld [vmem:[%s13234_s1 + $0x12dc] ss:$28 sps:$4 sm:$0xff]  }
 0x16c   :  { %5045 = vmatpush1.bf16.msra.mxu1 %v9352_v7  ;;  %v9429_v7 = vld [vmem:[%s13234_s1 + $0x404] ss:$28 sps:$4 sm:$0xff]  }
 0x16d   :  { %5160 = vmatpush1.bf16.msra.mxu0 %v9355_v8  ;;  %5046 = vmatprep.subr.bf16.mxu1 %v9360_v9  ;;  %v9424_v8 = vld [vmem:[%s13234_s1 + $0x12d8] ss:$28 sps:$4 sm:$0xff]   ;;  %v9427_v9 = vld [vmem:[%s13234_s1 + $0x400] ss:$28 sps:$4 sm:$0xff]  }
 0x16e   :  { %5161 = vmatprep.subr.bf16.mxu0 %v9363_v11  ;;  %v9432_v11 = vld [vmem:[%s13234_s1 + $0x1314] ss:$28 sps:$4 sm:$0xff]  }
 0x170   :  { %5047 = vmatpush1.bf16.msra.mxu1 %v9358_v14  ;;  %v9435_v14 = vld [vmem:[%s13234_s1 + $0x43c] ss:$28 sps:$4 sm:$0xff]  }
 0x171   :  { %5162 = vmatpush1.bf16.msra.mxu0 %v9361_v15  ;;  %5048 = vmatprep.subr.bf16.mxu1 %v9366_v16  ;;  %v9430_v15 = vld [vmem:[%s13234_s1 + $0x1310] ss:$28 sps:$4 sm:$0xff]   ;;  %v9433_v16 = vld [vmem:[%s13234_s1 + $0x438] ss:$28 sps:$4 sm:$0xff]  }
 0x172   :  { %5163 = vmatprep.subr.bf16.mxu0 %v9369_v17  ;;  %v9438_v17 = vld [vmem:[%s13234_s1 + $0x134c] ss:$28 sps:$4 sm:$0xff]  }
 0x174   :  { %5049 = vmatpush1.bf16.msra.mxu1 %v9364_v19  ;;  %v9441_v19 = vld [vmem:[%s13234_s1 + $0x474] ss:$28 sps:$4 sm:$0xff]  }
 0x175   :  { %5164 = vmatpush1.bf16.msra.mxu0 %v9367_v20  ;;  %5050 = vmatprep.subr.bf16.mxu1 %v9372_v24  ;;  %v9436_v20 = vld [vmem:[%s13234_s1 + $0x1348] ss:$28 sps:$4 sm:$0xff]   ;;  %v9439_v24 = vld [vmem:[%s13234_s1 + $0x470] ss:$28 sps:$4 sm:$0xff]  }
 0x176   :  { %5165 = vmatprep.subr.bf16.mxu0 %v9375_v25  ;;  %v9444_v25 = vld [vmem:[%s13234_s1 + $0x1384] ss:$28 sps:$4 sm:$0xff]  }
 0x178   :  { %5051 = vmatpush1.bf16.msra.mxu1 %v9370_v27  ;;  %v9447_v27 = vld [vmem:[%s13234_s1 + $0x4ac] ss:$28 sps:$4 sm:$0xff]  }
 0x179   :  { %5166 = vmatpush1.bf16.msra.mxu0 %v9373_v30  ;;  %5052 = vmatprep.subr.bf16.mxu1 %v9378_v31  ;;  %v9442_v30 = vld [vmem:[%s13234_s1 + $0x1380] ss:$28 sps:$4 sm:$0xff]   ;;  %v9445_v31 = vld [vmem:[%s13234_s1 + $0x4a8] ss:$28 sps:$4 sm:$0xff]  }
 0x17a   :  { %5167 = vmatprep.subr.bf16.mxu0 %v9381_v32  ;;  %v9450_v32 = vld [vmem:[%s13234_s1 + $0x13bc] ss:$28 sps:$4 sm:$0xff]  }
 0x17c   :  { %5053 = vmatpush1.bf16.msra.mxu1 %v9376_v33  ;;  %v9453_v33 = vld [vmem:[%s13234_s1 + $0x4e4] ss:$28 sps:$4 sm:$0xff]  }
 0x17d   :  { %5168 = vmatpush1.bf16.msra.mxu0 %v9379_v34  ;;  %5054 = vmatprep.subr.bf16.mxu1 %v9384_v35  ;;  %v9448_v34 = vld [vmem:[%s13234_s1 + $0x13b8] ss:$28 sps:$4 sm:$0xff]   ;;  %v9451_v35 = vld [vmem:[%s13234_s1 + $0x4e0] ss:$28 sps:$4 sm:$0xff]  }
 0x17e   :  { %5169 = vmatprep.subr.bf16.mxu0 %v9387_v36  ;;  %v9456_v36 = vld [vmem:[%s13234_s1 + $0x13f4] ss:$28 sps:$4 sm:$0xff]  }
 0x180   :  { %5055 = vmatpush1.bf16.msra.mxu1 %v9382_v37  ;;  %v9459_v37 = vld [vmem:[%s13234_s1 + $0x51c] ss:$28 sps:$4 sm:$0xff]  }
 0x181   :  { %5170 = vmatpush1.bf16.msra.mxu0 %v9385_v38  ;;  %5065 = vmatprep.subr.bf16.mxu1 %v9390_v40  ;;  %v9454_v38 = vld [vmem:[%s13234_s1 + $0x13f0] ss:$28 sps:$4 sm:$0xff]   ;;  %v9457_v40 = vld [vmem:[%s13234_s1 + $0x518] ss:$28 sps:$4 sm:$0xff]  }
 0x182   :  { %5171 = vmatprep.subr.bf16.mxu0 %v9393_v41  ;;  %v9462_v41 = vld [vmem:[%s13234_s1 + $0x142c] ss:$28 sps:$4 sm:$0xff]  }
 0x183   :  { %5057 = vmatmul.mubr.bf16.vlgmr.msra.gmra.mrb[4].mxu1 %v11055_v56 }
 0x184   :  { %5066 = vmatpush1.bf16.msra.mxu1 %v9388_v43  ;;  %5097 = vmatprep.mubr.bf16.mxu1 %v11068_v29  ;;  %v9465_v43 = vld [vmem:[%s13234_s1 + $0x554] ss:$28 sps:$4 sm:$0xff]  }
 0x185   :  { %5172 = vmatpush1.bf16.msra.mxu0 %v9391_v46  ;;  %5067 = vmatprep.subr.bf16.mxu1 %v9396_v47  ;;  %v9460_v46 = vld [vmem:[%s13234_s1 + $0x1428] ss:$28 sps:$4 sm:$0xff]   ;;  %v9463_v47 = vld [vmem:[%s13234_s1 + $0x550] ss:$28 sps:$4 sm:$0xff]  }
 0x186   :  { %5173 = vmatprep.subr.bf16.mxu0 %v9399_v48  ;;  %v9468_v48 = vld [vmem:[%s13234_s1 + $0x1464] ss:$28 sps:$4 sm:$0xff]  }
 0x188   :  { %5068 = vmatpush1.bf16.msra.mxu1 %v9394_v49  ;;  %v9471_v49 = vld [vmem:[%s13234_s1 + $0x58c] ss:$28 sps:$4 sm:$0xff]  }
 0x189   :  { %5174 = vmatpush1.bf16.msra.mxu0 %v9397_v50  ;;  %5069 = vmatprep.subr.bf16.mxu1 %v9402_v51  ;;  %v9466_v50 = vld [vmem:[%s13234_s1 + $0x1460] ss:$28 sps:$4 sm:$0xff]   ;;  %v9469_v51 = vld [vmem:[%s13234_s1 + $0x588] ss:$28 sps:$4 sm:$0xff]  }
 0x18a   :  { %5175 = vmatprep.subr.bf16.mxu0 %v9405_v52  ;;  %v9474_v52 = vld [vmem:[%s13234_s1 + $0x149c] ss:$28 sps:$4 sm:$0xff]  }
 0x18c   :  { %5070 = vmatpush1.bf16.msra.mxu1 %v9400_v53  ;;  %v9477_v53 = vld [vmem:[%s13234_s1 + $0x5c4] ss:$28 sps:$4 sm:$0xff]  }
 0x18d   :  { %5176 = vmatpush1.bf16.msra.mxu0 %v9403_v54  ;;  %5071 = vmatprep.subr.bf16.mxu1 %v9408_v55  ;;  %v9472_v54 = vld [vmem:[%s13234_s1 + $0x1498] ss:$28 sps:$4 sm:$0xff]   ;;  %v9475_v55 = vld [vmem:[%s13234_s1 + $0x5c0] ss:$28 sps:$4 sm:$0xff]  }
 0x18e   :  { %5177 = vmatprep.subr.bf16.mxu0 %v9411_v57  ;;  %v9480_v57 = vld [vmem:[%s13234_s1 + $0x14d4] ss:$28 sps:$4 sm:$0xff]  }
 0x190   :  { %5072 = vmatpush1.bf16.msra.mxu1 %v9406_v58  ;;  %v9483_v58 = vld [vmem:[%s13234_s1 + $0x5fc] ss:$28 sps:$4 sm:$0xff]  }
 0x191   :  { %5178 = vmatpush1.bf16.msra.mxu0 %v9409_v59  ;;  %5073 = vmatprep.subr.bf16.mxu1 %v9414_v61  ;;  %v9478_v59 = vld [vmem:[%s13234_s1 + $0x14d0] ss:$28 sps:$4 sm:$0xff]   ;;  %v9481_v61 = vld [vmem:[%s13234_s1 + $0x5f8] ss:$28 sps:$4 sm:$0xff]  }
 0x192   :  { %5188 = vmatprep.subr.bf16.mxu0 %v9417_v62  ;;  %v9486_v62 = vld [vmem:[%s13234_s1 + $0x150c] ss:$28 sps:$4 sm:$0xff]  }
 0x194   :  { %5180 = vmatmul.mubr.bf16.vlgmr.msra.gmra.mrb[4].mxu0 %v10420_v12  ;;  %5074 = vmatpush1.bf16.msra.mxu1 %v9412_v63  ;;  %v9489_v63 = vld [vmem:[%s13234_s1 + $0x634] ss:$28 sps:$4 sm:$0xff]  }
 0x195   :  { %5189 = vmatpush1.bf16.msra.mxu0 %v9415_v1  ;;  %5075 = vmatprep.subr.bf16.mxu1 %v9420_v2  ;;  %v9484_v1 = vld [vmem:[%s13234_s1 + $0x1508] ss:$28 sps:$4 sm:$0xff]   ;;  %v9487_v2 = vld [vmem:[%s13234_s1 + $0x630] ss:$28 sps:$4 sm:$0xff]  }
 0x196   :  { %5190 = vmatprep.subr.bf16.mxu0 %v9423_v3  ;;  %5220 = vmatprep.mubr.bf16.mxu0 %v10385_v0  ;;  %v9492_v3 = vld [vmem:[%s13234_s1 + $0x1544] ss:$28 sps:$4 sm:$0xff]  }
 0x198   :  { %5076 = vmatpush1.bf16.msra.mxu1 %v9418_v4  ;;  %v9495_v4 = vld [vmem:[%s13234_s1 + $0x66c] ss:$28 sps:$4 sm:$0xff]  }
 0x199   :  { %5191 = vmatpush1.bf16.msra.mxu0 %v9421_v5  ;;  %5077 = vmatprep.subr.bf16.mxu1 %v9426_v6  ;;  %v9490_v5 = vld [vmem:[%s13234_s1 + $0x1540] ss:$28 sps:$4 sm:$0xff]   ;;  %v9493_v6 = vld [vmem:[%s13234_s1 + $0x668] ss:$28 sps:$4 sm:$0xff]  }
 0x19a   :  { %5192 = vmatprep.subr.bf16.mxu0 %v9429_v7  ;;  %v9498_v7 = vld [vmem:[%s13234_s1 + $0x157c] ss:$28 sps:$4 sm:$0xff]  }
 0x19c   :  { %5078 = vmatpush1.bf16.msra.mxu1 %v9424_v8  ;;  %v9501_v8 = vld [vmem:[%s13234_s1 + $0x6a4] ss:$28 sps:$4 sm:$0xff]  }
 0x19d   :  { %5193 = vmatpush1.bf16.msra.mxu0 %v9427_v9  ;;  %5079 = vmatprep.subr.bf16.mxu1 %v9432_v11  ;;  %v9496_v9 = vld [vmem:[%s13234_s1 + $0x1578] ss:$28 sps:$4 sm:$0xff]   ;;  %v9499_v11 = vld [vmem:[%s13234_s1 + $0x6a0] ss:$28 sps:$4 sm:$0xff]  }
 0x19e   :  { %5194 = vmatprep.subr.bf16.mxu0 %v9435_v14  ;;  %v9504_v14 = vld [vmem:[%s13234_s1 + $0x15b4] ss:$28 sps:$4 sm:$0xff]  }
 0x1a0   :  { %5080 = vmatpush1.bf16.msra.mxu1 %v9430_v15  ;;  %v9507_v15 = vld [vmem:[%s13234_s1 + $0x6dc] ss:$28 sps:$4 sm:$0xff]  }
 0x1a1   :  { %5195 = vmatpush1.bf16.msra.mxu0 %v9433_v16  ;;  %5081 = vmatprep.subr.bf16.mxu1 %v9438_v17  ;;  %v9502_v16 = vld [vmem:[%s13234_s1 + $0x15b0] ss:$28 sps:$4 sm:$0xff]   ;;  %v9505_v17 = vld [vmem:[%s13234_s1 + $0x6d8] ss:$28 sps:$4 sm:$0xff]  }
 0x1a2   :  { %5196 = vmatprep.subr.bf16.mxu0 %v9441_v19  ;;  %v9510_v19 = vld [vmem:[%s13234_s1 + $0x714] ss:$28 sps:$4 sm:$0xff]  }
 0x1a4   :  { %5082 = vmatpush1.bf16.msra.mxu1 %v9436_v20  ;;  %v9511_v20 = vld [vmem:[%s13234_s1 + $0x1d8] ss:$28 sps:$4 sm:$0xff]  }
 0x1a5   :  { %5197 = vmatpush1.bf16.msra.mxu0 %v9439_v24  ;;  %5083 = vmatprep.subr.bf16.mxu1 %v9444_v25  ;;  %v9508_v24 = vld [vmem:[%s13234_s1 + $0x710] ss:$28 sps:$4 sm:$0xff]   ;;  %v9512_v25 = vld [vmem:[%s13234_s1 + $0x18] ss:$28 sps:$4 sm:$0xff]  }
 0x1a6   :  { %5198 = vmatprep.subr.bf16.mxu0 %v9447_v27  ;;  %v9515_v27 = vld [vmem:[%s13234_s1 + $0x74c] ss:$28 sps:$4 sm:$0xff]  }
 0x1a8   :  { %5084 = vmatpush1.bf16.msra.mxu1 %v9442_v30  ;;  %v9516_v30 = vld [vmem:[%s13234_s1 + $0x210] ss:$28 sps:$4 sm:$0xff]  }
 0x1a9   :  { %5199 = vmatpush1.bf16.msra.mxu0 %v9445_v31  ;;  %5085 = vmatprep.subr.bf16.mxu1 %v9450_v32  ;;  %v9513_v31 = vld [vmem:[%s13234_s1 + $0x748] ss:$28 sps:$4 sm:$0xff]   ;;  %v9517_v32 = vld [vmem:[%s13234_s1 + $0x50] ss:$28 sps:$4 sm:$0xff]  }
 0x1aa   :  { %5200 = vmatprep.subr.bf16.mxu0 %v9453_v33  ;;  %v9520_v33 = vld [vmem:[%s13234_s1 + $0x784] ss:$28 sps:$4 sm:$0xff]  }
 0x1ac   :  { %5086 = vmatpush1.bf16.msra.mxu1 %v9448_v34  ;;  %v9521_v34 = vld [vmem:[%s13234_s1 + $0x248] ss:$28 sps:$4 sm:$0xff]  }
 0x1ad   :  { %5201 = vmatpush1.bf16.msra.mxu0 %v9451_v35  ;;  %5087 = vmatprep.subr.bf16.mxu1 %v9456_v36  ;;  %v9518_v35 = vld [vmem:[%s13234_s1 + $0x780] ss:$28 sps:$4 sm:$0xff]   ;;  %v9522_v36 = vld [vmem:[%s13234_s1 + $0x88] ss:$28 sps:$4 sm:$0xff]  }
 0x1ae   :  { %5202 = vmatprep.subr.bf16.mxu0 %v9459_v37  ;;  %v9525_v37 = vld [vmem:[%s13234_s1 + $0x7bc] ss:$28 sps:$4 sm:$0xff]  }
 0x1b0   :  { %5088 = vmatpush1.bf16.msra.mxu1 %v9454_v38  ;;  %v9526_v38 = vld [vmem:[%s13234_s1 + $0x280] ss:$28 sps:$4 sm:$0xff]  }
 0x1b1   :  { %5203 = vmatpush1.bf16.msra.mxu0 %v9457_v40  ;;  %5089 = vmatprep.subr.bf16.mxu1 %v9462_v41  ;;  %v9527_v40 = vld [vmem:[%s13234_s1 + $0xc0] ss:$28 sps:$4 sm:$0xff]   ;;  %v9530_v41 = vld [vmem:[%s13234_s1 + $0x7f4] ss:$28 sps:$4 sm:$0xff]  }
 0x1b2   :  { %5204 = vmatprep.subr.bf16.mxu0 %v9465_v43  ;;  %v9531_v43 = vld [vmem:[%s13234_s1 + $0x2b8] ss:$28 sps:$4 sm:$0xff]  }
 0x1b4   :  { %5090 = vmatpush1.bf16.msra.mxu1 %v9460_v46  ;;  %v9528_v46 = vld [vmem:[%s13234_s1 + $0x7f0] ss:$28 sps:$4 sm:$0xff]  }
 0x1b5   :  { %5205 = vmatpush1.bf16.msra.mxu0 %v9463_v47  ;;  %5091 = vmatprep.subr.bf16.mxu1 %v9468_v48  ;;  %v9532_v47 = vld [vmem:[%s13234_s1 + $0xf8] ss:$28 sps:$4 sm:$0xff]   ;;  %v9535_v48 = vld [vmem:[%s13234_s1 + $0x82c] ss:$28 sps:$4 sm:$0xff]  }
 0x1b6   :  { %5206 = vmatprep.subr.bf16.mxu0 %v9471_v49  ;;  %v9536_v49 = vld [vmem:[%s13234_s1 + $0x2f0] ss:$28 sps:$4 sm:$0xff]  }
 0x1b8   :  { %5092 = vmatpush1.bf16.msra.mxu1 %v9466_v50  ;;  %v9533_v50 = vld [vmem:[%s13234_s1 + $0x828] ss:$28 sps:$4 sm:$0xff]  }
 0x1b9   :  { %5207 = vmatpush1.bf16.msra.mxu0 %v9469_v51  ;;  %5093 = vmatprep.subr.bf16.mxu1 %v9474_v52  ;;  %v9537_v51 = vld [vmem:[%s13234_s1 + $0x130] ss:$28 sps:$4 sm:$0xff]   ;;  %v9540_v52 = vld [vmem:[%s13234_s1 + $0x864] ss:$28 sps:$4 sm:$0xff]  }
 0x1ba   :  { %5208 = vmatprep.subr.bf16.mxu0 %v9477_v53  ;;  %v9541_v53 = vld [vmem:[%s13234_s1 + $0x328] ss:$28 sps:$4 sm:$0xff]  }
 0x1bc   :  { %5094 = vmatpush1.bf16.msra.mxu1 %v9472_v54  ;;  %v9538_v54 = vld [vmem:[%s13234_s1 + $0x860] ss:$28 sps:$4 sm:$0xff]  }
 0x1bd   :  { %5209 = vmatpush1.bf16.msra.mxu0 %v9475_v55  ;;  %5095 = vmatprep.subr.bf16.mxu1 %v9480_v57  ;;  %v9542_v55 = vld [vmem:[%s13234_s1 + $0x168] ss:$28 sps:$4 sm:$0xff]   ;;  %v9545_v57 = vld [vmem:[%s13234_s1 + $0x89c] ss:$28 sps:$4 sm:$0xff]  }
 0x1be   :  { %5210 = vmatprep.subr.bf16.mxu0 %v9483_v58  ;;  %v9546_v58 = vld [vmem:[%s13234_s1 + $0x360] ss:$28 sps:$4 sm:$0xff]  }
 0x1c0   :  { %5096 = vmatpush1.bf16.msra.mxu1 %v9478_v59  ;;  %v9543_v59 = vld [vmem:[%s13234_s1 + $0x898] ss:$28 sps:$4 sm:$0xff]  }
 0x1c1   :  { %5211 = vmatpush1.bf16.msra.mxu0 %v9481_v61  ;;  %5106 = vmatprep.subr.bf16.mxu1 %v9486_v62  ;;  %v9547_v61 = vld [vmem:[%s13234_s1 + $0x1a0] ss:$28 sps:$4 sm:$0xff]   ;;  %v9550_v62 = vld [vmem:[%s13234_s1 + $0x8d4] ss:$28 sps:$4 sm:$0xff]  }
 0x1c2   :  { %5212 = vmatprep.subr.bf16.mxu0 %v9489_v63  ;;  %v9551_v63 = vld [vmem:[%s13234_s1 + $0x558] ss:$28 sps:$4 sm:$0xff]  }
 0x1c3   :  { %5098 = vmatmul.mubr.bf16.vlgmr.msra.gmra.mrb[4].mxu1 %v11260_v13 }
 0x1c4   :  { %5107 = vmatpush1.bf16.msra.mxu1 %v9484_v1  ;;  %5138 = vmatprep.mubr.bf16.mxu1 %v10165_v26  ;;  %v9548_v1 = vld [vmem:[%s13234_s1 + $0x8d0] ss:$28 sps:$4 sm:$0xff]  }
 0x1c5   :  { %5213 = vmatpush1.bf16.msra.mxu0 %v9487_v2  ;;  %5108 = vmatprep.subr.bf16.mxu1 %v9492_v3  ;;  %v9552_v2 = vld [vmem:[%s13234_s1 + $0x398] ss:$28 sps:$4 sm:$0xff]   ;;  %v9555_v3 = vld [vmem:[%s13234_s1 + $0x90c] ss:$28 sps:$4 sm:$0xff]  }
 0x1c6   :  { %5214 = vmatprep.subr.bf16.mxu0 %v9495_v4  ;;  %v9556_v4 = vld [vmem:[%s13234_s1 + $0x590] ss:$28 sps:$4 sm:$0xff]  }
 0x1c8   :  { %5109 = vmatpush1.bf16.msra.mxu1 %v9490_v5  ;;  %v9553_v5 = vld [vmem:[%s13234_s1 + $0x908] ss:$28 sps:$4 sm:$0xff]  }
 0x1c9   :  { %5215 = vmatpush1.bf16.msra.mxu0 %v9493_v6  ;;  %5110 = vmatprep.subr.bf16.mxu1 %v9498_v7  ;;  %v9557_v6 = vld [vmem:[%s13234_s1 + $0x3d0] ss:$28 sps:$4 sm:$0xff]   ;;  %v9560_v7 = vld [vmem:[%s13234_s1 + $0x944] ss:$28 sps:$4 sm:$0xff]  }
 0x1ca   :  { %5216 = vmatprep.subr.bf16.mxu0 %v9501_v8  ;;  %v9561_v8 = vld [vmem:[%s13234_s1 + $0x5c8] ss:$28 sps:$4 sm:$0xff]  }
 0x1cc   :  { %5111 = vmatpush1.bf16.msra.mxu1 %v9496_v9  ;;  %v9562_v9 = vld [vmem:[%s13234_s1 + $0x408] ss:$28 sps:$4 sm:$0xff]  }
 0x1cd   :  { %5217 = vmatpush1.bf16.msra.mxu0 %v9499_v11  ;;  %5112 = vmatprep.subr.bf16.mxu1 %v9504_v14  ;;  %v9565_v11 = vld [vmem:[%s13234_s1 + $0x97c] ss:$28 sps:$4 sm:$0xff]  }
 0x1ce   :  { %5218 = vmatprep.subr.bf16.mxu0 %v9507_v15  ;;  %v9566_v14 = vld [vmem:[%s13234_s1 + $0x600] ss:$28 sps:$4 sm:$0xff]  }
 0x1cf   :  { %v9567_v15 = vld [vmem:[%s13234_s1 + $0x440] ss:$28 sps:$4 sm:$0xff]  }
 0x1d0   :  { %5113 = vmatpush1.bf16.msra.mxu1 %v9502_v16  ;;  %v9570_v16 = vld [vmem:[%s13234_s1 + $0x9b4] ss:$28 sps:$4 sm:$0xff]  }
 0x1d1   :  { %5219 = vmatpush1.bf16.msra.mxu0 %v9505_v17  ;;  %8530 = vmatprep.subr.bf16.mxu1 %v9511_v20  ;;  %v9571_v17 = vld [vmem:[%s13234_s1 + $0x638] ss:$28 sps:$4 sm:$0xff]  }
 0x1d2   :  { %5229 = vmatprep.subr.bf16.mxu0 %v9510_v19  ;;  %v9568_v19 = vld [vmem:[%s13234_s1 + $0x9b0] ss:$28 sps:$4 sm:$0xff]   ;;  %v9572_v20 = vld [vmem:[%s13234_s1 + $0x478] ss:$28 sps:$4 sm:$0xff]  }
 0x1d3   :  { %8298 = vmatmul.mubr.msk.bf16.vlgmr.msra.gmra.mrb[4].mxu1 %vm4569_vm0, %v11325_v44 }
 0x1d4   :  { %5221 = vmatmul.mubr.bf16.vlgmr.msra.gmra.mrb[4].mxu0 %v10438_v18  ;;  %8531 = vmatpush3.bf16.msra.mxu1 %v9512_v25  ;;  %v9576_v25 = vld [vmem:[%s13234_s1 + $0x670] ss:$28 sps:$4 sm:$0xff]  }
 0x1d5   :  { %5230 = vmatpush1.bf16.msra.mxu0 %v9508_v24  ;;  %8532 = vmatprep.subr.bf16.mxu1 %v9516_v30  ;;  %v9575_v24 = vld [vmem:[%s13234_s1 + $0x9ec] ss:$28 sps:$4 sm:$0xff]  }
 0x1d6   :  { %5231 = vmatprep.subr.bf16.mxu0 %v9515_v27  ;;  %5466 = vmatprep.mubr.bf16.mxu1 %v10372_v60  ;;  %v9523_v60 = vld [vmem:[%s13234_s1 + $0x7b8] ss:$28 sps:$4 sm:$0xff]   ;;  %v9573_v27 = vld [vmem:[%s13234_s1 + $0x9e8] ss:$28 sps:$4 sm:$0xff]   ;;  %v9577_v30 = vld [vmem:[%s13234_s1 + $0x4b0] ss:$28 sps:$4 sm:$0xff]  }
 0x1d7   :  { %5261 = vmatprep.mubr.bf16.mxu0 %v10450_v22 }
 0x1d8   :  { %8533 = vmatpush3.bf16.msra.mxu1 %v9517_v32  ;;  %v9581_v32 = vld [vmem:[%s13234_s1 + $0x6a8] ss:$28 sps:$4 sm:$0xff]  }
 0x1d9   :  { %5232 = vmatpush1.bf16.msra.mxu0 %v9513_v31  ;;  %8534 = vmatprep.subr.bf16.mxu1 %v9521_v34  ;;  %v9580_v31 = vld [vmem:[%s13234_s1 + $0xa24] ss:$28 sps:$4 sm:$0xff]  }
 0x1da   :  { %5233 = vmatprep.subr.bf16.mxu0 %v9520_v33  ;;  %v9578_v33 = vld [vmem:[%s13234_s1 + $0xa20] ss:$28 sps:$4 sm:$0xff]   ;;  %v9582_v34 = vld [vmem:[%s13234_s1 + $0x4e8] ss:$28 sps:$4 sm:$0xff]  }
 0x1dc   :  { %8535 = vmatpush3.bf16.msra.mxu1 %v9522_v36  ;;  %v9586_v36 = vld [vmem:[%s13234_s1 + $0x6e0] ss:$28 sps:$4 sm:$0xff]  }
 0x1dd   :  { %5234 = vmatpush1.bf16.msra.mxu0 %v9518_v35  ;;  %8536 = vmatprep.subr.bf16.mxu1 %v9526_v38  ;;  %v9585_v35 = vld [vmem:[%s13234_s1 + $0xa5c] ss:$28 sps:$4 sm:$0xff]  }
 0x1de   :  { %5235 = vmatprep.subr.bf16.mxu0 %v9525_v37  ;;  %v9583_v37 = vld [vmem:[%s13234_s1 + $0xa58] ss:$28 sps:$4 sm:$0xff]   ;;  %v9587_v38 = vld [vmem:[%s13234_s1 + $0x520] ss:$28 sps:$4 sm:$0xff]  }
 0x1e0   :  { %8537 = vmatpush3.bf16.msra.mxu1 %v9527_v40  ;;  %v9591_v40 = vld [vmem:[%s13234_s1 + $0x8d8] ss:$28 sps:$4 sm:$0xff]  }
 0x1e1   :  { %5236 = vmatpush1.bf16.msra.mxu0 %v9523_v60  ;;  %8538 = vmatprep.subr.bf16.mxu1 %v9531_v43  ;;  %v9590_v60 = vld [vmem:[%s13234_s1 + $0xa94] ss:$28 sps:$4 sm:$0xff]  }
 0x1e2   :  { %5237 = vmatprep.subr.bf16.mxu0 %v9530_v41  ;;  %v9588_v41 = vld [vmem:[%s13234_s1 + $0xa90] ss:$28 sps:$4 sm:$0xff]   ;;  %v9592_v43 = vld [vmem:[%s13234_s1 + $0x718] ss:$28 sps:$4 sm:$0xff]  }
 0x1e4   :  { %8539 = vmatpush3.bf16.msra.mxu1 %v9532_v47  ;;  %v9596_v47 = vld [vmem:[%s13234_s1 + $0x910] ss:$28 sps:$4 sm:$0xff]  }
 0x1e5   :  { %5238 = vmatpush1.bf16.msra.mxu0 %v9528_v46  ;;  %8540 = vmatprep.subr.bf16.mxu1 %v9536_v49  ;;  %v9595_v46 = vld [vmem:[%s13234_s1 + $0xacc] ss:$28 sps:$4 sm:$0xff]  }
 0x1e6   :  { %5239 = vmatprep.subr.bf16.mxu0 %v9535_v48  ;;  %v9593_v48 = vld [vmem:[%s13234_s1 + $0xac8] ss:$28 sps:$4 sm:$0xff]   ;;  %v9597_v49 = vld [vmem:[%s13234_s1 + $0x750] ss:$28 sps:$4 sm:$0xff]  }
 0x1e8   :  { %8541 = vmatpush3.bf16.msra.mxu1 %v9537_v51  ;;  %v9601_v51 = vld [vmem:[%s13234_s1 + $0x948] ss:$28 sps:$4 sm:$0xff]  }
 0x1e9   :  { %5240 = vmatpush1.bf16.msra.mxu0 %v9533_v50  ;;  %8542 = vmatprep.subr.bf16.mxu1 %v9541_v53  ;;  %v9600_v50 = vld [vmem:[%s13234_s1 + $0xb04] ss:$28 sps:$4 sm:$0xff]   ;;  %v9605_v53 = vld [vmem:[%s13234_s1 + $0xb3c] ss:$28 sps:$4 sm:$0xff]  }
 0x1ea   :  { %5241 = vmatprep.subr.bf16.mxu0 %v9540_v52  ;;  %v9598_v52 = vld [vmem:[%s13234_s1 + $0xb00] ss:$28 sps:$4 sm:$0xff]  }
 0x1ec   :  { %8543 = vmatpush3.bf16.msra.mxu1 %v9542_v55  ;;  %v9603_v55 = vld [vmem:[%s13234_s1 + $0xb38] ss:$28 sps:$4 sm:$0xff]  }
 0x1ed   :  { %5242 = vmatpush1.bf16.msra.mxu0 %v9538_v54  ;;  %8544 = vmatprep.subr.bf16.mxu1 %v9546_v58  ;;  %v9606_v54 = vld [vmem:[%s13234_s1 + $0x980] ss:$28 sps:$4 sm:$0xff]   ;;  %v9610_v58 = vld [vmem:[%s13234_s1 + $0xb74] ss:$28 sps:$4 sm:$0xff]  }
 0x1ee   :  { %5243 = vmatprep.subr.bf16.mxu0 %v9545_v57  ;;  %v11962_v57 = vld [vmem:[%s13235_s2] sm:$0x7f] }
 0x1f0   :  { %8545 = vmatpush3.bf16.msra.mxu1 %v9547_v61  ;;  %v834_v61 = vsub.s32 0, %v10326_v42 }
 0x1f1   :  { %5244 = vmatpush1.bf16.msra.mxu0 %v9543_v59  ;;  %8552 = vmatprep.subr.bf16.mxu1 %v9551_v63  ;;  %v9611_v59 = vld [vmem:[%s13234_s1 + $0x9b8] ss:$28 sps:$4 sm:$0xff]   ;;  %v9608_v63 = vld [vmem:[%s13234_s1 + $0xb70] ss:$28 sps:$4 sm:$0xff]  }
 0x1f2   :  { %5245 = vmatprep.subr.bf16.mxu0 %v9550_v62  ;;  %v838_v62 = vsub.s32 1, %v10326_v42 }
 0x1f3   :  { %5467 = vmatmul.mubr.bf16.vlgmr.msra.gmra.mrb[8].mxu1 %v10420_v12  ;;  %v9558_v12 = vld [vmem:[%s13234_s1 + $0x940] ss:$28 sps:$4 sm:$0xff]  }
 0x1f4   :  { %8553 = vmatpush3.bf16.msra.mxu1 %v9552_v2  ;;  %5506 = vmatprep.mubr.bf16.mxu1 %v10385_v0  ;;  %v9563_v0 = vld [vmem:[%s13234_s1 + $0x978] ss:$28 sps:$4 sm:$0xff]   ;;  %v9615_v2 = vld [vmem:[%s13234_s1 + $0xbac] ss:$28 sps:$4 sm:$0xff]  }
 0x1f5   :  { %5246 = vmatpush1.bf16.msra.mxu0 %v9548_v1  ;;  %8554 = vmatprep.subr.bf16.mxu1 %v9556_v4  ;;  %v9612_v1 = vld [vmem:[%s13234_s1 + $0x7f8] ss:$28 sps:$4 sm:$0xff]   ;;  %v9616_v4 = vld [vmem:[%s13234_s1 + $0x9f0] ss:$28 sps:$4 sm:$0xff]  }
 0x1f6   :  { %5247 = vmatprep.subr.bf16.mxu0 %v9555_v3  ;;  %v835_v3 = vrot.slane %v11962_v57, %v834_v61 }
 0x1f8   :  { %8555 = vmatpush3.bf16.msra.mxu1 %v9557_v6  ;;  %v9613_v6 = vld [vmem:[%s13234_s1 + $0xba8] ss:$28 sps:$4 sm:$0xff]  }
 0x1f9   :  { %5248 = vmatpush1.bf16.msra.mxu0 %v9553_v5  ;;  %8556 = vmatprep.subr.bf16.mxu1 %v9561_v8  ;;  %v839_v5 = vrot.slane %v11962_v57, %v838_v62  ;;  %v9620_v8 = vld [vmem:[%s13234_s1 + $0xbe4] ss:$28 sps:$4 sm:$0xff]  }
 0x1fa   :  { %5249 = vmatprep.subr.bf16.mxu0 %v9560_v7  ;;  %v9617_v7 = vld [vmem:[%s13234_s1 + $0x830] ss:$28 sps:$4 sm:$0xff]  }
 0x1fc   :  { %8557 = vmatpush3.bf16.msra.mxu1 %v9562_v9  ;;  %v4608_v9 = vadd.f32 %v11134_v21, %v835_v3  ;;  %v9625_v21 = vld [vmem:[%s13234_s1 + $0xc1c] ss:$28 sps:$4 sm:$0xff]   ;;  %v9670_v3 = vld [vmem:[%s13234_s1 + $0xe14] ss:$28 sps:$4 sm:$0xff]  }
 0x1fd   :  { %5250 = vmatpush1.bf16.msra.mxu0 %v9558_v12  ;;  %8558 = vmatprep.subr.bf16.mxu1 %v9566_v14  ;;  %v9621_v12 = vld [vmem:[%s13234_s1 + $0xa28] ss:$28 sps:$4 sm:$0xff]  }
 0x1fe   :  { %5251 = vmatprep.subr.bf16.mxu0 %v9565_v11  ;;  %v4610_v11 = vadd.f32 %v11136_v23, %v839_v5  ;;  %v9626_v23 = vld [vmem:[%s13234_s1 + $0xa60] ss:$28 sps:$4 sm:$0xff]  }
 0x200   :  { %8559 = vmatpush3.bf16.msra.mxu1 %v9567_v15  ;;  %v9622_v15 = vld [vmem:[%s13234_s1 + $0x868] ss:$28 sps:$4 sm:$0xff]  }
 0x201   :  { %5252 = vmatpush1.bf16.msra.mxu0 %v9563_v0  ;;  %8560 = vmatprep.subr.bf16.mxu1 %v9571_v17  ;;  %v9618_v0 = vld [vmem:[%s13234_s1 + $0xbe0] ss:$28 sps:$4 sm:$0xff]  }
 0x202   :  { %5253 = vmatprep.subr.bf16.mxu0 %v9570_v16 }
 0x204   :  { %8561 = vmatpush3.bf16.msra.mxu1 %v9572_v20 }
 0x205   :  { %5254 = vmatpush1.bf16.msra.mxu0 %v9568_v19  ;;  %8562 = vmatprep.subr.bf16.mxu1 %v9576_v25  ;;  %v9623_v25 = vld [vmem:[%s13234_s1 + $0xc18] ss:$28 sps:$4 sm:$0xff]  }
 0x206   :  { %5255 = vmatprep.subr.bf16.mxu0 %v9575_v24 }
 0x208   :  { %8563 = vmatpush3.bf16.msra.mxu1 %v9577_v30  ;;  %v9630_v30 = vld [vmem:[%s13234_s1 + $0xc54] ss:$28 sps:$4 sm:$0xff]  }
 0x209   :  { %5256 = vmatpush1.bf16.msra.mxu0 %v9573_v27  ;;  %8564 = vmatprep.subr.bf16.mxu1 %v9581_v32  ;;  %v9627_v27 = vld [vmem:[%s13234_s1 + $0x8a0] ss:$28 sps:$4 sm:$0xff]   ;;  %v9628_v32 = vld [vmem:[%s13234_s1 + $0xc50] ss:$28 sps:$4 sm:$0xff]  }
 0x20a   :  { %5257 = vmatprep.subr.bf16.mxu0 %v9580_v31  ;;  %v9631_v31 = vld [vmem:[%s13234_s1 + $0xc58] ss:$28 sps:$4 sm:$0xff]  }
 0x20c   :  { %8565 = vmatpush3.bf16.msra.mxu1 %v9582_v34  ;;  %v9635_v34 = vld [vmem:[%s13234_s1 + $0xc8c] ss:$28 sps:$4 sm:$0xff]  }
 0x20d   :  { %5258 = vmatpush1.bf16.msra.mxu0 %v9578_v33  ;;  %8566 = vmatprep.subr.bf16.mxu1 %v9586_v36  ;;  %v9632_v33 = vld [vmem:[%s13234_s1 + $0xa98] ss:$28 sps:$4 sm:$0xff]   ;;  %v9633_v36 = vld [vmem:[%s13234_s1 + $0xc88] ss:$28 sps:$4 sm:$0xff]  }
 0x20e   :  { %5259 = vmatprep.subr.bf16.mxu0 %v9585_v35  ;;  %v9636_v35 = vld [vmem:[%s13234_s1 + $0xc90] ss:$28 sps:$4 sm:$0xff]  }
 0x210   :  { %8567 = vmatpush3.bf16.msra.mxu1 %v9587_v38  ;;  %v9640_v38 = vld [vmem:[%s13234_s1 + $0xcc4] ss:$28 sps:$4 sm:$0xff]  }
 0x211   :  { %5260 = vmatpush1.bf16.msra.mxu0 %v9583_v37  ;;  %8574 = vmatprep.subr.bf16.mxu1 %v9591_v40  ;;  %v9637_v37 = vld [vmem:[%s13234_s1 + $0xad0] ss:$28 sps:$4 sm:$0xff]   ;;  %v9642_v40 = vld [vmem:[%s13234_s1 + $0xb08] ss:$28 sps:$4 sm:$0xff]  }
 0x212   :  { %5270 = vmatprep.subr.bf16.mxu0 %v9590_v60  ;;  %v9638_v60 = vld [vmem:[%s13234_s1 + $0xcc0] ss:$28 sps:$4 sm:$0xff]  }
 0x213   :  { %5507 = vmatmul.mubr.bf16.vlgmr.msra.gmra.mrb[12].mxu1 %v10438_v18  ;;  %v9602_v18 = vld [vmem:[%s13234_s1 + $0x788] ss:$28 sps:$4 sm:$0xff]  }
 0x214   :  { %5262 = vmatmul.mubr.bf16.vlgmr.msra.gmra.mrb[4].mxu0 %v10641_v28  ;;  %8575 = vmatpush3.bf16.msra.mxu1 %v9592_v43  ;;  %v9643_v43 = vld [vmem:[%s13234_s1 + $0xcf8] ss:$28 sps:$4 sm:$0xff]  }
 0x215   :  { %5271 = vmatpush1.bf16.msra.mxu0 %v9588_v41  ;;  %8576 = vmatprep.subr.bf16.mxu1 %v9596_v47  ;;  %v9645_v41 = vld [vmem:[%s13234_s1 + $0xcfc] ss:$28 sps:$4 sm:$0xff]   ;;  %v9650_v47 = vld [vmem:[%s13234_s1 + $0xd34] ss:$28 sps:$4 sm:$0xff]  }
 0x216   :  { %5272 = vmatprep.subr.bf16.mxu0 %v9595_v46  ;;  %5546 = vmatprep.mubr.bf16.mxu1 %v10450_v22  ;;  %v9607_v22 = vld [vmem:[%s13234_s1 + $0x7c0] ss:$28 sps:$4 sm:$0xff]  }
 0x217   :  { %5302 = vmatprep.mubr.bf16.mxu0 %v10654_v10  ;;  %v9647_v46 = vld [vmem:[%s13234_s1 + $0xb40] ss:$28 sps:$4 sm:$0xff]  }
 0x218   :  { %8577 = vmatpush3.bf16.msra.mxu1 %v9597_v49  ;;  %v9648_v49 = vld [vmem:[%s13234_s1 + $0xd30] ss:$28 sps:$4 sm:$0xff]  }
 0x219   :  { %5273 = vmatpush1.bf16.msra.mxu0 %v9593_v48  ;;  %8578 = vmatprep.subr.bf16.mxu1 %v9601_v51  ;;  %v9651_v48 = vld [vmem:[%s13234_s1 + $0xd38] ss:$28 sps:$4 sm:$0xff]   ;;  %v9655_v51 = vld [vmem:[%s13234_s1 + $0xd6c] ss:$28 sps:$4 sm:$0xff]  }
 0x21a   :  { %5274 = vmatprep.subr.bf16.mxu0 %v9600_v50  ;;  %v9652_v50 = vld [vmem:[%s13234_s1 + $0xb78] ss:$28 sps:$4 sm:$0xff]  }
 0x21c   :  { %8579 = vmatpush3.bf16.msra.mxu1 %v9602_v18  ;;  %v9653_v18 = vld [vmem:[%s13234_s1 + $0xd68] ss:$28 sps:$4 sm:$0xff]  }
 0x21d   :  { %5275 = vmatpush1.bf16.msra.mxu0 %v9598_v52  ;;  %8580 = vmatprep.subr.bf16.mxu1 %v9606_v54  ;;  %v9656_v52 = vld [vmem:[%s13234_s1 + $0xd70] ss:$28 sps:$4 sm:$0xff]   ;;  %v9660_v54 = vld [vmem:[%s13234_s1 + $0xda4] ss:$28 sps:$4 sm:$0xff]  }
 0x21e   :  { %5276 = vmatprep.subr.bf16.mxu0 %v9605_v53  ;;  %v9657_v53 = vld [vmem:[%s13234_s1 + $0xbb0] ss:$28 sps:$4 sm:$0xff]  }
 0x220   :  { %8581 = vmatpush3.bf16.msra.mxu1 %v9607_v22  ;;  %v9658_v22 = vld [vmem:[%s13234_s1 + $0xda0] ss:$28 sps:$4 sm:$0xff]  }
 0x221   :  { %5277 = vmatpush1.bf16.msra.mxu0 %v9603_v55  ;;  %8582 = vmatprep.subr.bf16.mxu1 %v9611_v59  ;;  %v9661_v55 = vld [vmem:[%s13234_s1 + $0xda8] ss:$28 sps:$4 sm:$0xff]   ;;  %v9665_v59 = vld [vmem:[%s13234_s1 + $0xddc] ss:$28 sps:$4 sm:$0xff]  }
 0x222   :  { %5278 = vmatprep.subr.bf16.mxu0 %v9610_v58  ;;  %v9662_v58 = vld [vmem:[%s13234_s1 + $0xbe8] ss:$28 sps:$4 sm:$0xff]  }
 0x224   :  { %8583 = vmatpush3.bf16.msra.mxu1 %v9612_v1  ;;  %v9663_v1 = vld [vmem:[%s13234_s1 + $0xdd8] ss:$28 sps:$4 sm:$0xff]  }
 0x225   :  { %5279 = vmatpush1.bf16.msra.mxu0 %v9608_v63  ;;  %8584 = vmatprep.subr.bf16.mxu1 %v9616_v4  ;;  %v9666_v63 = vld [vmem:[%s13234_s1 + $0xde0] ss:$28 sps:$4 sm:$0xff]   ;;  %v9671_v4 = vld [vmem:[%s13234_s1 + $0xfd8] ss:$28 sps:$4 sm:$0xff]  }
 0x226   :  { %5280 = vmatprep.subr.bf16.mxu0 %v9615_v2  ;;  %v9667_v2 = vld [vmem:[%s13234_s1 + $0xc20] ss:$28 sps:$4 sm:$0xff]  }
 0x227   :  { %v4853_v14 = vpop.f32.mrb[0].mxu0 }
 0x228   :  { %v12010_v16 = vadd.f32 %v4853_v14, %v4608_v9  ;;  %v4855_v17 = vpop.f32.mrb[1].mxu0  ;;  %8585 = vmatpush3.bf16.msra.mxu1 %v9617_v7 }
 0x229   :  { %v12018_v19 = vadd.f32 %v4855_v17, %v4610_v11  ;;  %v4857_v20 = vpop.f32.mrb[2].mxu0  ;;  %5281 = vmatpush1.bf16.msra.mxu0 %v9613_v6  ;;  %8586 = vmatprep.subr.bf16.mxu1 %v9621_v12 }
 0x22a   :  { %v4858_v24 = vpop.f32.mrb[3].mxu0  ;;  %5282 = vmatprep.subr.bf16.mxu0 %v9620_v8 }
 0x22c   :  { %8587 = vmatpush3.bf16.msra.mxu1 %v9622_v15 }
 0x22d   :  { %5283 = vmatpush1.bf16.msra.mxu0 %v9618_v0  ;;  %8588 = vmatprep.subr.bf16.mxu1 %v9626_v23 }
 0x22e   :  { %5284 = vmatprep.subr.bf16.mxu0 %v9625_v21 }
 0x230   :  { %8589 = vmatpush3.bf16.msra.mxu1 %v9627_v27 }
 0x231   :  { %5285 = vmatpush1.bf16.msra.mxu0 %v9623_v25  ;;  %8596 = vmatprep.subr.bf16.mxu1 %v9631_v31 }
 0x232   :  { %5286 = vmatprep.subr.bf16.mxu0 %v9630_v30 }
 0x233   :  { %5547 = vmatmul.mubr.bf16.vlgmr.msra.gmra.mrb[16].mxu1 %v10641_v28  ;;  %v9641_v28 = vld [vmem:[%s13234_s1 + $0xcc8] ss:$28 sps:$4 sm:$0xff]  }
 0x234   :  { %8597 = vmatpush3.bf16.msra.mxu1 %v9632_v33  ;;  %5586 = vmatprep.mubr.bf16.mxu1 %v10654_v10  ;;  %v9646_v10 = vld [vmem:[%s13234_s1 + $0xd00] ss:$28 sps:$4 sm:$0xff]  }
 0x235   :  { %5287 = vmatpush1.bf16.msra.mxu0 %v9628_v32  ;;  %8598 = vmatprep.subr.bf16.mxu1 %v9636_v35 }
 0x236   :  { %5288 = vmatprep.subr.bf16.mxu0 %v9635_v34 }
 0x238   :  { %8599 = vmatpush3.bf16.msra.mxu1 %v9637_v37 }
 0x239   :  { %5289 = vmatpush1.bf16.msra.mxu0 %v9633_v36  ;;  %8600 = vmatprep.subr.bf16.mxu1 %v9641_v28 }
 0x23a   :  { %5290 = vmatprep.subr.bf16.mxu0 %v9640_v38 }
 0x23c   :  { %8601 = vmatpush3.bf16.msra.mxu1 %v9642_v40 }
 0x23d   :  { %5291 = vmatpush1.bf16.msra.mxu0 %v9638_v60  ;;  %8602 = vmatprep.subr.bf16.mxu1 %v9646_v10 }
 0x23e   :  { %5292 = vmatprep.subr.bf16.mxu0 %v9645_v41 }
 0x240   :  { %8603 = vmatpush3.bf16.msra.mxu1 %v9647_v46 }
 0x241   :  { %5293 = vmatpush1.bf16.msra.mxu0 %v9643_v43  ;;  %8604 = vmatprep.subr.bf16.mxu1 %v9651_v48 }
 0x242   :  { %5294 = vmatprep.subr.bf16.mxu0 %v9650_v47 }
 0x244   :  { %8605 = vmatpush3.bf16.msra.mxu1 %v9652_v50 }
 0x245   :  { %5295 = vmatpush1.bf16.msra.mxu0 %v9648_v49  ;;  %8606 = vmatprep.subr.bf16.mxu1 %v9656_v52 }
 0x246   :  { %5296 = vmatprep.subr.bf16.mxu0 %v9655_v51 }
 0x248   :  { %8607 = vmatpush3.bf16.msra.mxu1 %v9657_v53 }
 0x249   :  { %5297 = vmatpush1.bf16.msra.mxu0 %v9653_v18  ;;  %8608 = vmatprep.subr.bf16.mxu1 %v9661_v55 }
 0x24a   :  { %5298 = vmatprep.subr.bf16.mxu0 %v9660_v54 }
 0x24c   :  { %8609 = vmatpush3.bf16.msra.mxu1 %v9662_v58 }
 0x24d   :  { %5299 = vmatpush1.bf16.msra.mxu0 %v9658_v22  ;;  %8610 = vmatprep.subr.bf16.mxu1 %v9666_v63 }
 0x24e   :  { %5300 = vmatprep.subr.bf16.mxu0 %v9665_v59 }
 0x24f   :  { %12 = vsyncpa [#allocation3], 0  ;;  %v9668_v5 = vld [vmem:[%s13234_s1 + $0xe10] ss:$28 sps:$4 sm:$0xff]   ;;  %v9672_v6 = vld [vmem:[%s13234_s1 + $0xe18] ss:$28 sps:$4 sm:$0xff]  }
 0x250   :  { %8611 = vmatpush3.bf16.msra.mxu1 %v9667_v2  ;;  %v9675_v7 = vld [vmem:[%s13234_s1 + $0xe4c] ss:$28 sps:$4 sm:$0xff]   ;;  %v9680_v11 = vld [vmem:[%s13234_s1 + $0xe84] ss:$28 sps:$4 sm:$0xff]   ;;  %v9685_v15 = vld [vmem:[%s13234_s1 + $0xebc] ss:$28 sps:$4 sm:$0xff]  }
 0x251   :  { %5301 = vmatpush1.bf16.msra.mxu0 %v9663_v1  ;;  %8618 = vmatprep.subr.bf16.mxu1 %v9671_v4  ;;  %v9676_v8 = vld [vmem:[%s13234_s1 + $0x1010] ss:$28 sps:$4 sm:$0xff]   ;;  %v9673_v12 = vld [vmem:[%s13234_s1 + $0xe48] ss:$28 sps:$4 sm:$0xff]   ;;  %v9678_v14 = vld [vmem:[%s13234_s1 + $0xe80] ss:$28 sps:$4 sm:$0xff]  }
 0x252   :  { %5311 = vmatprep.subr.bf16.mxu0 %v9670_v3  ;;  %v9677_v9 = vld [vmem:[%s13234_s1 + $0xe50] ss:$28 sps:$4 sm:$0xff]   ;;  %v9682_v0 = vld [vmem:[%s13234_s1 + $0xe88] ss:$28 sps:$4 sm:$0xff]   ;;  %v9683_v17 = vld [vmem:[%s13234_s1 + $0xeb8] ss:$28 sps:$4 sm:$0xff]  }
 0x253   :  { %5587 = vmatmul.mubr.bf16.vlgmr.msra.gmra.mrb[20].mxu1 %v10849_v39  ;;  %v9687_v21 = vld [vmem:[%s13234_s1 + $0xec0] ss:$28 sps:$4 sm:$0xff]   ;;  %v9690_v23 = vld [vmem:[%s13234_s1 + $0xef4] ss:$28 sps:$4 sm:$0xff]   ;;  %v9695_v27 = vld [vmem:[%s13234_s1 + $0xf2c] ss:$28 sps:$4 sm:$0xff]  }
 0x254   :  { %5303 = vmatmul.mubr.bf16.vlgmr.msra.gmra.mrb[4].mxu0 %v10849_v39  ;;  %8619 = vmatpush3.bf16.msra.mxu1 %v9672_v6  ;;  %v9681_v39 = vld [vmem:[%s13234_s1 + $0x1048] ss:$28 sps:$4 sm:$0xff]   ;;  %v9691_v20 = vld [vmem:[%s13234_s1 + $0x10b8] ss:$28 sps:$4 sm:$0xff]   ;;  %v9688_v24 = vld [vmem:[%s13234_s1 + $0xef0] ss:$28 sps:$4 sm:$0xff]  }
 0x255   :  { %5312 = vmatpush1.bf16.msra.mxu0 %v9668_v5  ;;  %8620 = vmatprep.subr.bf16.mxu1 %v9676_v8  ;;  %v9692_v25 = vld [vmem:[%s13234_s1 + $0xef8] ss:$28 sps:$4 sm:$0xff]   ;;  %v9696_v30 = vld [vmem:[%s13234_s1 + $0x10f0] ss:$28 sps:$4 sm:$0xff]   ;;  %v9693_v31 = vld [vmem:[%s13234_s1 + $0xf28] ss:$28 sps:$4 sm:$0xff]  }
 0x256   :  { %5313 = vmatprep.subr.bf16.mxu0 %v9675_v7  ;;  %5626 = vmatprep.mubr.bf16.mxu1 %v10864_v45  ;;  %v9697_v32 = vld [vmem:[%s13234_s1 + $0xf30] ss:$28 sps:$4 sm:$0xff]   ;;  %v9700_v33 = vld [vmem:[%s13234_s1 + $0xf64] ss:$28 sps:$4 sm:$0xff]   ;;  %v9705_v37 = vld [vmem:[%s13234_s1 + $0xf9c] ss:$28 sps:$4 sm:$0xff]  }
 0x257   :  { %5343 = vmatprep.mubr.bf16.mxu0 %v10864_v45  ;;  %v9686_v45 = vld [vmem:[%s13234_s1 + $0x1080] ss:$28 sps:$4 sm:$0xff]   ;;  %v9701_v34 = vld [vmem:[%s13234_s1 + $0x1128] ss:$28 sps:$4 sm:$0xff]   ;;  %v9703_v28 = vld [vmem:[%s13234_s1 + $0xf98] ss:$28 sps:$4 sm:$0xff]  }
 0x258   :  { %8621 = vmatpush3.bf16.msra.mxu1 %v9677_v9  ;;  %v9698_v35 = vld [vmem:[%s13234_s1 + $0xf60] ss:$28 sps:$4 sm:$0xff]   ;;  %v9702_v36 = vld [vmem:[%s13234_s1 + $0xf68] ss:$28 sps:$4 sm:$0xff]   ;;  %v9710_v40 = vld [vmem:[%s13234_s1 + $0xfd4] ss:$28 sps:$4 sm:$0xff]  }
 0x259   :  { %5314 = vmatpush1.bf16.msra.mxu0 %v9673_v12  ;;  %8622 = vmatprep.subr.bf16.mxu1 %v9681_v39  ;;  %v9706_v38 = vld [vmem:[%s13234_s1 + $0x1160] ss:$28 sps:$4 sm:$0xff]   ;;  %v9711_v41 = vld [vmem:[%s13234_s1 + $0x1358] ss:$28 sps:$4 sm:$0xff]   ;;  %v9708_v10 = vld [vmem:[%s13234_s1 + $0xfd0] ss:$28 sps:$4 sm:$0xff]  }
 0x25a   :  { %5315 = vmatprep.subr.bf16.mxu0 %v9680_v11  ;;  %v9707_v60 = vld [vmem:[%s13234_s1 + $0xfa0] ss:$28 sps:$4 sm:$0xff]   ;;  %v9712_v43 = vld [vmem:[%s13234_s1 + $0x1198] ss:$28 sps:$4 sm:$0xff]   ;;  %v9715_v46 = vld [vmem:[%s13234_s1 + $0x100c] ss:$28 sps:$4 sm:$0xff]  }
 0x25b   :  { %v9716_v47 = vld [vmem:[%s13234_s1 + $0x1390] ss:$28 sps:$4 sm:$0xff]   ;;  %v9713_v48 = vld [vmem:[%s13234_s1 + $0x1008] ss:$28 sps:$4 sm:$0xff]   ;;  %v9718_v52 = vld [vmem:[%s13234_s1 + $0x1040] ss:$28 sps:$4 sm:$0xff]  }
 0x25c   :  { %8623 = vmatpush3.bf16.msra.mxu1 %v9682_v0  ;;  %v9717_v49 = vld [vmem:[%s13234_s1 + $0x11d0] ss:$28 sps:$4 sm:$0xff]   ;;  %v9720_v50 = vld [vmem:[%s13234_s1 + $0x1044] ss:$28 sps:$4 sm:$0xff]   ;;  %v9725_v53 = vld [vmem:[%s13234_s1 + $0x107c] ss:$28 sps:$4 sm:$0xff]  }
 0x25d   :  { %5316 = vmatpush1.bf16.msra.mxu0 %v9678_v14  ;;  %8624 = vmatprep.subr.bf16.mxu1 %v9686_v45  ;;  %v9721_v51 = vld [vmem:[%s13234_s1 + $0x13c8] ss:$28 sps:$4 sm:$0xff]   ;;  %v9726_v54 = vld [vmem:[%s13234_s1 + $0x1400] ss:$28 sps:$4 sm:$0xff]   ;;  %v9723_v55 = vld [vmem:[%s13234_s1 + $0x1078] ss:$28 sps:$4 sm:$0xff]  }
 0x25e   :  { %5317 = vmatprep.subr.bf16.mxu0 %v9685_v15  ;;  %v9722_v18 = vld [vmem:[%s13234_s1 + $0x1208] ss:$28 sps:$4 sm:$0xff]   ;;  %v9727_v22 = vld [vmem:[%s13234_s1 + $0x1240] ss:$28 sps:$4 sm:$0xff]   ;;  %v9730_v58 = vld [vmem:[%s13234_s1 + $0x10b4] ss:$28 sps:$4 sm:$0xff]  }
 0x25f   :  { %v9731_v59 = vld [vmem:[%s13234_s1 + $0x1438] ss:$28 sps:$4 sm:$0xff]   ;;  %v9728_v63 = vld [vmem:[%s13234_s1 + $0x10b0] ss:$28 sps:$4 sm:$0xff]   ;;  %v9733_v4 = vld [vmem:[%s13234_s1 + $0x10e8] ss:$28 sps:$4 sm:$0xff]  }
 0x260   :  { %8625 = vmatpush3.bf16.msra.mxu1 %v9687_v21  ;;  %v9732_v1 = vld [vmem:[%s13234_s1 + $0x1278] ss:$28 sps:$4 sm:$0xff]   ;;  %v9735_v2 = vld [vmem:[%s13234_s1 + $0x10ec] ss:$28 sps:$4 sm:$0xff]   ;;  %v9740_v6 = vld [vmem:[%s13234_s1 + $0x1124] ss:$28 sps:$4 sm:$0xff]  }
 0x261   :  { %5318 = vmatpush1.bf16.msra.mxu0 %v9683_v17  ;;  %8626 = vmatprep.subr.bf16.mxu1 %v9691_v20  ;;  %v9736_v3 = vld [vmem:[%s13234_s1 + $0x1470] ss:$28 sps:$4 sm:$0xff]   ;;  %v9741_v7 = vld [vmem:[%s13234_s1 + $0x14a8] ss:$28 sps:$4 sm:$0xff]   ;;  %v9738_v8 = vld [vmem:[%s13234_s1 + $0x1120] ss:$28 sps:$4 sm:$0xff]  }
 0x262   :  { %5319 = vmatprep.subr.bf16.mxu0 %v9690_v23  ;;  %v9737_v5 = vld [vmem:[%s13234_s1 + $0x12b0] ss:$28 sps:$4 sm:$0xff]   ;;  %v9742_v12 = vld [vmem:[%s13234_s1 + $0x12e8] ss:$28 sps:$4 sm:$0xff]   ;;  %v9745_v9 = vld [vmem:[%s13234_s1 + $0x115c] ss:$28 sps:$4 sm:$0xff]  }
 0x263   :  { %v9746_v11 = vld [vmem:[%s13234_s1 + $0x14e0] ss:$28 sps:$4 sm:$0xff]   ;;  %v9743_v39 = vld [vmem:[%s13234_s1 + $0x1158] ss:$28 sps:$4 sm:$0xff]   ;;  %v9748_v15 = vld [vmem:[%s13234_s1 + $0x1190] ss:$28 sps:$4 sm:$0xff]  }
 0x264   :  { %8627 = vmatpush3.bf16.msra.mxu1 %v9692_v25  ;;  %v9747_v14 = vld [vmem:[%s13234_s1 + $0x1320] ss:$28 sps:$4 sm:$0xff]   ;;  %v9750_v0 = vld [vmem:[%s13234_s1 + $0x1194] ss:$28 sps:$4 sm:$0xff]   ;;  %v10166_v17 = vmov 0.0   ;;  %vm10167_vm1 = vmmov 0  }
 0x265   :  { %5320 = vmatpush1.bf16.msra.mxu0 %v9688_v24  ;;  %8628 = vmatprep.subr.bf16.mxu1 %v9696_v30  ;;  %v9751_v45 = vld [vmem:[%s13234_s1 + $0x1518] ss:$28 sps:$4 sm:$0xff]   ;;  %v9754_v21 = vld [vmem:[%s13234_s1 + $0x11cc] ss:$28 sps:$4 sm:$0xff]   ;;  %v9758_v24 = vld [vmem:[%s13234_s1 + $0x1204] ss:$28 sps:$4 sm:$0xff]  }
 0x266   :  { %5321 = vmatprep.subr.bf16.mxu0 %v9695_v27  ;;  %v9752_v23 = vld [vmem:[%s13234_s1 + $0x11c8] ss:$28 sps:$4 sm:$0xff]   ;;  %v9755_v20 = vld [vmem:[%s13234_s1 + $0x1550] ss:$28 sps:$4 sm:$0xff]   ;;  %v9762_v27 = vld [vmem:[%s13234_s1 + $0x123c] ss:$28 sps:$4 sm:$0xff]  }
 0x267   :  { %v9759_v25 = vld [vmem:[%s13234_s1 + $0x1588] ss:$28 sps:$4 sm:$0xff]   ;;  %v9763_v30 = vld [vmem:[%s13234_s1 + $0x15c0] ss:$28 sps:$4 sm:$0xff]   ;;  %vm6950_vm2 = vcmask 261120   ;;  %vm7497_vm3 = vcmask 130048  }
 0x268   :  { %8629 = vmatpush3.bf16.msra.mxu1 %v9697_v32  ;;  %v9769_v32 = vld [vmem:[%s13236_s3 + $0x4] ss:$16 sps:$4 sm:$0xff]   ;;  %s10168_s12 = smov [#allocation2]   ;;  %vm7581_vm4 = vcmask 74752  }
 0x269   :  { %5322 = vmatpush1.bf16.msra.mxu0 %v9693_v31  ;;  %8630 = vmatprep.subr.bf16.mxu1 %v9701_v34  ;;  %v9766_v31 = vld [vmem:[%s13234_s1 + $0x1274] ss:$28 sps:$4 sm:$0xff]   ;;  %s7589_s13 = sshll.u32 %s10168_s12, 4  ;;  %s7590_s13 = int_to_ptr.vmem [resolvable:$true] %s7589_s13 }
 0x26a   :  { %5323 = vmatprep.subr.bf16.mxu0 %v9700_v33  ;;  %v5715_v33 = vmax.f32 %v12018_v19, 0.0  ;;  %v9764_v34 = vld [vmem:[%s13234_s1 + $0x1270] ss:$28 sps:$4 sm:$0xff]   ;;  %v9775_v19 = vld [vmem:[%s13236_s3 + $0x24] ss:$16 sps:$4 sm:$0xff]   ;;  %p10145_p1 = scmp.lt.s32.totalorder %s7590_s13, %s7590_s13 }
 0x26c   :  { %8631 = vmatpush3.bf16.msra.mxu1 %v9702_v36  ;;  %v9772_v36 = vld [vmem:[%s13234_s1 + $0x12ac] ss:$28 sps:$4 sm:$0xff]  }
 0x26d   :  { %5324 = vmatpush1.bf16.msra.mxu0 %v9698_v35  ;;  %8632 = vmatprep.subr.bf16.mxu1 %v9706_v38  ;;  %v9767_v35 = vld [vmem:[%s13236_s3] ss:$16 sps:$4 sm:$0xff]   ;;  %v9770_v38 = vld [vmem:[%s13234_s1 + $0x12a8] ss:$28 sps:$4 sm:$0xff]  }
 0x26e   :  { %5325 = vmatprep.subr.bf16.mxu0 %v9705_v37  ;;  %v12380_v37 = vpack.c.bf16 %v5715_v33, %v5715_v33  ;;  %v9833_v33 = vld [vmem:[%s13236_s3 + $0x160] ss:$16 sps:$4 sm:$0xff]  }
 0x270   :  { %8633 = vmatpush3.bf16.msra.mxu1 %v9707_v60  ;;  %v9778_v60 = vld [vmem:[%s13234_s1 + $0x12e4] ss:$28 sps:$4 sm:$0xff]  }
 0x271   :  { %5326 = vmatpush1.bf16.msra.mxu0 %v9703_v28  ;;  %8640 = vmatprep.subr.bf16.mxu1 %v9711_v41  ;;  %v9773_v28 = vld [vmem:[%s13236_s3 + $0x20] ss:$16 sps:$4 sm:$0xff]  }
 0x272   :  { %5327 = vmatprep.subr.bf16.mxu0 %v9710_v40  ;;  %v9781_v40 = vld [vmem:[%s13236_s3 + $0x44] ss:$16 sps:$4 sm:$0xff]  }
 0x273   :  { %5627 = vmatmul.mubr.bf16.vlgmr.msra.gmra.mrb[24].mxu1 %v11055_v56 }
 0x274   :  { %8641 = vmatpush3.bf16.msra.mxu1 %v9712_v43  ;;  %5666 = vmatprep.mubr.bf16.mxu1 %v11068_v29 }
 0x275   :  { %5328 = vmatpush1.bf16.msra.mxu0 %v9708_v10  ;;  %8642 = vmatprep.subr.bf16.mxu1 %v9716_v47  ;;  %v9779_v47 = vld [vmem:[%s13236_s3 + $0x40] ss:$16 sps:$4 sm:$0xff]  }
 0x276   :  { %5329 = vmatprep.subr.bf16.mxu0 %v9715_v46  ;;  %v9776_v46 = vld [vmem:[%s13234_s1 + $0x12e0] ss:$28 sps:$4 sm:$0xff]  }
 0x278   :  { %8643 = vmatpush3.bf16.msra.mxu1 %v9717_v49  ;;  %v9784_v49 = vld [vmem:[%s13234_s1 + $0x131c] ss:$28 sps:$4 sm:$0xff]  }
 0x279   :  { %5330 = vmatpush1.bf16.msra.mxu0 %v9713_v48  ;;  %8644 = vmatprep.subr.bf16.mxu1 %v9721_v51  ;;  %v9782_v51 = vld [vmem:[%s13234_s1 + $0x1318] ss:$28 sps:$4 sm:$0xff]  }
 0x27a   :  { %5331 = vmatprep.subr.bf16.mxu0 %v9720_v50  ;;  %v9787_v50 = vld [vmem:[%s13236_s3 + $0x64] ss:$16 sps:$4 sm:$0xff]  }
 0x27c   :  { %8645 = vmatpush3.bf16.msra.mxu1 %v9722_v18  ;;  %v9790_v18 = vld [vmem:[%s13234_s1 + $0x1354] ss:$28 sps:$4 sm:$0xff]  }
 0x27d   :  { %5332 = vmatpush1.bf16.msra.mxu0 %v9718_v52  ;;  %8646 = vmatprep.subr.bf16.mxu1 %v9726_v54  ;;  %v9785_v52 = vld [vmem:[%s13236_s3 + $0x60] ss:$16 sps:$4 sm:$0xff]  }
 0x27e   :  { %5333 = vmatprep.subr.bf16.mxu0 %v9725_v53  ;;  %v9793_v53 = vld [vmem:[%s13236_s3 + $0x84] ss:$16 sps:$4 sm:$0xff]   ;;  %v9788_v54 = vld [vmem:[%s13234_s1 + $0x1350] ss:$28 sps:$4 sm:$0xff]  }
 0x280   :  { %8647 = vmatpush3.bf16.msra.mxu1 %v9727_v22  ;;  %v9796_v22 = vld [vmem:[%s13234_s1 + $0x138c] ss:$28 sps:$4 sm:$0xff]  }
 0x281   :  { %5334 = vmatpush1.bf16.msra.mxu0 %v9723_v55  ;;  %8648 = vmatprep.subr.bf16.mxu1 %v9731_v59  ;;  %v9791_v55 = vld [vmem:[%s13236_s3 + $0x80] ss:$16 sps:$4 sm:$0xff]   ;;  %v9794_v59 = vld [vmem:[%s13234_s1 + $0x1388] ss:$28 sps:$4 sm:$0xff]  }
 0x282   :  { %5335 = vmatprep.subr.bf16.mxu0 %v9730_v58  ;;  %v9799_v58 = vld [vmem:[%s13236_s3 + $0xa4] ss:$16 sps:$4 sm:$0xff]  }
 0x284   :  { %8649 = vmatpush3.bf16.msra.mxu1 %v9732_v1  ;;  %v9802_v1 = vld [vmem:[%s13234_s1 + $0x13c4] ss:$28 sps:$4 sm:$0xff]  }
 0x285   :  { %5336 = vmatpush1.bf16.msra.mxu0 %v9728_v63  ;;  %8650 = vmatprep.subr.bf16.mxu1 %v9736_v3  ;;  %v9797_v63 = vld [vmem:[%s13236_s3 + $0xa0] ss:$16 sps:$4 sm:$0xff]  }
 0x286   :  { %5337 = vmatprep.subr.bf16.mxu0 %v9735_v2  ;;  %v9805_v2 = vld [vmem:[%s13236_s3 + $0xc4] ss:$16 sps:$4 sm:$0xff]   ;;  %v9800_v3 = vld [vmem:[%s13234_s1 + $0x13c0] ss:$28 sps:$4 sm:$0xff]  }
 0x288   :  { %8651 = vmatpush3.bf16.msra.mxu1 %v9737_v5  ;;  %v9808_v5 = vld [vmem:[%s13234_s1 + $0x13fc] ss:$28 sps:$4 sm:$0xff]  }
 0x289   :  { %5338 = vmatpush1.bf16.msra.mxu0 %v9733_v4  ;;  %8652 = vmatprep.subr.bf16.mxu1 %v9741_v7  ;;  %v9803_v4 = vld [vmem:[%s13236_s3 + $0xc0] ss:$16 sps:$4 sm:$0xff]   ;;  %v9806_v7 = vld [vmem:[%s13234_s1 + $0x13f8] ss:$28 sps:$4 sm:$0xff]  }
 0x28a   :  { %5339 = vmatprep.subr.bf16.mxu0 %v9740_v6  ;;  %v9811_v6 = vld [vmem:[%s13236_s3 + $0xe4] ss:$16 sps:$4 sm:$0xff]  }
 0x28c   :  { %8653 = vmatpush3.bf16.msra.mxu1 %v9742_v12  ;;  %v9814_v12 = vld [vmem:[%s13234_s1 + $0x1434] ss:$28 sps:$4 sm:$0xff]  }
 0x28d   :  { %5340 = vmatpush1.bf16.msra.mxu0 %v9738_v8  ;;  %8654 = vmatprep.subr.bf16.mxu1 %v9746_v11  ;;  %v9809_v8 = vld [vmem:[%s13236_s3 + $0xe0] ss:$16 sps:$4 sm:$0xff]  }
 0x28e   :  { %5341 = vmatprep.subr.bf16.mxu0 %v9745_v9  ;;  %v9817_v9 = vld [vmem:[%s13236_s3 + $0x104] ss:$16 sps:$4 sm:$0xff]   ;;  %v9812_v11 = vld [vmem:[%s13234_s1 + $0x1430] ss:$28 sps:$4 sm:$0xff]  }
 0x290   :  { %8655 = vmatpush3.bf16.msra.mxu1 %v9747_v14  ;;  %v9820_v14 = vld [vmem:[%s13234_s1 + $0x146c] ss:$28 sps:$4 sm:$0xff]  }
 0x291   :  { %5342 = vmatpush1.bf16.msra.mxu0 %v9743_v39  ;;  %8689 = vmatprep.subr.bf16.mxu1 %v10166_v17  ;;  %v9815_v39 = vld [vmem:[%s13236_s3 + $0x100] ss:$16 sps:$4 sm:$0xff]  }
 0x292   :  { %5352 = vmatprep.subr.bf16.mxu0 %v9750_v0  ;;  %v9823_v0 = vld [vmem:[%s13236_s3 + $0x124] ss:$16 sps:$4 sm:$0xff]  }
 0x293   :  { %5667 = vmatmul.mubr.bf16.vlgmr.msra.gmra.mrb[28].mxu1 %v11260_v13 }
 0x294   :  { %5344 = vmatmul.mubr.bf16.vlgmr.msra.gmra.mrb[4].mxu0 %v11055_v56  ;;  %8690 = vmatpush3.bf16.msra.mxu1 %v9751_v45  ;;  %v9756_v56 = vld [vmem:[%s13234_s1 + $0x1200] ss:$28 sps:$4 sm:$0xff]  }
 0x295   :  { %5353 = vmatpush1.bf16.msra.mxu0 %v9748_v15  ;;  %8691 = vmatprep.subr.bf16.mxu1 %v10166_v17  ;;  %v9818_v15 = vld [vmem:[%s13234_s1 + $0x1468] ss:$28 sps:$4 sm:$0xff]   ;;  %v9821_v45 = vld [vmem:[%s13236_s3 + $0x120] ss:$16 sps:$4 sm:$0xff]  }
 0x296   :  { %5354 = vmatprep.subr.bf16.mxu0 %v9754_v21  ;;  %8697 = vmatprep.mubr.msk.bf16.mxu1 %vm10167_vm1, %v10166_v17  ;;  %v9829_v21 = vld [vmem:[%s13236_s3 + $0x144] ss:$16 sps:$4 sm:$0xff]  }
 0x297   :  { %5384 = vmatprep.mubr.bf16.mxu0 %v11068_v29  ;;  %v9760_v29 = vld [vmem:[%s13234_s1 + $0x1238] ss:$28 sps:$4 sm:$0xff]  }
 0x298   :  { %8692 = vmatpush3.bf16.msra.mxu1 %v9755_v20 }
 0x299   :  { %5355 = vmatpush1.bf16.msra.mxu0 %v9752_v23  ;;  %8693 = vmatprep.subr.bf16.mxu1 %v10166_v17 }
 0x29a   :  { %5356 = vmatprep.subr.bf16.mxu0 %v9758_v24  ;;  %v9824_v24 = vld [vmem:[%s13234_s1 + $0x14a0] ss:$28 sps:$4 sm:$0xff]  }
 0x29c   :  { %8694 = vmatpush3.bf16.msra.mxu1 %v9759_v25 }
 0x29d   :  { %5357 = vmatpush1.bf16.msra.mxu0 %v9756_v56  ;;  %8695 = vmatprep.subr.bf16.mxu1 %v10166_v17  ;;  %v9826_v17 = vld [vmem:[%s13234_s1 + $0x14a4] ss:$28 sps:$4 sm:$0xff]  }
 0x29e   :  { %5358 = vmatprep.subr.bf16.mxu0 %v9762_v27  ;;  %v9827_v56 = vld [vmem:[%s13236_s3 + $0x140] ss:$16 sps:$4 sm:$0xff]  }
 0x2a0   :  { %8696 = vmatpush3.bf16.msra.mxu1 %v9763_v30  ;;  %v9835_v30 = vld [vmem:[%s13236_s3 + $0x164] ss:$16 sps:$4 sm:$0xff]  }
 0x2a1   :  { %5359 = vmatpush1.bf16.msra.mxu0 %v9760_v29  ;;  %6954 = vmatprep.subr.bf16.mxu1 %v9769_v32  ;;  %v9832_v29 = vld [vmem:[%s13234_s1 + $0x14dc] ss:$28 sps:$4 sm:$0xff]  }
 0x2a2   :  { %5360 = vmatprep.subr.bf16.mxu0 %v9766_v31  ;;  %v9830_v32 = vld [vmem:[%s13234_s1 + $0x14d8] ss:$28 sps:$4 sm:$0xff]  }
 0x2a3   :  { %8698 = vmatmul.mubr.msk.bf16.vlgmr.msra.gmra.mrb[32].mxu1 %vm4569_vm0, %v11325_v44 }
 0x2a4   :  { %6955 = vmatpush1.bf16.msra.mxu1 %v9767_v35  ;;  %6986 = vmatprep.mubr.bf16.mxu1 %v12380_v37  ;;  %v9841_v35 = vld [vmem:[%s13236_s3 + $0x184] ss:$16 sps:$4 sm:$0xff]  }
 0x2a5   :  { %5361 = vmatpush1.bf16.msra.mxu0 %v9764_v34  ;;  %6956 = vmatprep.subr.bf16.mxu1 %v9775_v19  ;;  %v9838_v34 = vld [vmem:[%s13234_s1 + $0x1514] ss:$28 sps:$4 sm:$0xff]  }
 0x2a6   :  { %5362 = vmatprep.subr.bf16.mxu0 %v9772_v36  ;;  %v12397_v41 = vpop.f32.mrb[4].mxu1  ;;  %v9836_v36 = vld [vmem:[%s13234_s1 + $0x1510] ss:$28 sps:$4 sm:$0xff]  }
 0x2a7   :  { %v12399_v10 = vpop.f32.mrb[5].mxu1  ;;  %v9839_v19 = vld [vmem:[%s13236_s3 + $0x180] ss:$16 sps:$4 sm:$0xff]  }
 0x2a8   :  { %v5144_v43 = vpop.f32.mrb[6].mxu1  ;;  %6957 = vmatpush1.bf16.msra.mxu1 %v9773_v28  ;;  %v9847_v28 = vld [vmem:[%s13236_s3 + $0x1a4] ss:$16 sps:$4 sm:$0xff]  }
 0x2a9   :  { %5363 = vmatpush1.bf16.msra.mxu0 %v9770_v38  ;;  %v5145_v48 = vpop.f32.mrb[7].mxu1  ;;  %6958 = vmatprep.subr.bf16.mxu1 %v9781_v40  ;;  %v9844_v38 = vld [vmem:[%s13234_s1 + $0x154c] ss:$28 sps:$4 sm:$0xff]   ;;  %v9845_v43 = vld [vmem:[%s13236_s3 + $0x1a0] ss:$16 sps:$4 sm:$0xff]  }
 0x2aa   :  { %5364 = vmatprep.subr.bf16.mxu0 %v9778_v60  ;;  %v846_v60 = vsub.s32 3, %v10326_v42  ;;  %v9842_v40 = vld [vmem:[%s13234_s1 + $0x1548] ss:$28 sps:$4 sm:$0xff]   ;;  %v9848_v48 = vld [vmem:[%s13234_s1 + $0x1580] ss:$28 sps:$4 sm:$0xff]  }
 0x2ac   :  { %6959 = vmatpush1.bf16.msra.mxu1 %v9779_v47  ;;  %v847_v47 = vrot.slane %v11962_v57, %v846_v60  ;;  %v9859_v57 = vld [vmem:[%s13236_s3 + $0x1e4] ss:$16 sps:$4 sm:$0xff]  }
 0x2ad   :  { %5365 = vmatpush1.bf16.msra.mxu0 %v9776_v46  ;;  %6960 = vmatprep.subr.bf16.mxu1 %v9787_v50  ;;  %v9850_v46 = vld [vmem:[%s13234_s1 + $0x1584] ss:$28 sps:$4 sm:$0xff]   ;;  %v9856_v50 = vld [vmem:[%s13234_s1 + $0x15bc] ss:$28 sps:$4 sm:$0xff]  }
 0x2ae   :  { %5366 = vmatprep.subr.bf16.mxu0 %v9784_v49  ;;  %v9851_v49 = vld [vmem:[%s13236_s3 + $0x1c0] ss:$16 sps:$4 sm:$0xff]  }
 0x2b0   :  { %6961 = vmatpush1.bf16.msra.mxu1 %v9785_v52  ;;  %v9854_v52 = vld [vmem:[%s13234_s1 + $0x15b8] ss:$28 sps:$4 sm:$0xff]  }
 0x2b1   :  { %5367 = vmatpush1.bf16.msra.mxu0 %v9782_v51  ;;  %6962 = vmatprep.subr.bf16.mxu1 %v9793_v53  ;;  %v8706_v51 = vadd.f32 %v12399_v10, %v847_v47  ;;  %v5714_v53 = vmax.f32 %v12010_v16, 0.0  ;;  %v9865_v10 = vld [vmem:[%s13236_s3 + $0xc] ss:$16 sps:$4 sm:$0xff]   ;;  %v9916_v47 = vld [vmem:[%s13236_s3 + $0x324] ss:$16 sps:$4 sm:$0xff]  }
 0x2b2   :  { %5368 = vmatprep.subr.bf16.mxu0 %v9790_v18  ;;  %v9857_v18 = vld [vmem:[%s13236_s3 + $0x1e0] ss:$16 sps:$4 sm:$0xff]  }
 0x2b3   :  { %v12583_v16 = vpack.c.bf16 %v5714_v53, %v5714_v53  ;;  %v9920_v53 = vld [vmem:[%s13236_s3 + $0x340] ss:$16 sps:$4 sm:$0xff]  }
 0x2b4   :  { %6963 = vmatpush1.bf16.msra.mxu1 %v9791_v55  ;;  %v5717_v55 = vmax.f32 %v8706_v51, 0.0  ;;  %v9925_v51 = vld [vmem:[%s13236_s3 + $0x14c] ss:$16 sps:$4 sm:$0xff]  }
 0x2b5   :  { %5369 = vmatpush1.bf16.msra.mxu0 %v9788_v54  ;;  %6964 = vmatprep.subr.bf16.mxu1 %v9799_v58  ;;  %v9862_v54 = vld [vmem:[%s13236_s3 + $0x204] ss:$16 sps:$4 sm:$0xff]   ;;  %v9860_v58 = vld [vmem:[%s13236_s3 + $0x200] ss:$16 sps:$4 sm:$0xff]  }
 0x2b6   :  { %5370 = vmatprep.subr.bf16.mxu0 %v9796_v22  ;;  %v858_v22 = vsub.s32 6, %v10326_v42 }
 0x2b8   :  { %6965 = vmatpush1.bf16.msra.mxu1 %v9797_v63  ;;  %v12588_v63 = vpack.c.bf16 %v5717_v55, %v5717_v55  ;;  %v9923_v55 = vld [vmem:[%s13236_s3 + $0x148] ss:$16 sps:$4 sm:$0xff]  }
 0x2b9   :  { %5371 = vmatpush1.bf16.msra.mxu0 %v9794_v59  ;;  %6966 = vmatprep.subr.bf16.mxu1 %v9805_v2  ;;  %v9863_v59 = vld [vmem:[%s13236_s3 + $0x8] ss:$16 sps:$4 sm:$0xff]   ;;  %v9871_v2 = vld [vmem:[%s13236_s3 + $0x2c] ss:$16 sps:$4 sm:$0xff]  }
 0x2ba   :  { %5372 = vmatprep.subr.bf16.mxu0 %v9802_v1  ;;  %v9868_v1 = vld [vmem:[%s13236_s3 + $0x224] ss:$16 sps:$4 sm:$0xff]  }
 0x2bc   :  { %6967 = vmatpush1.bf16.msra.mxu1 %v9803_v4 }
 0x2bd   :  { %5373 = vmatpush1.bf16.msra.mxu0 %v9800_v3  ;;  %6968 = vmatprep.subr.bf16.mxu1 %v9811_v6  ;;  %v12599_v3 = vld [vmem:[%s13235_s2] sm:$0x7f]  ;;  %v9869_v6 = vld [vmem:[%s13236_s3 + $0x28] ss:$16 sps:$4 sm:$0xff]  }
 0x2be   :  { %5374 = vmatprep.subr.bf16.mxu0 %v9808_v5  ;;  %v859_v4 = vrot.slane %v12599_v3, %v858_v22  ;;  %v9866_v5 = vld [vmem:[%s13236_s3 + $0x220] ss:$16 sps:$4 sm:$0xff]   ;;  %v9928_v22 = vld [vmem:[%s13236_s3 + $0x364] ss:$16 sps:$4 sm:$0xff]  }
 0x2c0   :  { %6969 = vmatpush1.bf16.msra.mxu1 %v9809_v8 }
 0x2c1   :  { %5375 = vmatpush1.bf16.msra.mxu0 %v9806_v7  ;;  %6970 = vmatprep.subr.bf16.mxu1 %v9817_v9  ;;  %v9877_v7 = vld [vmem:[%s13236_s3 + $0x4c] ss:$16 sps:$4 sm:$0xff]  }
 0x2c2   :  { %5376 = vmatprep.subr.bf16.mxu0 %v9814_v12 }
 0x2c4   :  { %6971 = vmatpush1.bf16.msra.mxu1 %v9815_v39 }
 0x2c5   :  { %5377 = vmatpush1.bf16.msra.mxu0 %v9812_v11  ;;  %6972 = vmatprep.subr.bf16.mxu1 %v9823_v0  ;;  %v9880_v0 = vld [vmem:[%s13236_s3 + $0x264] ss:$16 sps:$4 sm:$0xff]  }
 0x2c6   :  { %5378 = vmatprep.subr.bf16.mxu0 %v9820_v14  ;;  %v8546_v23 = vpop.f32.mrb[8].mxu1  ;;  %v9875_v14 = vld [vmem:[%s13236_s3 + $0x48] ss:$16 sps:$4 sm:$0xff]  }
 0x2c7   :  { %v8547_v20 = vpop.f32.mrb[9].mxu1 }
 0x2c8   :  { %6973 = vmatpush1.bf16.msra.mxu1 %v9821_v45  ;;  %v12503_v25 = vadd.f32 %v8547_v20, %v8546_v23  ;;  %v8549_v27 = vpop.f32.mrb[10].mxu1  ;;  %v9883_v45 = vld [vmem:[%s13236_s3 + $0x6c] ss:$16 sps:$4 sm:$0xff]   ;;  %v9881_v23 = vld [vmem:[%s13236_s3 + $0x68] ss:$16 sps:$4 sm:$0xff]  }
 0x2c9   :  { %5379 = vmatpush1.bf16.msra.mxu0 %v9818_v15  ;;  %6974 = vmatprep.subr.bf16.mxu1 %v9829_v21  ;;  %v8550_v31 = vpop.f32.mrb[11].mxu1  ;;  %v9878_v21 = vld [vmem:[%s13236_s3 + $0x260] ss:$16 sps:$4 sm:$0xff]   ;;  %v9886_v20 = vld [vmem:[%s13236_s3 + $0x284] ss:$16 sps:$4 sm:$0xff]  }
 0x2ca   :  { %5380 = vmatprep.subr.bf16.mxu0 %v9826_v17  ;;  %v5469_v8 = vadd.f32 %v12503_v25, %v859_v4  ;;  %v9887_v25 = vld [vmem:[%s13236_s3 + $0x88] ss:$16 sps:$4 sm:$0xff]   ;;  %v9892_v27 = vld [vmem:[%s13236_s3 + $0x2a4] ss:$16 sps:$4 sm:$0xff]  }
 0x2cb   :  { %v9893_v31 = vld [vmem:[%s13236_s3 + $0xa8] ss:$16 sps:$4 sm:$0xff]  }
 0x2cc   :  { %6975 = vmatpush1.bf16.msra.mxu1 %v9827_v56  ;;  %v9884_v56 = vld [vmem:[%s13236_s3 + $0x280] ss:$16 sps:$4 sm:$0xff]   ;;  %v9929_v4 = vld [vmem:[%s13236_s3 + $0x168] ss:$16 sps:$4 sm:$0xff]  }
 0x2cd   :  { %5381 = vmatpush1.bf16.msra.mxu0 %v9824_v24  ;;  %6976 = vmatprep.subr.bf16.mxu1 %v9835_v30  ;;  %v9889_v24 = vld [vmem:[%s13236_s3 + $0x8c] ss:$16 sps:$4 sm:$0xff]   ;;  %v9890_v30 = vld [vmem:[%s13236_s3 + $0x2a0] ss:$16 sps:$4 sm:$0xff]  }
 0x2ce   :  { %5382 = vmatprep.subr.bf16.mxu0 %v9832_v29  ;;  %v9895_v29 = vld [vmem:[%s13236_s3 + $0xac] ss:$16 sps:$4 sm:$0xff]  }
 0x2d0   :  { %6977 = vmatpush1.bf16.msra.mxu1 %v9833_v33  ;;  %v9901_v33 = vld [vmem:[%s13236_s3 + $0xcc] ss:$16 sps:$4 sm:$0xff]  }
 0x2d1   :  { %5383 = vmatpush1.bf16.msra.mxu0 %v9830_v32  ;;  %6978 = vmatprep.subr.bf16.mxu1 %v9841_v35  ;;  %v9898_v32 = vld [vmem:[%s13236_s3 + $0x2c4] ss:$16 sps:$4 sm:$0xff]   ;;  %v9899_v35 = vld [vmem:[%s13236_s3 + $0xc8] ss:$16 sps:$4 sm:$0xff]  }
 0x2d2   :  { %5393 = vmatprep.subr.bf16.mxu0 %v9838_v34  ;;  %v9896_v34 = vld [vmem:[%s13236_s3 + $0x2c0] ss:$16 sps:$4 sm:$0xff]  }
 0x2d4   :  { %5385 = vmatmul.mubr.bf16.vlgmr.msra.gmra.mrb[4].mxu0 %v11260_v13  ;;  %6979 = vmatpush1.bf16.msra.mxu1 %v9839_v19  ;;  %v9853_v13 = vld [vmem:[%s13236_s3 + $0x1c4] ss:$16 sps:$4 sm:$0xff]   ;;  %v9907_v19 = vld [vmem:[%s13236_s3 + $0xec] ss:$16 sps:$4 sm:$0xff]  }
 0x2d5   :  { %5394 = vmatpush1.bf16.msra.mxu0 %v9836_v36  ;;  %6980 = vmatprep.subr.bf16.mxu1 %v9847_v28  ;;  %v9904_v36 = vld [vmem:[%s13236_s3 + $0x2e4] ss:$16 sps:$4 sm:$0xff]   ;;  %v9905_v28 = vld [vmem:[%s13236_s3 + $0xe8] ss:$16 sps:$4 sm:$0xff]  }
 0x2d6   :  { %5395 = vmatprep.subr.bf16.mxu0 %v9844_v38  ;;  %5425 = vmatprep.mubr.bf16.mxu0 %v10165_v26  ;;  %v9902_v38 = vld [vmem:[%s13236_s3 + $0x2e0] ss:$16 sps:$4 sm:$0xff]  }
 0x2d8   :  { %6981 = vmatpush1.bf16.msra.mxu1 %v9845_v43  ;;  %v9913_v43 = vld [vmem:[%s13236_s3 + $0x10c] ss:$16 sps:$4 sm:$0xff]  }
 0x2d9   :  { %5396 = vmatpush1.bf16.msra.mxu0 %v9842_v40  ;;  %6982 = vmatprep.subr.bf16.mxu1 %v9853_v13  ;;  %v9910_v40 = vld [vmem:[%s13236_s3 + $0x304] ss:$16 sps:$4 sm:$0xff]   ;;  %v9911_v13 = vld [vmem:[%s13236_s3 + $0x108] ss:$16 sps:$4 sm:$0xff]  }
 0x2da   :  { %5397 = vmatprep.subr.bf16.mxu0 %v9850_v46  ;;  %v9908_v46 = vld [vmem:[%s13236_s3 + $0x300] ss:$16 sps:$4 sm:$0xff]  }
 0x2dc   :  { %6983 = vmatpush1.bf16.msra.mxu1 %v9851_v49  ;;  %v9914_v49 = vld [vmem:[%s13236_s3 + $0x320] ss:$16 sps:$4 sm:$0xff]  }
 0x2dd   :  { %5398 = vmatpush1.bf16.msra.mxu0 %v9848_v48  ;;  %6984 = vmatprep.subr.bf16.mxu1 %v9859_v57  ;;  %v9919_v48 = vld [vmem:[%s13236_s3 + $0x12c] ss:$16 sps:$4 sm:$0xff]   ;;  %v9922_v57 = vld [vmem:[%s13236_s3 + $0x344] ss:$16 sps:$4 sm:$0xff]  }
 0x2de   :  { %5399 = vmatprep.subr.bf16.mxu0 %v9856_v50  ;;  %v9917_v50 = vld [vmem:[%s13236_s3 + $0x128] ss:$16 sps:$4 sm:$0xff]  }
 0x2e0   :  { %6985 = vmatpush1.bf16.msra.mxu1 %v9857_v18 }
 0x2e1   :  { %5400 = vmatpush1.bf16.msra.mxu0 %v9854_v52  ;;  %6995 = vmatprep.subr.bf16.mxu1 %v9862_v54 }
 0x2e2   :  { %7118 = vmatprep.subr.bf16.mxu0 %v9865_v10 }
 0x2e3   :  { %6987 = vmatmul.mubr.bf16.vlgmr.msra.gmra.mrb[36].mxu1 %v12583_v16 }
 0x2e4   :  { %8299 = vmatmul.mubr.msk.bf16.vlgmr.msra.gmra.mrb[4].mxu0 %vm4569_vm0, %v11325_v44  ;;  %6996 = vmatpush1.bf16.msra.mxu1 %v9860_v58  ;;  %v9874_v44 = vld [vmem:[%s13236_s3 + $0x244] ss:$16 sps:$4 sm:$0xff]  }
 0x2e5   :  { %7027 = vmatprep.mubr.bf16.mxu1 %v12588_v63  ;;  %7119 = vmatpush1.bf16.msra.mxu0 %v9863_v59  ;;  %v9931_v59 = vld [vmem:[%s13236_s3 + $0x16c] ss:$16 sps:$4 sm:$0xff]  }
 0x2e6   :  { %7150 = vmatprep.mubr.bf16.mxu0 %v12380_v37  ;;  %6997 = vmatprep.subr.bf16.mxu1 %v9868_v1  ;;  %v8568_v12 = vpop.f32.mrb[12].mxu1  ;;  %v9872_v37 = vld [vmem:[%s13236_s3 + $0x240] ss:$16 sps:$4 sm:$0xff]  }
 0x2e7   :  { %7120 = vmatprep.subr.bf16.mxu0 %v9871_v2  ;;  %v8569_v9 = vpop.f32.mrb[13].mxu1  ;;  %v9926_v2 = vld [vmem:[%s13236_s3 + $0x360] ss:$16 sps:$4 sm:$0xff]  }
 0x2e8   :  { %6998 = vmatpush1.bf16.msra.mxu1 %v9866_v5  ;;  %v8570_v11 = vadd.f32 %v8569_v9, %v8568_v12  ;;  %v8571_v39 = vpop.f32.mrb[14].mxu1  ;;  %v9934_v5 = vld [vmem:[%s13236_s3 + $0x384] ss:$16 sps:$4 sm:$0xff]   ;;  %v9943_v9 = vld [vmem:[%s13236_s3 + $0x1ac] ss:$16 sps:$4 sm:$0xff]  }
 0x2e9   :  { %7121 = vmatpush1.bf16.msra.mxu0 %v9869_v6  ;;  %6999 = vmatprep.subr.bf16.mxu1 %v9874_v44  ;;  %v8572_v15 = vpop.f32.mrb[15].mxu1  ;;  %v9937_v6 = vld [vmem:[%s13236_s3 + $0x18c] ss:$16 sps:$4 sm:$0xff]   ;;  %v9932_v44 = vld [vmem:[%s13236_s3 + $0x380] ss:$16 sps:$4 sm:$0xff]  }
 0x2ea   :  { %7122 = vmatprep.subr.bf16.mxu0 %v9877_v7  ;;  %v12632_v17 = vadd.f32 %v8570_v11, %v5469_v8  ;;  %v842_v7 = vsub.s32 2, %v10326_v42  ;;  %v9935_v8 = vld [vmem:[%s13236_s3 + $0x188] ss:$16 sps:$4 sm:$0xff]   ;;  %v9940_v12 = vld [vmem:[%s13236_s3 + $0x3a4] ss:$16 sps:$4 sm:$0xff]  }
 0x2eb   :  { %v9941_v39 = vld [vmem:[%s13236_s3 + $0x1a8] ss:$16 sps:$4 sm:$0xff]   ;;  %v9944_v15 = vld [vmem:[%s13236_s3 + $0x3c0] ss:$16 sps:$4 sm:$0xff]  }
 0x2ec   :  { %7000 = vmatpush1.bf16.msra.mxu1 %v9872_v37  ;;  %v9938_v37 = vld [vmem:[%s13236_s3 + $0x3a0] ss:$16 sps:$4 sm:$0xff]   ;;  %v843_v11 = vrot.slane %v12599_v3, %v842_v7 }
 0x2ed   :  { %7123 = vmatpush1.bf16.msra.mxu0 %v9875_v14  ;;  %7001 = vmatprep.subr.bf16.mxu1 %v9880_v0  ;;  %v9946_v14 = vld [vmem:[%s13236_s3 + $0x3c4] ss:$16 sps:$4 sm:$0xff]   ;;  %v9949_v0 = vld [vmem:[%s13236_s3 + $0x1cc] ss:$16 sps:$4 sm:$0xff]  }
 0x2ee   :  { %7124 = vmatprep.subr.bf16.mxu0 %v9883_v45  ;;  %v8705_v45 = vadd.f32 %v12397_v41, %v843_v11  ;;  %v9950_v41 = vld [vmem:[%s13236_s3 + $0x3e0] ss:$16 sps:$4 sm:$0xff]  }
 0x2ef   :  { %v10058_v11 = vld [vmem:[%s13236_s3 + $0x520] ss:$16 sps:$4 sm:$0xff]  }
 0x2f0   :  { %7002 = vmatpush1.bf16.msra.mxu1 %v9878_v21  ;;  %v9952_v21 = vld [vmem:[%s13236_s3 + $0x3e4] ss:$16 sps:$4 sm:$0xff]  }
 0x2f1   :  { %7125 = vmatpush1.bf16.msra.mxu0 %v9881_v23  ;;  %7003 = vmatprep.subr.bf16.mxu1 %v9886_v20  ;;  %v9955_v23 = vld [vmem:[%s13236_s3 + $0x1ec] ss:$16 sps:$4 sm:$0xff]   ;;  %v5716_v20 = vmax.f32 %v8705_v45, 0.0 }
 0x2f2   :  { %7126 = vmatprep.subr.bf16.mxu0 %v9889_v24  ;;  %v9953_v24 = vld [vmem:[%s13236_s3 + $0x1e8] ss:$16 sps:$4 sm:$0xff]  }
 0x2f4   :  { %7004 = vmatpush1.bf16.msra.mxu1 %v9884_v56  ;;  %v10006_v56 = vld [vmem:[%s13236_s3 + $0x404] ss:$16 sps:$4 sm:$0xff]  }
 0x2f5   :  { %7127 = vmatpush1.bf16.msra.mxu0 %v9887_v25  ;;  %7005 = vmatprep.subr.bf16.mxu1 %v9892_v27  ;;  %v9958_v25 = vld [vmem:[%s13236_s3 + $0x20c] ss:$16 sps:$4 sm:$0xff]   ;;  %v10004_v27 = vld [vmem:[%s13236_s3 + $0x400] ss:$16 sps:$4 sm:$0xff]  }
 0x2f6   :  { %7128 = vmatprep.subr.bf16.mxu0 %v9895_v29  ;;  %v12801_v29 = vpack.c.bf16 %v5716_v20, %v5716_v20 }
 0x2f8   :  { %7006 = vmatpush1.bf16.msra.mxu1 %v9890_v30  ;;  %v9956_v30 = vld [vmem:[%s13236_s3 + $0x208] ss:$16 sps:$4 sm:$0xff]  }
 0x2f9   :  { %7129 = vmatpush1.bf16.msra.mxu0 %v9893_v31  ;;  %7007 = vmatprep.subr.bf16.mxu1 %v9898_v32  ;;  %v9961_v31 = vld [vmem:[%s13236_s3 + $0x22c] ss:$16 sps:$4 sm:$0xff]   ;;  %v10012_v32 = vld [vmem:[%s13236_s3 + $0x424] ss:$16 sps:$4 sm:$0xff]  }
 0x2fa   :  { %7130 = vmatprep.subr.bf16.mxu0 %v9901_v33  ;;  %v10010_v33 = vld [vmem:[%s13236_s3 + $0x420] ss:$16 sps:$4 sm:$0xff]  }
 0x2fc   :  { %7008 = vmatpush1.bf16.msra.mxu1 %v9896_v34  ;;  %v9959_v34 = vld [vmem:[%s13236_s3 + $0x228] ss:$16 sps:$4 sm:$0xff]  }
 0x2fd   :  { %7131 = vmatpush1.bf16.msra.mxu0 %v9899_v35  ;;  %7009 = vmatprep.subr.bf16.mxu1 %v9904_v36  ;;  %v10018_v35 = vld [vmem:[%s13236_s3 + $0x444] ss:$16 sps:$4 sm:$0xff]  }
 0x2fe   :  { %7132 = vmatprep.subr.bf16.mxu0 %v9907_v19 }
 0x300   :  { %7010 = vmatpush1.bf16.msra.mxu1 %v9902_v38 }
 0x301   :  { %7133 = vmatpush1.bf16.msra.mxu0 %v9905_v28  ;;  %7011 = vmatprep.subr.bf16.mxu1 %v9910_v40  ;;  %v9962_v40 = vld [vmem:[%s13236_s3 + $0x248] ss:$16 sps:$4 sm:$0xff]  }
 0x302   :  { %7134 = vmatprep.subr.bf16.mxu0 %v9913_v43 }
 0x304   :  { %7012 = vmatpush1.bf16.msra.mxu1 %v9908_v46  ;;  %v10024_v46 = vld [vmem:[%s13236_s3 + $0x464] ss:$16 sps:$4 sm:$0xff]  }
 0x305   :  { %7135 = vmatpush1.bf16.msra.mxu0 %v9911_v13  ;;  %7013 = vmatprep.subr.bf16.mxu1 %v9916_v47  ;;  %v9967_v47 = vld [vmem:[%s13236_s3 + $0x26c] ss:$16 sps:$4 sm:$0xff]  }
 0x306   :  { %7136 = vmatprep.subr.bf16.mxu0 %v9919_v48  ;;  %v8590_v52 = vpop.f32.mrb[16].mxu1  ;;  %v10022_v48 = vld [vmem:[%s13236_s3 + $0x460] ss:$16 sps:$4 sm:$0xff]  }
 0x307   :  { %v8591_v18 = vpop.f32.mrb[17].mxu1 }
 0x308   :  { %7014 = vmatpush1.bf16.msra.mxu1 %v9914_v49  ;;  %v8592_v54 = vadd.f32 %v8591_v18, %v8590_v52  ;;  %v8593_v10 = vpop.f32.mrb[18].mxu1  ;;  %v9965_v49 = vld [vmem:[%s13236_s3 + $0x268] ss:$16 sps:$4 sm:$0xff]   ;;  %v10036_v18 = vld [vmem:[%s13236_s3 + $0x4a4] ss:$16 sps:$4 sm:$0xff]  }
 0x309   :  { %7137 = vmatpush1.bf16.msra.mxu0 %v9917_v50  ;;  %7015 = vmatprep.subr.bf16.mxu1 %v9922_v57  ;;  %v8594_v58 = vpop.f32.mrb[19].mxu1  ;;  %v10030_v50 = vld [vmem:[%s13236_s3 + $0x484] ss:$16 sps:$4 sm:$0xff]   ;;  %v9970_v57 = vld [vmem:[%s13236_s3 + $0x28c] ss:$16 sps:$4 sm:$0xff]  }
 0x30a   :  { %7138 = vmatprep.subr.bf16.mxu0 %v9925_v51  ;;  %v12731_v1 = vadd.f32 %v8592_v54, %v12632_v17  ;;  %v9947_v17 = vld [vmem:[%s13236_s3 + $0x1c8] ss:$16 sps:$4 sm:$0xff]   ;;  %v10028_v51 = vld [vmem:[%s13236_s3 + $0x480] ss:$16 sps:$4 sm:$0xff]  }
 0x30b   :  { %v9968_v52 = vld [vmem:[%s13236_s3 + $0x288] ss:$16 sps:$4 sm:$0xff]   ;;  %v10034_v54 = vld [vmem:[%s13236_s3 + $0x4a0] ss:$16 sps:$4 sm:$0xff]  }
 0x30c   :  { %7016 = vmatpush1.bf16.msra.mxu1 %v9920_v53  ;;  %v9973_v53 = vld [vmem:[%s13236_s3 + $0x2ac] ss:$16 sps:$4 sm:$0xff]   ;;  %v9971_v10 = vld [vmem:[%s13236_s3 + $0x2a8] ss:$16 sps:$4 sm:$0xff]   ;;  %v10040_v58 = vld [vmem:[%s13236_s3 + $0x4c0] ss:$16 sps:$4 sm:$0xff]  }
 0x30d   :  { %7139 = vmatpush1.bf16.msra.mxu0 %v9923_v55  ;;  %7017 = vmatprep.subr.bf16.mxu1 %v9928_v22  ;;  %v10042_v55 = vld [vmem:[%s13236_s3 + $0x4c4] ss:$16 sps:$4 sm:$0xff]   ;;  %v9976_v22 = vld [vmem:[%s13236_s3 + $0x2cc] ss:$16 sps:$4 sm:$0xff]  }
 0x30e   :  { %7140 = vmatprep.subr.bf16.mxu0 %v9931_v59  ;;  %v9974_v59 = vld [vmem:[%s13236_s3 + $0x2c8] ss:$16 sps:$4 sm:$0xff]  }
 0x310   :  { %7018 = vmatpush1.bf16.msra.mxu1 %v9926_v2  ;;  %v9979_v2 = vld [vmem:[%s13236_s3 + $0x2ec] ss:$16 sps:$4 sm:$0xff]  }
 0x311   :  { %7141 = vmatpush1.bf16.msra.mxu0 %v9929_v4  ;;  %7019 = vmatprep.subr.bf16.mxu1 %v9934_v5  ;;  %v10046_v4 = vld [vmem:[%s13236_s3 + $0x4e0] ss:$16 sps:$4 sm:$0xff]   ;;  %v9977_v5 = vld [vmem:[%s13236_s3 + $0x2e8] ss:$16 sps:$4 sm:$0xff]  }
 0x312   :  { %7142 = vmatprep.subr.bf16.mxu0 %v9937_v6  ;;  %v10054_v6 = vld [vmem:[%s13236_s3 + $0x504] ss:$16 sps:$4 sm:$0xff]  }
 0x314   :  { %7020 = vmatpush1.bf16.msra.mxu1 %v9932_v44  ;;  %v9982_v44 = vld [vmem:[%s13236_s3 + $0x30c] ss:$16 sps:$4 sm:$0xff]  }
 0x315   :  { %7143 = vmatpush1.bf16.msra.mxu0 %v9935_v8  ;;  %7021 = vmatprep.subr.bf16.mxu1 %v9940_v12  ;;  %v10052_v8 = vld [vmem:[%s13236_s3 + $0x500] ss:$16 sps:$4 sm:$0xff]   ;;  %v9980_v12 = vld [vmem:[%s13236_s3 + $0x308] ss:$16 sps:$4 sm:$0xff]  }
 0x316   :  { %7144 = vmatprep.subr.bf16.mxu0 %v9943_v9  ;;  %v10060_v9 = vld [vmem:[%s13236_s3 + $0x524] ss:$16 sps:$4 sm:$0xff]  }
 0x318   :  { %7022 = vmatpush1.bf16.msra.mxu1 %v9938_v37  ;;  %v9985_v37 = vld [vmem:[%s13236_s3 + $0x32c] ss:$16 sps:$4 sm:$0xff]  }
 0x319   :  { %7145 = vmatpush1.bf16.msra.mxu0 %v9941_v39  ;;  %7023 = vmatprep.subr.bf16.mxu1 %v9946_v14  ;;  %v9983_v39 = vld [vmem:[%s13236_s3 + $0x328] ss:$16 sps:$4 sm:$0xff]   ;;  %v10066_v14 = vld [vmem:[%s13236_s3 + $0x544] ss:$16 sps:$4 sm:$0xff]  }
 0x31a   :  { %7146 = vmatprep.subr.bf16.mxu0 %v9949_v0 }
 0x31c   :  { %7024 = vmatpush1.bf16.msra.mxu1 %v9944_v15  ;;  %v9988_v15 = vld [vmem:[%s13236_s3 + $0x34c] ss:$16 sps:$4 sm:$0xff]  }
 0x31d   :  { %7147 = vmatpush1.bf16.msra.mxu0 %v9947_v17  ;;  %7025 = vmatprep.subr.bf16.mxu1 %v9952_v21 }
 0x31e   :  { %7148 = vmatprep.subr.bf16.mxu0 %v9955_v23  ;;  %v10064_v23 = vld [vmem:[%s13236_s3 + $0x540] ss:$16 sps:$4 sm:$0xff]  }
 0x320   :  { %7026 = vmatpush1.bf16.msra.mxu1 %v9950_v41  ;;  %v9986_v41 = vld [vmem:[%s13236_s3 + $0x348] ss:$16 sps:$4 sm:$0xff]  }
 0x321   :  { %7149 = vmatpush1.bf16.msra.mxu0 %v9953_v24  ;;  %7036 = vmatprep.subr.bf16.mxu1 %v10006_v56  ;;  %v10072_v24 = vld [vmem:[%s13236_s3 + $0x564] ss:$16 sps:$4 sm:$0xff]  }
 0x322   :  { %7159 = vmatprep.subr.bf16.mxu0 %v9958_v25  ;;  %v9991_v25 = vld [vmem:[%s13236_s3 + $0x36c] ss:$16 sps:$4 sm:$0xff]  }
 0x323   :  { %7028 = vmatmul.mubr.bf16.vlgmr.msra.gmra.mrb[36].mxu1 %v12801_v29 }
 0x324   :  { %7151 = vmatmul.mubr.bf16.vlgmr.msra.gmra.mrb[8].mxu0 %v12583_v16  ;;  %7037 = vmatpush1.bf16.msra.mxu1 %v10004_v27  ;;  %v9964_v16 = vld [vmem:[%s13236_s3 + $0x24c] ss:$16 sps:$4 sm:$0xff]   ;;  %v10070_v27 = vld [vmem:[%s13236_s3 + $0x560] ss:$16 sps:$4 sm:$0xff]  }
 0x325   :  { %7160 = vmatpush1.bf16.msra.mxu0 %v9956_v30  ;;  %7191 = vmatprep.mubr.bf16.mxu0 %v12588_v63  ;;  %v10016_v63 = vld [vmem:[%s13236_s3 + $0x440] ss:$16 sps:$4 sm:$0xff]   ;;  %v9989_v30 = vld [vmem:[%s13236_s3 + $0x368] ss:$16 sps:$4 sm:$0xff]  }
 0x326   :  { %v8612_v36 = vpop.f32.mrb[20].mxu1  ;;  %7161 = vmatprep.subr.bf16.mxu0 %v9961_v31  ;;  %7038 = vmatprep.subr.bf16.mxu1 %v10012_v32  ;;  %v10078_v31 = vld [vmem:[%s13236_s3 + $0x584] ss:$16 sps:$4 sm:$0xff]   ;;  %v9994_v32 = vld [vmem:[%s13236_s3 + $0x38c] ss:$16 sps:$4 sm:$0xff]  }
 0x327   :  { %v8613_v19 = vpop.f32.mrb[21].mxu1 }
 0x328   :  { %v8614_v38 = vadd.f32 %v8613_v19, %v8612_v36  ;;  %v8615_v28 = vpop.f32.mrb[22].mxu1  ;;  %7039 = vmatpush1.bf16.msra.mxu1 %v10010_v33  ;;  %v10076_v33 = vld [vmem:[%s13236_s3 + $0x580] ss:$16 sps:$4 sm:$0xff]   ;;  %v9997_v36 = vld [vmem:[%s13236_s3 + $0x3ac] ss:$16 sps:$4 sm:$0xff]  }
 0x329   :  { %7162 = vmatpush1.bf16.msra.mxu0 %v9959_v34  ;;  %v8616_v43 = vpop.f32.mrb[23].mxu1  ;;  %7040 = vmatprep.subr.bf16.mxu1 %v10018_v35  ;;  %v9992_v34 = vld [vmem:[%s13236_s3 + $0x388] ss:$16 sps:$4 sm:$0xff]   ;;  %v10084_v35 = vld [vmem:[%s13236_s3 + $0x5a4] ss:$16 sps:$4 sm:$0xff]  }
 0x32a   :  { %v12837_v13 = vadd.f32 %v8614_v38, %v12731_v1  ;;  %7163 = vmatprep.subr.bf16.mxu0 %v9964_v16  ;;  %v10048_v1 = vld [vmem:[%s13236_s3 + $0x4e4] ss:$16 sps:$4 sm:$0xff]   ;;  %v10082_v16 = vld [vmem:[%s13236_s3 + $0x5a0] ss:$16 sps:$4 sm:$0xff]   ;;  %v9995_v19 = vld [vmem:[%s13236_s3 + $0x3a8] ss:$16 sps:$4 sm:$0xff]  }
 0x32b   :  { %v10090_v38 = vld [vmem:[%s13236_s3 + $0x5c4] ss:$16 sps:$4 sm:$0xff]   ;;  %v10000_v28 = vld [vmem:[%s13236_s3 + $0x3cc] ss:$16 sps:$4 sm:$0xff]  }
 0x32c   :  { %7041 = vmatpush1.bf16.msra.mxu1 %v10016_v63  ;;  %v10088_v63 = vld [vmem:[%s13236_s3 + $0x5c0] ss:$16 sps:$4 sm:$0xff]   ;;  %v10096_v43 = vld [vmem:[%s13236_s3 + $0x5e4] ss:$16 sps:$4 sm:$0xff]  }
 0x32d   :  { %7164 = vmatpush1.bf16.msra.mxu0 %v9962_v40  ;;  %7042 = vmatprep.subr.bf16.mxu1 %v10024_v46  ;;  %v9998_v40 = vld [vmem:[%s13236_s3 + $0x3c8] ss:$16 sps:$4 sm:$0xff]   ;;  %v10003_v46 = vld [vmem:[%s13236_s3 + $0x3ec] ss:$16 sps:$4 sm:$0xff]  }
 0x32e   :  { %7165 = vmatprep.subr.bf16.mxu0 %v9967_v47  ;;  %v10001_v47 = vld [vmem:[%s13236_s3 + $0x3e8] ss:$16 sps:$4 sm:$0xff]  }
 0x330   :  { %7043 = vmatpush1.bf16.msra.mxu1 %v10022_v48  ;;  %v10102_v48 = vld [vmem:[%s13236_s3 + $0x604] ss:$16 sps:$4 sm:$0xff]  }
 0x331   :  { %7166 = vmatpush1.bf16.msra.mxu0 %v9965_v49  ;;  %7044 = vmatprep.subr.bf16.mxu1 %v10030_v50  ;;  %v10009_v49 = vld [vmem:[%s13236_s3 + $0x40c] ss:$16 sps:$4 sm:$0xff]   ;;  %v10007_v50 = vld [vmem:[%s13236_s3 + $0x408] ss:$16 sps:$4 sm:$0xff]  }
 0x332   :  { %7167 = vmatprep.subr.bf16.mxu0 %v9970_v57  ;;  %v10015_v57 = vld [vmem:[%s13236_s3 + $0x42c] ss:$16 sps:$4 sm:$0xff]  }
 0x334   :  { %7045 = vmatpush1.bf16.msra.mxu1 %v10028_v51  ;;  %v10013_v51 = vld [vmem:[%s13236_s3 + $0x428] ss:$16 sps:$4 sm:$0xff]  }
 0x335   :  { %7168 = vmatpush1.bf16.msra.mxu0 %v9968_v52  ;;  %7046 = vmatprep.subr.bf16.mxu1 %v10036_v18  ;;  %v10021_v18 = vld [vmem:[%s13236_s3 + $0x44c] ss:$16 sps:$4 sm:$0xff]  }
 0x336   :  { %7169 = vmatprep.subr.bf16.mxu0 %v9973_v53 }
 0x338   :  { %7047 = vmatpush1.bf16.msra.mxu1 %v10034_v54 }
 0x339   :  { %7170 = vmatpush1.bf16.msra.mxu0 %v9971_v10  ;;  %7048 = vmatprep.subr.bf16.mxu1 %v10042_v55 }
 0x33a   :  { %7171 = vmatprep.subr.bf16.mxu0 %v9976_v22 }
 0x33c   :  { %7049 = vmatpush1.bf16.msra.mxu1 %v10040_v58  ;;  %v10027_v58 = vld [vmem:[%s13236_s3 + $0x46c] ss:$16 sps:$4 sm:$0xff]  }
 0x33d   :  { %7172 = vmatpush1.bf16.msra.mxu0 %v9974_v59  ;;  %7050 = vmatprep.subr.bf16.mxu1 %v10048_v1  ;;  %v10025_v59 = vld [vmem:[%s13236_s3 + $0x468] ss:$16 sps:$4 sm:$0xff]   ;;  %v10033_v1 = vld [vmem:[%s13236_s3 + $0x48c] ss:$16 sps:$4 sm:$0xff]  }
 0x33e   :  { %7173 = vmatprep.subr.bf16.mxu0 %v9979_v2  ;;  %v10031_v2 = vld [vmem:[%s13236_s3 + $0x488] ss:$16 sps:$4 sm:$0xff]  }
 0x340   :  { %7051 = vmatpush1.bf16.msra.mxu1 %v10046_v4  ;;  %v10039_v4 = vld [vmem:[%s13236_s3 + $0x4ac] ss:$16 sps:$4 sm:$0xff]  }
 0x341   :  { %7174 = vmatpush1.bf16.msra.mxu0 %v9977_v5  ;;  %7052 = vmatprep.subr.bf16.mxu1 %v10054_v6  ;;  %v10037_v5 = vld [vmem:[%s13236_s3 + $0x4a8] ss:$16 sps:$4 sm:$0xff]  }
 0x342   :  { %7175 = vmatprep.subr.bf16.mxu0 %v9982_v44  ;;  %v10045_v44 = vld [vmem:[%s13236_s3 + $0x4cc] ss:$16 sps:$4 sm:$0xff]  }
 0x344   :  { %7053 = vmatpush1.bf16.msra.mxu1 %v10052_v8 }
 0x345   :  { %7176 = vmatpush1.bf16.msra.mxu0 %v9980_v12  ;;  %7054 = vmatprep.subr.bf16.mxu1 %v10060_v9 }
 0x346   :  { %v8634_v0 = vpop.f32.mrb[24].mxu1  ;;  %7177 = vmatprep.subr.bf16.mxu0 %v9985_v37  ;;  %v10043_v37 = vld [vmem:[%s13236_s3 + $0x4c8] ss:$16 sps:$4 sm:$0xff]  }
 0x347   :  { %v8635_v45 = vpop.f32.mrb[25].mxu1 }
 0x348   :  { %v8636_v17 = vadd.f32 %v8635_v45, %v8634_v0  ;;  %v8637_v21 = vpop.f32.mrb[26].mxu1  ;;  %7055 = vmatpush1.bf16.msra.mxu1 %v10058_v11  ;;  %v10057_v0 = vld [vmem:[%s13236_s3 + $0x50c] ss:$16 sps:$4 sm:$0xff]  }
 0x349   :  { %7178 = vmatpush1.bf16.msra.mxu0 %v9983_v39  ;;  %v8638_v20 = vpop.f32.mrb[27].mxu1  ;;  %7056 = vmatprep.subr.bf16.mxu1 %v10066_v14  ;;  %v10051_v39 = vld [vmem:[%s13236_s3 + $0x4ec] ss:$16 sps:$4 sm:$0xff]   ;;  %v10049_v14 = vld [vmem:[%s13236_s3 + $0x4e8] ss:$16 sps:$4 sm:$0xff]  }
 0x34a   :  { %v5629_v56 = vadd.f32 %v8636_v17, %v12837_v13  ;;  %7179 = vmatprep.subr.bf16.mxu0 %v9988_v15  ;;  %v10094_v13 = vld [vmem:[%s13236_s3 + $0x5e0] ss:$16 sps:$4 sm:$0xff]   ;;  %v10055_v15 = vld [vmem:[%s13236_s3 + $0x508] ss:$16 sps:$4 sm:$0xff]   ;;  %v10063_v45 = vld [vmem:[%s13236_s3 + $0x52c] ss:$16 sps:$4 sm:$0xff]  }
 0x34b   :  { %v10061_v17 = vld [vmem:[%s13236_s3 + $0x528] ss:$16 sps:$4 sm:$0xff]   ;;  %v10069_v21 = vld [vmem:[%s13236_s3 + $0x54c] ss:$16 sps:$4 sm:$0xff]  }
 0x34c   :  { %7057 = vmatpush1.bf16.msra.mxu1 %v10064_v23  ;;  %v10067_v23 = vld [vmem:[%s13236_s3 + $0x548] ss:$16 sps:$4 sm:$0xff]  }
 0x34d   :  { %7180 = vmatpush1.bf16.msra.mxu0 %v9986_v41  ;;  %7058 = vmatprep.subr.bf16.mxu1 %v10072_v24  ;;  %v10075_v41 = vld [vmem:[%s13236_s3 + $0x56c] ss:$16 sps:$4 sm:$0xff]   ;;  %v10073_v20 = vld [vmem:[%s13236_s3 + $0x568] ss:$16 sps:$4 sm:$0xff]  }
 0x34e   :  { %7181 = vmatprep.subr.bf16.mxu0 %v9991_v25  ;;  %v10081_v24 = vld [vmem:[%s13236_s3 + $0x58c] ss:$16 sps:$4 sm:$0xff]  }
 0x34f   :  { %v10087_v25 = vld [vmem:[%s13236_s3 + $0x5ac] ss:$16 sps:$4 sm:$0xff]  }
 0x350   :  { %7059 = vmatpush1.bf16.msra.mxu1 %v10070_v27  ;;  %v10085_v27 = vld [vmem:[%s13236_s3 + $0x5a8] ss:$16 sps:$4 sm:$0xff]  }
 0x351   :  { %7182 = vmatpush1.bf16.msra.mxu0 %v9989_v30  ;;  %7060 = vmatprep.subr.bf16.mxu1 %v10078_v31  ;;  %v10093_v30 = vld [vmem:[%s13236_s3 + $0x5cc] ss:$16 sps:$4 sm:$0xff]   ;;  %v10091_v31 = vld [vmem:[%s13236_s3 + $0x5c8] ss:$16 sps:$4 sm:$0xff]  }
 0x352   :  { %7183 = vmatprep.subr.bf16.mxu0 %v9994_v32  ;;  %v10099_v32 = vld [vmem:[%s13236_s3 + $0x5ec] ss:$16 sps:$4 sm:$0xff]  }
 0x354   :  { %7061 = vmatpush1.bf16.msra.mxu1 %v10076_v33  ;;  %v10097_v33 = vld [vmem:[%s13236_s3 + $0x5e8] ss:$16 sps:$4 sm:$0xff]  }
 0x355   :  { %7184 = vmatpush1.bf16.msra.mxu0 %v9992_v34  ;;  %7062 = vmatprep.subr.bf16.mxu1 %v10084_v35  ;;  %v10105_v34 = vld [vmem:[%s13236_s3 + $0x60c] ss:$16 sps:$4 sm:$0xff]   ;;  %v850_v35 = vsub.s32 4, %v10326_v42 }
 0x356   :  { %7185 = vmatprep.subr.bf16.mxu0 %v9997_v36  ;;  %v854_v36 = vsub.s32 5, %v10326_v42 }
 0x358   :  { %7063 = vmatpush1.bf16.msra.mxu1 %v10082_v16  ;;  %v851_v16 = vrot.slane %v12599_v3, %v850_v35  ;;  %v10130_v35 = vld [vmem:[%s13238_s5 + $0x90] sm:$0xff]  }
 0x359   :  { %7186 = vmatpush1.bf16.msra.mxu0 %v9995_v19  ;;  %7064 = vmatprep.subr.bf16.mxu1 %v10090_v38  ;;  %v855_v19 = vrot.slane %v12599_v3, %v854_v36  ;;  %v10108_v3 = vld [vmem:[%s13236_s3 + $0x624] ss:$16 sps:$4 sm:$0xff]   ;;  %v10131_v36 = vld [vmem:[%s13238_s5 + $0x98] sm:$0xff]  }
 0x35a   :  { %7187 = vmatprep.subr.bf16.mxu0 %v10000_v28 }
 0x35c   :  { %7065 = vmatpush1.bf16.msra.mxu1 %v10088_v63 }
 0x35d   :  { %7188 = vmatpush1.bf16.msra.mxu0 %v9998_v40  ;;  %7066 = vmatprep.subr.bf16.mxu1 %v10096_v43 }
 0x35e   :  { %7189 = vmatprep.subr.bf16.mxu0 %v10003_v46 }
 0x360   :  { %7067 = vmatpush1.bf16.msra.mxu1 %v10094_v13 }
 0x361   :  { %7190 = vmatpush1.bf16.msra.mxu0 %v10001_v47  ;;  %7077 = vmatprep.subr.bf16.mxu1 %v10102_v48 }
 0x362   :  { %7200 = vmatprep.subr.bf16.mxu0 %v10009_v49  ;;  %v10100_v49 = vld [vmem:[%s13236_s3 + $0x600] ss:$16 sps:$4 sm:$0xff]  }
 0x364   :  { %7192 = vmatmul.mubr.bf16.vlgmr.msra.gmra.mrb[8].mxu0 %v12801_v29  ;;  %v10019_v29 = vld [vmem:[%s13236_s3 + $0x448] ss:$16 sps:$4 sm:$0xff]  }
 0x365   :  { %7201 = vmatpush1.bf16.msra.mxu0 %v10007_v50  ;;  %v10103_v50 = vld [vmem:[%s13236_s3 + $0x608] ss:$16 sps:$4 sm:$0xff]  }
 0x366   :  { %v8656_v52 = vpop.f32.mrb[28].mxu1  ;;  %7202 = vmatprep.subr.bf16.mxu0 %v10015_v57 }
 0x367   :  { %v8657_v53 = vpop.f32.mrb[29].mxu1 }
 0x368   :  { %v8658_v54 = vadd.f32 %v8657_v53, %v8656_v52  ;;  %v8659_v10 = vpop.f32.mrb[30].mxu1  ;;  %v10106_v52 = vld [vmem:[%s13236_s3 + $0x620] ss:$16 sps:$4 sm:$0xff]  }
 0x369   :  { %v8660_v55 = vpop.f32.mrb[31].mxu1  ;;  %7203 = vmatpush1.bf16.msra.mxu0 %v10013_v51  ;;  %v10111_v51 = vld [vmem:[%s13236_s3 + $0x62c] ss:$16 sps:$4 sm:$0xff]   ;;  %v10112_v53 = vld [vmem:[%s13238_s5 + $0x40] sm:$0xff]  }
 0x36a   :  { %v5669_v22 = vadd.f32 %v8658_v54, %v5629_v56  ;;  %7204 = vmatprep.subr.bf16.mxu0 %v10021_v18  ;;  %v10079_v56 = vld [vmem:[%s13236_s3 + $0x588] ss:$16 sps:$4 sm:$0xff]   ;;  %v10113_v10 = vld [vmem:[%s13238_s5] sm:$0xff]  }
 0x36b   :  { %v10109_v18 = vld [vmem:[%s13236_s3 + $0x628] ss:$16 sps:$4 sm:$0xff]  }
 0x36d   :  { %7205 = vmatpush1.bf16.msra.mxu0 %v10019_v29  ;;  %v10114_v29 = vld [vmem:[%s13238_s5 + $0x48] sm:$0xff]  }
 0x36e   :  { %7206 = vmatprep.subr.bf16.mxu0 %v10027_v58  ;;  %v10116_v58 = vld [vmem:[%s13238_s5 + $0x50] sm:$0xff]  }
 0x371   :  { %7207 = vmatpush1.bf16.msra.mxu0 %v10025_v59  ;;  %v10117_v59 = vld [vmem:[%s13238_s5 + $0x10] sm:$0xff]  }
 0x372   :  { %7208 = vmatprep.subr.bf16.mxu0 %v10033_v1  ;;  %v10118_v1 = vld [vmem:[%s13238_s5 + $0x58] sm:$0xff]  }
 0x375   :  { %7209 = vmatpush1.bf16.msra.mxu0 %v10031_v2  ;;  %v10119_v2 = vld [vmem:[%s13238_s5 + $0x18] sm:$0xff]  }
 0x376   :  { %v5708_v6 = vpop.f32.mrb[32].mxu1  ;;  %7210 = vmatprep.subr.bf16.mxu0 %v10039_v4  ;;  %v10120_v4 = vld [vmem:[%s13238_s5 + $0x60] sm:$0xff]  }
 0x377   :  { %v13036_v8 = vadd.f32 %v5708_v6, %v5669_v22  ;;  %v8699_v12 = vpop.f32.mrb[33].mxu1  ;;  %v10115_v22 = vld [vmem:[%s13238_s5 + $0x8] sm:$0xff]  }
 0x378   :  { %v5711_v9 = vpop.f32.mrb[34].mxu1  ;;  %v10122_v6 = vld [vmem:[%s13238_s5 + $0x68] sm:$0xff]   ;;  %v10125_v12 = vld [vmem:[%s13238_s5 + $0x30] sm:$0xff]  }
 0x379   :  { %7211 = vmatpush1.bf16.msra.mxu0 %v10037_v5  ;;  %v8700_v11 = vpop.f32.mrb[35].mxu1  ;;  %v5720_v54 = vmax.f32 %v13036_v8, 0.0  ;;  %v10121_v5 = vld [vmem:[%s13238_s5 + $0x20] sm:$0xff]   ;;  %v10124_v8 = vld [vmem:[%s13238_s5 + $0x70] sm:$0xff]   ;;  %v10126_v9 = vld [vmem:[%s13238_s5 + $0x78] sm:$0xff]  }
 0x37a   :  { %7212 = vmatprep.subr.bf16.mxu0 %v10045_v44  ;;  %v10123_v44 = vld [vmem:[%s13238_s5 + $0x28] sm:$0xff]   ;;  %v5928_v11 = vld [vmem:[%s13237_s4] sm:$0xf] }
 0x37b   :  { %v5727_v55 = vpack.c.bf16 %v5720_v54, %v5720_v54 }
 0x37d   :  { %7213 = vmatpush1.bf16.msra.mxu0 %v10043_v37  ;;  %v10127_v37 = vld [vmem:[%s13238_s5 + $0x38] sm:$0xff]  }
 0x37e   :  { %7214 = vmatprep.subr.bf16.mxu0 %v10051_v39  ;;  %v5933_v39 = vrot.slane %v5928_v11, %v834_v61 }
 0x381   :  { %7215 = vmatpush1.bf16.msra.mxu0 %v10049_v14  ;;  %v5937_v14 = vrot.slane %v5928_v11, %v838_v62  ;;  %v10128_v62 = vld [vmem:[%s13238_s5 + $0x80] sm:$0xff]  }
 0x382   :  { %7216 = vmatprep.subr.bf16.mxu0 %v10057_v0  ;;  %v5945_v0 = vrot.slane %v5928_v11, %v846_v60 }
 0x385   :  { %7217 = vmatpush1.bf16.msra.mxu0 %v10055_v15 }
 0x386   :  { %7218 = vmatprep.subr.bf16.mxu0 %v10063_v45 }
 0x389   :  { %7219 = vmatpush1.bf16.msra.mxu0 %v10061_v17 }
 0x38a   :  { %7220 = vmatprep.subr.bf16.mxu0 %v10069_v21 }
 0x38d   :  { %7221 = vmatpush1.bf16.msra.mxu0 %v10067_v23 }
 0x38e   :  { %7222 = vmatprep.subr.bf16.mxu0 %v10075_v41 }
 0x391   :  { %7223 = vmatpush1.bf16.msra.mxu0 %v10073_v20 }
 0x392   :  { %7224 = vmatprep.subr.bf16.mxu0 %v10081_v24 }
 0x395   :  { %7225 = vmatpush1.bf16.msra.mxu0 %v10079_v56 }
 0x396   :  { %7226 = vmatprep.subr.bf16.mxu0 %v10087_v25 }
 0x399   :  { %7227 = vmatpush1.bf16.msra.mxu0 %v10085_v27 }
 0x39a   :  { %7228 = vmatprep.subr.bf16.mxu0 %v10093_v30 }
 0x39d   :  { %7229 = vmatpush1.bf16.msra.mxu0 %v10091_v31 }
 0x39e   :  { %7230 = vmatprep.subr.bf16.mxu0 %v10099_v32 }
 0x3a1   :  { %7231 = vmatpush1.bf16.msra.mxu0 %v10097_v33 }
 0x3a2   :  { %7241 = vmatprep.subr.bf16.mxu0 %v10105_v34  ;;  %v10129_v34 = vld [vmem:[%s13238_s5 + $0x88] sm:$0xff]  }
 0x3b7   :  { %v5427_v38 = vpop.f32.mrb[4].mxu0 }
 0x3b8   :  { %v8707_v28 = vadd.f32 %v5427_v38, %v851_v16  ;;  %v5429_v63 = vpop.f32.mrb[5].mxu0  ;;  %v10132_v16 = vld [vmem:[%s13238_s5 + $0xa0] sm:$0xff]   ;;  %v10134_v38 = vld [vmem:[%s13238_s5 + $0xb0] sm:$0xff]  }
 0x3b9   :  { %v8708_v40 = vadd.f32 %v5429_v63, %v855_v19  ;;  %v5431_v43 = vpop.f32.mrb[6].mxu0  ;;  %v10133_v19 = vld [vmem:[%s13238_s5 + $0xa8] sm:$0xff]   ;;  %v10135_v63 = vld [vmem:[%s13238_s5 + $0xb8] sm:$0xff]  }
 0x3ba   :  { %v5718_v46 = vmax.f32 %v8707_v28, 0.0  ;;  %v5432_v13 = vpop.f32.mrb[7].mxu0  ;;  %v5941_v28 = vrot.slane %v5928_v11, %v842_v7  ;;  %v10136_v43 = vld [vmem:[%s13238_s5 + $0xc0] sm:$0xff]   ;;  %s10140_s5 = scalar_lea.vmem %s7590_s13, 32 }
 0x3bb   :  { %v5719_v47 = vmax.f32 %v8708_v40, 0.0  ;;  %p10141_p0 = scmp.ne.s32.totalorder %s7590_s13, %s10140_s5  ;;  %p10146_p2 = scmp.lt.s32.totalorder %s10140_s5, %s10140_s5 }
 0x3bc   :  { %v5725_v57 = vpack.c.bf16 %v5718_v46, %v5718_v46 }
 0x3bd   :  { %v5726_v48 = vpack.c.bf16 %v5719_v47, %v5719_v47  ;;  %p10147_p3 = por %p10146_p2, %p10145_p1 }
 0x3bf   :  { %7068 = vmatprep.mubr.bf16.mxu1 %v5726_v48  ;;  %7232 = vmatprep.mubr.bf16.mxu0 %v5726_v48  ;;  %p10148_p4 = pnand %p10147_p3, %p10141_p0 }
 0x3c0   :  { %7069 = vmatmul.mubr.bf16.vlgmr.msra.gmra.mrb[36].mxu1 %v5725_v57  ;;  %7233 = vmatmul.mubr.bf16.vlgmr.msra.gmra.mrb[8].mxu0 %v5725_v57 }
 0x3c1   :  { %7078 = vmatpush1.bf16.msra.mxu1 %v10100_v49  ;;  %7242 = vmatpush1.bf16.msra.mxu0 %v10103_v50  ;;  %v8503_v50 = vld [vmem:[%s13239_s6] ss:$0 sm:$0xff] }
 0x3c2   :  { %7079 = vmatprep.subr.bf16.mxu1 %v10108_v3  ;;  %7243 = vmatprep.subr.bf16.mxu0 %v10111_v51 }
 0x3c3   :  { %7109 = vmatprep.mubr.bf16.mxu1 %v10165_v26  ;;  %7273 = vmatprep.mubr.bf16.mxu0 %v10165_v26 }
 0x3c5   :  { %7080 = vmatpush1.bf16.msra.mxu1 %v10106_v52  ;;  %7244 = vmatpush1.bf16.msra.mxu0 %v10109_v18 }
 0x3c6   :  { %8667 = vmatprep.subr.bf16.mxu1 %v10112_v53 }
 0x3cc   :  { %8501 = vmatmul.mubr.msk.bf16.vlgmr.msra.gmra.mrb[36].mxu1 %vm6950_vm2, %v5727_v55  ;;  %8502 = vmatmul.mubr.msk.bf16.vlgmr.msra.gmra.mrb[8].mxu0 %vm6950_vm2, %v5727_v55 }
 0x3cd   :  { %8668 = vmatpush3.bf16.msra.mxu1 %v10113_v10 }
 0x3ce   :  { %8669 = vmatprep.subr.bf16.mxu1 %v10114_v29 }
 0x3d1   :  { %8670 = vmatpush3.bf16.msra.mxu1 %v10115_v22 }
 0x3d2   :  { %8671 = vmatprep.subr.bf16.mxu1 %v10116_v58 }
 0x3d5   :  { %8672 = vmatpush3.bf16.msra.mxu1 %v10117_v59 }
 0x3d6   :  { %8673 = vmatprep.subr.bf16.mxu1 %v10118_v1 }
 0x3d9   :  { %8674 = vmatpush3.bf16.msra.mxu1 %v10119_v2 }
 0x3da   :  { %8675 = vmatprep.subr.bf16.mxu1 %v10120_v4 }
 0x3dd   :  { %8676 = vmatpush3.bf16.msra.mxu1 %v10121_v5 }
 0x3de   :  { %8677 = vmatprep.subr.bf16.mxu1 %v10122_v6 }
 0x3e1   :  { %8678 = vmatpush3.bf16.msra.mxu1 %v10123_v44 }
 0x3e2   :  { %8679 = vmatprep.subr.bf16.mxu1 %v10124_v8 }
 0x3e5   :  { %8680 = vmatpush3.bf16.msra.mxu1 %v10125_v12 }
 0x3e6   :  { %8681 = vmatprep.subr.bf16.mxu1 %v10126_v9 }
 0x3e9   :  { %8682 = vmatpush3.bf16.msra.mxu1 %v10127_v37 }
 0x3ea   :  { %7541 = vmatprep.subr.bf16.mxu1 %v10165_v26 }
 0x49f   :  { %v7111_v15 = vpop.f32.mrb[36].mxu1  ;;  %v7275_v45 = vpop.f32.mrb[8].mxu0 }
 0x4a0   :  { %v8709_v17 = vadd.f32 %v7111_v15, %v5933_v39  ;;  %v7113_v21 = vpop.f32.mrb[37].mxu1  ;;  %v7277_v23 = vpop.f32.mrb[9].mxu0  ;;  %v8711_v40 = vadd.f32 %v7275_v45, %v5941_v28 }
 0x4a1   :  { %v8710_v41 = vadd.f32 %v7113_v21, %v5937_v14  ;;  %v8712_v20 = vadd.f32 %v7277_v23, %v5945_v0  ;;  %v7115_v24 = vpop.f32.mrb[38].mxu1  ;;  %v7279_v56 = vpop.f32.mrb[10].mxu0 }
 0x4a2   :  { %v7282_v25 = vmax.f32 %v8709_v17, 0.0  ;;  %v7116_v27 = vpop.f32.mrb[39].mxu1  ;;  %v7280_v30 = vpop.f32.mrb[11].mxu0  ;;  %v7284_v46 = vmax.f32 %v8711_v40, 0.0 }
 0x4a3   :  { %v7283_v31 = vmax.f32 %v8710_v41, 0.0  ;;  %v7285_v61 = vmax.f32 %v8712_v20, 0.0 }
 0x4a4   :  { %v7286_v60 = vpack.c.bf16 %v7282_v25, %v7282_v25  ;;  %v7288_v42 = vpack.c.bf16 %v7284_v46, %v7284_v46 }
 0x4a5   :  { %v7287_v32 = vpack.c.bf16 %v7283_v31, %v7283_v31  ;;  %v7289_v33 = vpack.c.bf16 %v7285_v61, %v7285_v61 }
 0x4a7   :  { %7533 = vmatprep.mubr.bf16.mxu1 %v7287_v32 }
 0x4a8   :  { %7534 = vmatmul.mubr.bf16.vlgmr.msra.gmra.mrb[40].mxu1 %v7286_v60 }
 0x4a9   :  { %7542 = vmatpush1.bf16.msra.mxu1 %v10128_v62  ;;  %8529 = vmatprep.mubr.msk.bf16.mxu1 %vm7497_vm3, %v7289_v33 }
 0x4aa   :  { %7543 = vmatprep.subr.bf16.mxu1 %v10165_v26 }
 0x4ad   :  { %7544 = vmatpush1.bf16.msra.mxu1 %v10129_v34 }
 0x4ae   :  { %7545 = vmatprep.subr.bf16.mxu1 %v10165_v26 }
 0x4b1   :  { %7546 = vmatpush1.bf16.msra.mxu1 %v10130_v35 }
 0x4b2   :  { %7547 = vmatprep.subr.bf16.mxu1 %v10165_v26 }
 0x4b5   :  { %7548 = vmatpush1.bf16.msra.mxu1 %v10131_v36 }
 0x4b6   :  { %7549 = vmatprep.subr.bf16.mxu1 %v10165_v26 }
 0x4b9   :  { %7550 = vmatpush1.bf16.msra.mxu1 %v10132_v16 }
 0x4ba   :  { %7551 = vmatprep.subr.bf16.mxu1 %v10165_v26 }
 0x4bd   :  { %7552 = vmatpush1.bf16.msra.mxu1 %v10133_v19 }
 0x4be   :  { %7553 = vmatprep.subr.bf16.mxu1 %v10165_v26 }
 0x4c1   :  { %7554 = vmatpush1.bf16.msra.mxu1 %v10134_v38 }
 0x4c2   :  { %7555 = vmatprep.subr.bf16.mxu1 %v10165_v26 }
 0x4c5   :  { %7556 = vmatpush1.bf16.msra.mxu1 %v10135_v63 }
 0x4c6   :  { %7557 = vmatprep.subr.bf16.mxu1 %v10165_v26 }
 0x4c9   :  { %7558 = vmatpush1.bf16.msra.mxu1 %v10136_v43 }
 0x4cc   :  { %7574 = vmatmul.mubr.bf16.vlgmr.msra.gmra.mrb[44].mxu1 %v7288_v42 }
 0x57b   :  { %v8683_v7 = vpop.f32.mrb[40].mxu1 }
 0x57c   :  { %v8684_v13 = vpop.f32.mrb[41].mxu1 }
 0x57d   :  { %v8685_v47 = vadd.f32 %v8684_v13, %v8683_v7  ;;  %v8686_v48 = vpop.f32.mrb[42].mxu1 }
 0x57e   :  { %v8687_v49 = vpop.f32.mrb[43].mxu1 }
 0x57f   :  { %v7536_v57 = vadd.f32 %v8685_v47, %v8503_v50 }
 0x59f   :  { %v7575_v3 = vpop.f32.mrb[44].mxu1 }
 0x5a0   :  { %v7576_v51 = vadd.f32 %v7575_v3, %v7536_v57  ;;  %v7577_v52 = vpop.f32.mrb[45].mxu1 }
 0x5a1   :  { %v7578_v26 = vpop.f32.mrb[46].mxu1 }
 0x5a2   :  { %v7579_v18 = vpop.f32.mrb[47].mxu1  ;;  %7582 = vst.msk [vmem:[#allocation2] sm:$0x3] %vm7581_vm4, %v7576_v51 }
 0x5a3   :  { %10151 = shalt.err (!%p10148_p4)
}
 0x5a4   :  { %s10152_s15 = scalar_lea.hbm %s13240_s7, 32 }
 0x5a5   :  { %p10153_p5 = scmp.ne.s32.totalorder %s13240_s7, %s10152_s15  ;;  %p10156_p6 = scmp.lt.u32.totalorder %s10152_s15, %s13240_s7 }
 0x5a7   :  { %p10158_p7 = pnand %p10156_p6, %p10153_p5 }
 0x5a9   :  { %10161 = shalt.err (!%p10158_p7)
}
 0x5aa   :  { %7592 = dma.vmem_to_hbm [thread:$0]  %s7590_s13, 32, %s13240_s7, [#allocation3]  }
 0x5ab   :  { %10162 = dma.done.wait [#allocation3], 32  }
 0x5ac   :  { %10163 = vsyncadd [#allocation3], 4294967264 }
 0x5ad   :  { %7596 = vsyncpa [#allocation3], 1 }

</bundles_post_ra>
